<compile_context>
chip_gen: v6e
topology: v6e:2x2x1
jax: 0.10.0
libtpu: 0.0.40
codegen_flags: <defaults>
</compile_context>

<pallas_src>
import math

import jax
import jax.numpy as jnp
from jax.experimental import pallas as pl
from jax.experimental.pallas import tpu as pltpu

_PATCH = 25            # 5x5 conv filter taps
_CH = 20               # conv output channels
_POS = 36              # 6x6 pooled spatial positions per image
_K = _POS * _PATCH     # 900: im2col features per image per pool-window member
_F = _POS * _CH        # 720: fc1 input features (pos*20 + c, lane-dense)
_FC1 = 512             # fc1 width padded 500 -> 512


def _round_up(a, b):
    return (a + b - 1) // b * b


# ----------------------------------------------------------------------------
# Fused kernel: conv (block-diag matmul) + pool + ReLU + fc1 + fc2 + fc3.
#   patches: (4, TB, 900) bf16   wbig: (900, 720) bf16   bc: (1, 720) f32
#   w1: (720, 512) bf16  b1: (1, 512) f32
#   w2: (512, 2) f32     b2: (1, 2) f32   w3: (2, 10) f32   b3: (1, 10) f32
#   outputs: logits (TB, 10) f32, embedding (TB, 2) f32
# ----------------------------------------------------------------------------
def net_embedding_kernel(patches_ref, wbig_ref, bc_ref, w1_ref, b1_ref,
                         w2_ref, b2_ref, w3_ref, b3_ref,
                         logits_ref, emb_ref):
    tb = emb_ref.shape[0]

    # conv1 for all 4 pool-window members in a single MXU matmul.
    # (4, TB, 900) -> (4*TB, 900) is a tile-aligned leading-dim merge (TB % 16 == 0).
    p = patches_ref[...].reshape(4 * tb, _K)
    c = jnp.dot(p, wbig_ref[...], preferred_element_type=jnp.float32)  # (4*TB, 720)

    # 2x2 max-pool over window members (tile-aligned sublane slices); conv bias
    # and ReLU hoisted after the max (both commute with max).
    pooled = jnp.maximum(jnp.maximum(c[0 * tb:1 * tb], c[1 * tb:2 * tb]),
                         jnp.maximum(c[2 * tb:3 * tb], c[3 * tb:4 * tb]))
    pooled = jnp.maximum(pooled + bc_ref[...], 0.0)                    # (TB, 720) f32

    # fc1 + ReLU (bf16 operands, f32 accumulation; output padded to 512 lanes).
    h = jnp.dot(pooled.astype(jnp.bfloat16), w1_ref[...],
                preferred_element_type=jnp.float32)
    h = jnp.maximum(h + b1_ref[...], 0.0)                              # (TB, 512) f32

    # fc2 -> embedding (f32; tiny N=2).
    emb = jnp.dot(h, w2_ref[...], preferred_element_type=jnp.float32) + b2_ref[...]

    # fc3 contracts over only 2 elements -> VPU broadcasted FMA straight from
    # the in-register embedding value.
    logits = (emb[:, 0:1] * w3_ref[0:1, :]
              + emb[:, 1:2] * w3_ref[1:2, :]
              + b3_ref[...])

    emb_ref[...] = emb
    logits_ref[...] = logits


# ----------------------------------------------------------------------------
# One-time parameter preparation (hoisted out of the forward path).
# ----------------------------------------------------------------------------
def prepare_params(params):
    # conv weight as (25, 20) = (ky*5+kx, out_ch), then block-diagonal (900, 720)
    # so that patches (.., pos*25+k) @ wbig -> (.., pos*20+c).
    wc = params["conv_w"].reshape(_CH, _PATCH).T                        # (25, 20)
    eye = jnp.eye(_POS, dtype=jnp.float32)
    wbig = (eye[:, None, :, None] * wc[None, :, None, :]).reshape(_K, _F)

    # conv bias replicated per pooled position: bc[pos*20 + c] = conv_b[c].
    bc = jnp.tile(params["conv_b"], _POS).reshape(1, _F)

    # fc1: torch flatten order is c*36 + pos; our lanes are pos*20 + c.
    w1 = (params["fc1_w"].reshape(500, _CH, _POS)
          .transpose(0, 2, 1).reshape(500, _F).T)                       # (720, 500)
    w1 = jnp.pad(w1, ((0, 0), (0, _FC1 - 500)))                         # (720, 512)
    b1 = jnp.pad(params["fc1_b"], (0, _FC1 - 500)).reshape(1, _FC1)

    w2 = jnp.pad(params["fc2_w"].T, ((0, _FC1 - 500), (0, 0)))          # (512, 2)
    b2 = params["fc2_b"].reshape(1, 2)
    w3 = params["fc3_w"].T                                              # (2, 10)
    b3 = params["fc3_b"].reshape(1, 10)

    return {
        "wbig": wbig.astype(jnp.bfloat16),
        "bc": bc.astype(jnp.float32),
        "w1": w1.astype(jnp.bfloat16),
        "b1": b1.astype(jnp.float32),
        "w2": w2.astype(jnp.float32),
        "b2": b2.astype(jnp.float32),
        "w3": w3.astype(jnp.float32),
        "b3": b3.astype(jnp.float32),
    }


def _build_patches(x, n_pad):
    """x: (N, 1, 28, 28) f32 -> (4, n_pad, 900) bf16 lane-dense im2col patches.

    patches[wy*2+wx, b, pos*25 + ky*5+kx] = x[b, 0, 4*oy+2*wy+ky, 4*ox+2*wx+kx]
    with pos = oy*6 + ox (the pooled output position).
    """
    n = x.shape[0]
    img = x[:, 0]                                             # (N, 28, 28)
    cols = []
    for ky in range(5):
        for kx in range(5):
            cols.append(img[:, ky:ky + 24:2, kx:kx + 24:2])   # (N, 12, 12)
    pk = jnp.stack(cols, axis=-1)                             # (N, 12, 12, 25)
    groups = []
    for wy in range(2):
        for wx in range(2):
            g = pk[:, wy::2, wx::2, :]                        # (N, 6, 6, 25)
            groups.append(g.reshape(n, _K))                   # lane = pos*25 + k
    patches = jnp.stack(groups, axis=0)                       # (4, N, 900)
    if n_pad > n:
        patches = jnp.pad(patches, ((0, 0), (0, n_pad - n), (0, 0)))
    return patches.astype(jnp.bfloat16)


# ----------------------------------------------------------------------------
# Forward pass.
# ----------------------------------------------------------------------------
def net_embedding_forward(x, prepared):
    """Pallas implementation of NetEmbedding.forward. x: (N, 1, 28, 28) f32."""
    n = x.shape[0]
    tb = min(256, _round_up(n, 16))        # rows per grid step (multiple of 16)
    n_pad = _round_up(n, tb)
    patches = _build_patches(x, n_pad)     # (4, n_pad, 900) bf16

    grid = (n_pad // tb,)
    logits, emb = pl.pallas_call(
        net_embedding_kernel,
        out_shape=(jax.ShapeDtypeStruct((n_pad, 10), jnp.float32),
                   jax.ShapeDtypeStruct((n_pad, 2), jnp.float32)),
        grid_spec=pltpu.PrefetchScalarGridSpec(
            num_scalar_prefetch=0,
            grid=grid,
            in_specs=[
                pl.BlockSpec((4, tb, _K), lambda i: (0, i, 0)),   # patches (tiled)
                pl.BlockSpec((_K, _F), lambda i: (0, 0)),         # wbig (fetched once)
                pl.BlockSpec((1, _F), lambda i: (0, 0)),          # conv bias
                pl.BlockSpec((_F, _FC1), lambda i: (0, 0)),       # w1
                pl.BlockSpec((1, _FC1), lambda i: (0, 0)),        # b1
                pl.BlockSpec((_FC1, 2), lambda i: (0, 0)),        # w2
                pl.BlockSpec((1, 2), lambda i: (0, 0)),           # b2
                pl.BlockSpec((2, 10), lambda i: (0, 0)),          # w3
                pl.BlockSpec((1, 10), lambda i: (0, 0)),          # b3
            ],
            out_specs=[
                pl.BlockSpec((tb, 10), lambda i: (i, 0)),         # logits
                pl.BlockSpec((tb, 2), lambda i: (i, 0)),          # embedding
            ],
        ),
        compiler_params=pltpu.CompilerParams(
            dimension_semantics=("parallel",),
            vmem_limit_bytes=40 * 1024 * 1024,
        ),
    )(patches, prepared["wbig"], prepared["bc"], prepared["w1"], prepared["b1"],
      prepared["w2"], prepared["b2"], prepared["w3"], prepared["b3"])

    return logits[:n], emb[:n]


# ----------------------------------------------------------------------------
# Pure-JAX reference (matches the PyTorch module semantics) for validation.
# ----------------------------------------------------------------------------
def reference_forward(x, params):
    hi = jax.lax.Precision.HIGHEST
    y = jax.lax.conv_general_dilated(
        x, params["conv_w"], window_strides=(2, 2), padding="VALID",
        dimension_numbers=("NCHW", "OIHW", "NCHW"), precision=hi)
    y = y + params["conv_b"][None, :, None, None]
    y = jnp.maximum(y, 0.0)
    y = jax.lax.reduce_window(y, -jnp.inf, jax.lax.max,
                              (1, 1, 2, 2), (1, 1, 2, 2), "VALID")
    xf = y.reshape(x.shape[0], -1)                         # torch-style flatten
    h = jnp.maximum(jnp.dot(xf, params["fc1_w"].T, precision=hi) + params["fc1_b"], 0.0)
    emb = jnp.dot(h, params["fc2_w"].T, precision=hi) + params["fc2_b"]
    out = jnp.dot(emb, params["fc3_w"].T, precision=hi) + params["fc3_b"]
    return out, emb


def init_params(key):
    ks = jax.random.split(key, 8)

    def u(k, shape, fan_in):
        bound = 1.0 / math.sqrt(fan_in)
        return jax.random.uniform(k, shape, jnp.float32, -bound, bound)

    return {
        "conv_w": u(ks[0], (20, 1, 5, 5), 25),
        "conv_b": u(ks[1], (20,), 25),
        "fc1_w": u(ks[2], (500, 720), 720),
        "fc1_b": u(ks[3], (500,), 720),
        "fc2_w": u(ks[4], (2, 500), 500),
        "fc2_b": u(ks[5], (2,), 500),
        "fc3_w": u(ks[6], (10, 2), 2),
        "fc3_b": u(ks[7], (10,), 2),
    }


if __name__ == "__main__":
    key = jax.random.PRNGKey(0)
    k_params, k_x = jax.random.split(key)
    params = init_params(k_params)
    prepared = prepare_params(params)   # one-time weight prep (hoisted from forward)

    # Conv2d(1,20,5,2) -> 12x12 -> pool -> 6x6 -> 720 features requires 28x28 input.
    x = jax.random.normal(k_x, (2, 1, 28, 28), jnp.float32)

    fwd = jax.jit(net_embedding_forward)
    logits, embedding = fwd(x, prepared)
    jax.block_until_ready((logits, embedding))

    ref_logits, ref_emb = reference_forward(x, params)
    assert logits.shape == (2, 10) and embedding.shape == (2, 2)
    # bf16 matmul operands with f32 accumulation -> slightly looser tolerance.
    assert jnp.allclose(logits, ref_logits, atol=2e-2, rtol=2e-2)
    assert jnp.allclose(embedding, ref_emb, atol=2e-2, rtol=2e-2)
    print("KERNEL_OK")
</pallas_src>

<mosaic_0001>
module attributes {stable_mosaic.version = 11 : i64} {
  func.func @net_embedding_kernel(%arg0: i32, %arg1: memref<4x16x900xbf16, #tpu.memory_space<vmem>>, %arg2: memref<900x720xbf16, #tpu.memory_space<vmem>>, %arg3: memref<1x720xf32, #tpu.memory_space<vmem>>, %arg4: memref<720x512xbf16, #tpu.memory_space<vmem>>, %arg5: memref<1x512xf32, #tpu.memory_space<vmem>>, %arg6: memref<512x2xf32, #tpu.memory_space<vmem>>, %arg7: memref<1x2xf32, #tpu.memory_space<vmem>>, %arg8: memref<2x10xf32, #tpu.memory_space<vmem>>, %arg9: memref<1x10xf32, #tpu.memory_space<vmem>>, %arg10: memref<16x10xf32, #tpu.memory_space<vmem>>, %arg11: memref<16x2xf32, #tpu.memory_space<vmem>>) attributes {dimension_semantics = [#tpu.dimension_semantics<parallel>], iteration_bounds = array<i64: 1>, scalar_prefetch = 0 : i64, scratch_operands = 0 : i64, tpu.core_type = #tpu.core_type<tc>, window_params = [{transform_indices = @transform_0, window_bounds = array<i64: 4, 16, 900>}, {pipeline_mode = #tpu.pipeline_mode<synchronous>, transform_indices = @transform_1, window_bounds = array<i64: 900, 720>}, {pipeline_mode = #tpu.pipeline_mode<synchronous>, transform_indices = @transform_2, window_bounds = array<i64: 1, 720>}, {pipeline_mode = #tpu.pipeline_mode<synchronous>, transform_indices = @transform_3, window_bounds = array<i64: 720, 512>}, {pipeline_mode = #tpu.pipeline_mode<synchronous>, transform_indices = @transform_4, window_bounds = array<i64: 1, 512>}, {pipeline_mode = #tpu.pipeline_mode<synchronous>, transform_indices = @transform_5, window_bounds = array<i64: 512, 2>}, {pipeline_mode = #tpu.pipeline_mode<synchronous>, transform_indices = @transform_6, window_bounds = array<i64: 1, 2>}, {pipeline_mode = #tpu.pipeline_mode<synchronous>, transform_indices = @transform_7, window_bounds = array<i64: 2, 10>}, {pipeline_mode = #tpu.pipeline_mode<synchronous>, transform_indices = @transform_8, window_bounds = array<i64: 1, 10>}, {transform_indices = @transform_9, window_bounds = array<i64: 16, 10>}, {transform_indices = @transform_10, window_bounds = array<i64: 16, 2>}]} {
    %c0 = arith.constant 0 : index
    %c0_0 = arith.constant 0 : index
    %c0_1 = arith.constant 0 : index
    %0 = vector.load %arg1[%c0, %c0_0, %c0_1] : memref<4x16x900xbf16, #tpu.memory_space<vmem>>, vector<4x16x900xbf16>
    %1 = vector.shape_cast %0 : vector<4x16x900xbf16> to vector<64x900xbf16>
    %c0_2 = arith.constant 0 : index
    %c0_3 = arith.constant 0 : index
    %2 = vector.load %arg2[%c0_2, %c0_3] : memref<900x720xbf16, #tpu.memory_space<vmem>>, vector<900x720xbf16>
    %cst = arith.constant dense<0.000000e+00> : vector<64x720xf32>
    %3 = tpu.matmul %1, %2, %cst {dimension_numbers = #tpu.dot_dimension_numbers<[1], [0], [0], [1], [0, 0, 1, 1], [], []>} : vector<64x900xbf16>, vector<900x720xbf16>, vector<64x720xf32> -> vector<64x720xf32>
    %4 = vector.extract_strided_slice %3 {offsets = [0, 0], sizes = [16, 720], strides = [1, 1]} : vector<64x720xf32> to vector<16x720xf32>
    %5 = vector.extract_strided_slice %3 {offsets = [16, 0], sizes = [16, 720], strides = [1, 1]} : vector<64x720xf32> to vector<16x720xf32>
    %6 = arith.maximumf %4, %5 : vector<16x720xf32>
    %7 = vector.extract_strided_slice %3 {offsets = [32, 0], sizes = [16, 720], strides = [1, 1]} : vector<64x720xf32> to vector<16x720xf32>
    %8 = vector.extract_strided_slice %3 {offsets = [48, 0], sizes = [16, 720], strides = [1, 1]} : vector<64x720xf32> to vector<16x720xf32>
    %9 = arith.maximumf %7, %8 : vector<16x720xf32>
    %10 = arith.maximumf %6, %9 : vector<16x720xf32>
    %c0_4 = arith.constant 0 : index
    %c0_5 = arith.constant 0 : index
    %11 = vector.load %arg3[%c0_4, %c0_5] : memref<1x720xf32, #tpu.memory_space<vmem>>, vector<1x720xf32>
    %12 = vector.broadcast %11 : vector<1x720xf32> to vector<16x720xf32>
    %13 = arith.addf %10, %12 : vector<16x720xf32>
    %cst_6 = arith.constant 0.000000e+00 : f32
    %14 = vector.broadcast %cst_6 : f32 to vector<16x720xf32>
    %15 = arith.maximumf %13, %14 : vector<16x720xf32>
    %16 = arith.truncf %15 : vector<16x720xf32> to vector<16x720xbf16>
    %c0_7 = arith.constant 0 : index
    %c0_8 = arith.constant 0 : index
    %17 = vector.load %arg4[%c0_7, %c0_8] : memref<720x512xbf16, #tpu.memory_space<vmem>>, vector<720x512xbf16>
    %cst_9 = arith.constant dense<0.000000e+00> : vector<16x512xf32>
    %18 = tpu.matmul %16, %17, %cst_9 {dimension_numbers = #tpu.dot_dimension_numbers<[1], [0], [0], [1], [0, 0, 1, 1], [], []>} : vector<16x720xbf16>, vector<720x512xbf16>, vector<16x512xf32> -> vector<16x512xf32>
    %c0_10 = arith.constant 0 : index
    %c0_11 = arith.constant 0 : index
    %19 = vector.load %arg5[%c0_10, %c0_11] : memref<1x512xf32, #tpu.memory_space<vmem>>, vector<1x512xf32>
    %20 = vector.broadcast %19 : vector<1x512xf32> to vector<16x512xf32>
    %21 = arith.addf %18, %20 : vector<16x512xf32>
    %cst_12 = arith.constant 0.000000e+00 : f32
    %22 = vector.broadcast %cst_12 : f32 to vector<16x512xf32>
    %23 = arith.maximumf %21, %22 : vector<16x512xf32>
    %c0_13 = arith.constant 0 : index
    %c0_14 = arith.constant 0 : index
    %24 = vector.load %arg6[%c0_13, %c0_14] : memref<512x2xf32, #tpu.memory_space<vmem>>, vector<512x2xf32>
    %cst_15 = arith.constant dense<0.000000e+00> : vector<16x2xf32>
    %25 = tpu.matmul %23, %24, %cst_15 {dimension_numbers = #tpu.dot_dimension_numbers<[1], [0], [0], [1], [0, 0, 1, 1], [], []>} : vector<16x512xf32>, vector<512x2xf32>, vector<16x2xf32> -> vector<16x2xf32>
    %c0_16 = arith.constant 0 : index
    %c0_17 = arith.constant 0 : index
    %26 = vector.load %arg7[%c0_16, %c0_17] : memref<1x2xf32, #tpu.memory_space<vmem>>, vector<1x2xf32>
    %27 = vector.broadcast %26 : vector<1x2xf32> to vector<16x2xf32>
    %28 = arith.addf %25, %27 : vector<16x2xf32>
    %29 = vector.extract_strided_slice %28 {offsets = [0, 0], sizes = [16, 1], strides = [1, 1]} : vector<16x2xf32> to vector<16x1xf32>
    %c0_18 = arith.constant 0 : index
    %c0_19 = arith.constant 0 : index
    %30 = vector.load %arg8[%c0_18, %c0_19] : memref<2x10xf32, #tpu.memory_space<vmem>>, vector<1x10xf32>
    %31 = vector.broadcast %29 : vector<16x1xf32> to vector<16x10xf32>
    %32 = vector.broadcast %30 : vector<1x10xf32> to vector<16x10xf32>
    %33 = arith.mulf %31, %32 : vector<16x10xf32>
    %34 = vector.extract_strided_slice %28 {offsets = [0, 1], sizes = [16, 1], strides = [1, 1]} : vector<16x2xf32> to vector<16x1xf32>
    %c1 = arith.constant 1 : index
    %c0_20 = arith.constant 0 : index
    %35 = vector.load %arg8[%c1, %c0_20] : memref<2x10xf32, #tpu.memory_space<vmem>>, vector<1x10xf32>
    %36 = vector.broadcast %34 : vector<16x1xf32> to vector<16x10xf32>
    %37 = vector.broadcast %35 : vector<1x10xf32> to vector<16x10xf32>
    %38 = arith.mulf %36, %37 : vector<16x10xf32>
    %39 = arith.addf %33, %38 : vector<16x10xf32>
    %c0_21 = arith.constant 0 : index
    %c0_22 = arith.constant 0 : index
    %40 = vector.load %arg9[%c0_21, %c0_22] : memref<1x10xf32, #tpu.memory_space<vmem>>, vector<1x10xf32>
    %41 = vector.broadcast %40 : vector<1x10xf32> to vector<16x10xf32>
    %42 = arith.addf %39, %41 : vector<16x10xf32>
    %c0_23 = arith.constant 0 : index
    %c0_24 = arith.constant 0 : index
    %43 = vector.load %arg11[%c0_23, %c0_24] : memref<16x2xf32, #tpu.memory_space<vmem>>, vector<16x2xf32>
    tpu.vector_store %arg11[%c0_23, %c0_24], %28 {strides = array<i32>} : memref<16x2xf32, #tpu.memory_space<vmem>>, vector<16x2xf32>,
    %c0_25 = arith.constant 0 : index
    %c0_26 = arith.constant 0 : index
    %44 = vector.load %arg10[%c0_25, %c0_26] : memref<16x10xf32, #tpu.memory_space<vmem>>, vector<16x10xf32>
    tpu.vector_store %arg10[%c0_25, %c0_26], %42 {strides = array<i32>} : memref<16x10xf32, #tpu.memory_space<vmem>>, vector<16x10xf32>,
    return
  }
  func.func @transform_0(%arg0: i32) -> (i32, i32, i32) {
    %c0_i32 = arith.constant 0 : i32
    %c0_i32_0 = arith.constant 0 : i32
    %c0_i32_1 = arith.constant 0 : i32
    return %c0_i32, %arg0, %c0_i32_0 : i32, i32, i32
  }
  func.func @transform_1(%arg0: i32) -> (i32, i32) {
    %c0_i32 = arith.constant 0 : i32
    %c0_i32_0 = arith.constant 0 : i32
    %c0_i32_1 = arith.constant 0 : i32
    return %c0_i32, %c0_i32_0 : i32, i32
  }
  func.func @transform_2(%arg0: i32) -> (i32, i32) {
    %c0_i32 = arith.constant 0 : i32
    %c0_i32_0 = arith.constant 0 : i32
    %c0_i32_1 = arith.constant 0 : i32
    return %c0_i32, %c0_i32_0 : i32, i32
  }
  func.func @transform_3(%arg0: i32) -> (i32, i32) {
    %c0_i32 = arith.constant 0 : i32
    %c0_i32_0 = arith.constant 0 : i32
    %c0_i32_1 = arith.constant 0 : i32
    return %c0_i32, %c0_i32_0 : i32, i32
  }
  func.func @transform_4(%arg0: i32) -> (i32, i32) {
    %c0_i32 = arith.constant 0 : i32
    %c0_i32_0 = arith.constant 0 : i32
    %c0_i32_1 = arith.constant 0 : i32
    return %c0_i32, %c0_i32_0 : i32, i32
  }
  func.func @transform_5(%arg0: i32) -> (i32, i32) {
    %c0_i32 = arith.constant 0 : i32
    %c0_i32_0 = arith.constant 0 : i32
    %c0_i32_1 = arith.constant 0 : i32
    return %c0_i32, %c0_i32_0 : i32, i32
  }
  func.func @transform_6(%arg0: i32) -> (i32, i32) {
    %c0_i32 = arith.constant 0 : i32
    %c0_i32_0 = arith.constant 0 : i32
    %c0_i32_1 = arith.constant 0 : i32
    return %c0_i32, %c0_i32_0 : i32, i32
  }
  func.func @transform_7(%arg0: i32) -> (i32, i32) {
    %c0_i32 = arith.constant 0 : i32
    %c0_i32_0 = arith.constant 0 : i32
    %c0_i32_1 = arith.constant 0 : i32
    return %c0_i32, %c0_i32_0 : i32, i32
  }
  func.func @transform_8(%arg0: i32) -> (i32, i32) {
    %c0_i32 = arith.constant 0 : i32
    %c0_i32_0 = arith.constant 0 : i32
    %c0_i32_1 = arith.constant 0 : i32
    return %c0_i32, %c0_i32_0 : i32, i32
  }
  func.func @transform_9(%arg0: i32) -> (i32, i32) {
    %c0_i32 = arith.constant 0 : i32
    %c0_i32_0 = arith.constant 0 : i32
    return %arg0, %c0_i32 : i32, i32
  }
  func.func @transform_10(%arg0: i32) -> (i32, i32) {
    %c0_i32 = arith.constant 0 : i32
    %c0_i32_0 = arith.constant 0 : i32
    return %arg0, %c0_i32 : i32, i32
  }
}

</mosaic_0001>

<bundles_post_ra>
// kernel: net_embedding_forward.1
= control target key start
LH: loop header
LB: loop body
LE: loop exit
PB: predicated region body
PF: predicated region fallthrough
CT: control target
= control target key end

     0   :  { %vm2257_vm0 = vcmask 31744   ;;  %vm2270_vm1 = vcmask 1041408   ;;  %vm4365_vm2 = vcmask 654336   ;;  %vm4899_vm3 = vcmask 15360   ;;  %s8924_s1 = inlined_call_operand.vmem [shape: bf16[900,720], index: 1, kind: input, shape index: {}]   ;;  %s8925_s0 = inlined_call_operand.vmem [shape: bf16[4,16,900], index: 0, kind: input, shape index: {}]   ;;  %s8926_s3 = inlined_call_operand.vmem [shape: bf16[720,512], index: 3, kind: input, shape index: {}]   ;;  %s8927_s2 = inlined_call_operand.vmem [shape: f32[1,720], index: 2, kind: input, shape index: {}]   ;;  %s8928_s5 = inlined_call_operand.vmem [shape: f32[512,2], index: 5, kind: input, shape index: {}]   ;;  %s8929_s4 = inlined_call_operand.vmem [shape: f32[1,512], index: 4, kind: input, shape index: {}]   ;;  %s8930_s6 = inlined_call_operand.vmem [shape: f32[1,2], index: 6, kind: input, shape index: {}]   ;;  %s8931_s10 = inlined_call_operand.vmem [shape: f32[16,2], index: 10, kind: output, shape index: {1}]   ;;  %s8932_s7 = inlined_call_operand.vmem [shape: f32[2,10], index: 7, kind: input, shape index: {}]   ;;  %s8933_s8 = inlined_call_operand.vmem [shape: f32[1,10], index: 8, kind: input, shape index: {}]   ;;  %s8934_s9 = inlined_call_operand.vmem [shape: f32[16,10], index: 9, kind: output, shape index: {0}]  }
   0x1   :  { %v5569_v0 = vld [vmem:[%s8924_s1 + $0x154] ss:$24 sps:$4 sm:$0xff]   ;;  %v5573_v2 = vld [vmem:[%s8924_s1 + $0x150] ss:$24 sps:$4 sm:$0xff]   ;;  %v5575_v4 = vld [vmem:[%s8924_s1 + $0x124] ss:$24 sps:$4 sm:$0xff]  }
   0x2   :  { %v5571_v1 = vld [vmem:[%s8924_s1 + $0x454] ss:$24 sps:$4 sm:$0xff]   ;;  %2289 = vmatprep.subr.bf16.mxu0 %v5569_v0  ;;  %v5574_v3 = vld [vmem:[%s8924_s1 + $0x450] ss:$24 sps:$4 sm:$0xff]   ;;  %v5577_v5 = vld [vmem:[%s8924_s1 + $0x424] ss:$24 sps:$4 sm:$0xff]  }
   0x3   :  { %2362 = vmatprep.subr.bf16.mxu1 %v5571_v1  ;;  %2290 = vmatpush1.bf16.msra.mxu0 %v5573_v2  ;;  %v5579_v6 = vld [vmem:[%s8924_s1 + $0x120] ss:$24 sps:$4 sm:$0xff]   ;;  %v5581_v8 = vld [vmem:[%s8924_s1 + $0xf4] ss:$24 sps:$4 sm:$0xff]   ;;  %v5585_v10 = vld [vmem:[%s8924_s1 + $0xf0] ss:$24 sps:$4 sm:$0xff]  }
   0x4   :  { %2363 = vmatpush1.bf16.msra.mxu1 %v5574_v3  ;;  %2291 = vmatprep.subr.bf16.mxu0 %v5575_v4  ;;  %v5580_v7 = vld [vmem:[%s8924_s1 + $0x420] ss:$24 sps:$4 sm:$0xff]   ;;  %v5583_v9 = vld [vmem:[%s8924_s1 + $0x3f4] ss:$24 sps:$4 sm:$0xff]   ;;  %v5586_v11 = vld [vmem:[%s8924_s1 + $0x3f0] ss:$24 sps:$4 sm:$0xff]  }
   0x5   :  { %2364 = vmatprep.subr.bf16.mxu1 %v5577_v5  ;;  %v5587_v12 = vld [vmem:[%s8924_s1 + $0xc4] ss:$24 sps:$4 sm:$0xff]   ;;  %v5591_v14 = vld [vmem:[%s8924_s1 + $0xc0] ss:$24 sps:$4 sm:$0xff]   ;;  %v5593_v16 = vld [vmem:[%s8924_s1 + $0x94] ss:$24 sps:$4 sm:$0xff]  }
   0x6   :  { %v5589_v13 = vld [vmem:[%s8924_s1 + $0x3c4] ss:$24 sps:$4 sm:$0xff]   ;;  %v5592_v15 = vld [vmem:[%s8924_s1 + $0x3c0] ss:$24 sps:$4 sm:$0xff]   ;;  %v5595_v17 = vld [vmem:[%s8924_s1 + $0x394] ss:$24 sps:$4 sm:$0xff]  }
   0x7   :  { %2292 = vmatpush1.bf16.msra.mxu0 %v5579_v6  ;;  %v5597_v18 = vld [vmem:[%s8924_s1 + $0x90] ss:$24 sps:$4 sm:$0xff]   ;;  %v5599_v20 = vld [vmem:[%s8924_s1 + $0x64] ss:$24 sps:$4 sm:$0xff]   ;;  %v5603_v22 = vld [vmem:[%s8924_s1 + $0x60] ss:$24 sps:$4 sm:$0xff]  }
   0x8   :  { %2365 = vmatpush1.bf16.msra.mxu1 %v5580_v7  ;;  %2293 = vmatprep.subr.bf16.mxu0 %v5581_v8  ;;  %v5598_v19 = vld [vmem:[%s8924_s1 + $0x390] ss:$24 sps:$4 sm:$0xff]   ;;  %v5601_v21 = vld [vmem:[%s8924_s1 + $0x364] ss:$24 sps:$4 sm:$0xff]   ;;  %v5604_v23 = vld [vmem:[%s8924_s1 + $0x360] ss:$24 sps:$4 sm:$0xff]  }
   0x9   :  { %2366 = vmatprep.subr.bf16.mxu1 %v5583_v9  ;;  %v5605_v24 = vld [vmem:[%s8924_s1 + $0x34] ss:$24 sps:$4 sm:$0xff]   ;;  %v5609_v26 = vld [vmem:[%s8924_s1 + $0x30] ss:$24 sps:$4 sm:$0xff]   ;;  %v5611_v28 = vld [vmem:[%s8924_s1 + $0x4] ss:$24 sps:$4 sm:$0xff]  }
   0xa   :  { %v5607_v25 = vld [vmem:[%s8924_s1 + $0x334] ss:$24 sps:$4 sm:$0xff]   ;;  %v5610_v27 = vld [vmem:[%s8924_s1 + $0x330] ss:$24 sps:$4 sm:$0xff]   ;;  %v5613_v29 = vld [vmem:[%s8924_s1 + $0x304] ss:$24 sps:$4 sm:$0xff]  }
   0xb   :  { %2294 = vmatpush1.bf16.msra.mxu0 %v5585_v10  ;;  %v5615_v30 = vld [vmem:[%s8924_s1] ss:$24 sps:$4 sm:$0xff]   ;;  %v5617_v32 = vld [vmem:[%s8924_s1 + $0x2d4] ss:$24 sps:$4 sm:$0xff]   ;;  %v5621_v34 = vld [vmem:[%s8924_s1 + $0x2d0] ss:$24 sps:$4 sm:$0xff]  }
   0xc   :  { %2367 = vmatpush1.bf16.msra.mxu1 %v5586_v11  ;;  %2295 = vmatprep.subr.bf16.mxu0 %v5587_v12  ;;  %v5616_v31 = vld [vmem:[%s8924_s1 + $0x300] ss:$24 sps:$4 sm:$0xff]   ;;  %v5619_v33 = vld [vmem:[%s8924_s1 + $0x5d4] ss:$24 sps:$4 sm:$0xff]   ;;  %v5622_v35 = vld [vmem:[%s8924_s1 + $0x5d0] ss:$24 sps:$4 sm:$0xff]  }
   0xd   :  { %2368 = vmatprep.subr.bf16.mxu1 %v5589_v13  ;;  %v5623_v36 = vld [vmem:[%s8924_s1 + $0x2a4] ss:$24 sps:$4 sm:$0xff]   ;;  %v5627_v38 = vld [vmem:[%s8924_s1 + $0x2a0] ss:$24 sps:$4 sm:$0xff]   ;;  %v5629_v40 = vld [vmem:[%s8924_s1 + $0x274] ss:$24 sps:$4 sm:$0xff]  }
   0xe   :  { %v5625_v37 = vld [vmem:[%s8924_s1 + $0x5a4] ss:$24 sps:$4 sm:$0xff]   ;;  %v5628_v39 = vld [vmem:[%s8924_s1 + $0x5a0] ss:$24 sps:$4 sm:$0xff]   ;;  %v5631_v41 = vld [vmem:[%s8924_s1 + $0x574] ss:$24 sps:$4 sm:$0xff]  }
   0xf   :  { %2296 = vmatpush1.bf16.msra.mxu0 %v5591_v14  ;;  %v5633_v42 = vld [vmem:[%s8924_s1 + $0x270] ss:$24 sps:$4 sm:$0xff]   ;;  %v5635_v44 = vld [vmem:[%s8924_s1 + $0x244] ss:$24 sps:$4 sm:$0xff]   ;;  %v5639_v46 = vld [vmem:[%s8924_s1 + $0x240] ss:$24 sps:$4 sm:$0xff]  }
  0x10   :  { %2369 = vmatpush1.bf16.msra.mxu1 %v5592_v15  ;;  %2297 = vmatprep.subr.bf16.mxu0 %v5593_v16  ;;  %v5634_v43 = vld [vmem:[%s8924_s1 + $0x570] ss:$24 sps:$4 sm:$0xff]   ;;  %v5637_v45 = vld [vmem:[%s8924_s1 + $0x544] ss:$24 sps:$4 sm:$0xff]   ;;  %v5640_v47 = vld [vmem:[%s8924_s1 + $0x540] ss:$24 sps:$4 sm:$0xff]  }
  0x11   :  { %2370 = vmatprep.subr.bf16.mxu1 %v5595_v17  ;;  %v35_v48 = vld [vmem:[%s8925_s0] sm:$0xff]  ;;  %v36_v50 = vld [vmem:[%s8925_s0 + $0x8] sm:$0xff]  ;;  %vm4902_vm4 = vcmask 80896  }
  0x12   :  { %v39_v49 = vld [vmem:[%s8925_s0 + $0x20] sm:$0xff]  ;;  %v40_v51 = vld [vmem:[%s8925_s0 + $0x28] sm:$0xff] }
  0x13   :  { %2298 = vmatpush1.bf16.msra.mxu0 %v5597_v18  ;;  %v5641_v52 = vld [vmem:[%s8924_s1 + $0x214] ss:$24 sps:$4 sm:$0xff]   ;;  %v6566_v53 = vcombine.high %v35_v48, %v39_v49  ;;  %v6568_v54 = vcombine.high %v36_v50, %v40_v51  ;;  %v5645_v56 = vld [vmem:[%s8924_s1 + $0x210] ss:$24 sps:$4 sm:$0xff]   ;;  %v5647_v58 = vld [vmem:[%s8924_s1 + $0x1e4] ss:$24 sps:$4 sm:$0xff]   ;;  %v6623_v8 = vcombine.low %v35_v48, %v39_v49  ;;  %v6625_v9 = vcombine.low %v36_v50, %v40_v51 }
  0x14   :  { %2371 = vmatpush1.bf16.msra.mxu1 %v5598_v19  ;;  %2299 = vmatprep.subr.bf16.mxu0 %v5599_v20  ;;  %v5643_v55 = vld [vmem:[%s8924_s1 + $0x514] ss:$24 sps:$4 sm:$0xff]   ;;  %v5646_v57 = vld [vmem:[%s8924_s1 + $0x510] ss:$24 sps:$4 sm:$0xff]   ;;  %v5649_v59 = vld [vmem:[%s8924_s1 + $0x4e4] ss:$24 sps:$4 sm:$0xff]  }
  0x15   :  { %2372 = vmatprep.subr.bf16.mxu1 %v5601_v21  ;;  %2321 = vmatprep.mubr.bf16.mxu0 %v6566_v53  ;;  %v5651_v60 = vld [vmem:[%s8924_s1 + $0x1e0] ss:$24 sps:$4 sm:$0xff]   ;;  %v5653_v62 = vld [vmem:[%s8924_s1 + $0x1b4] ss:$24 sps:$4 sm:$0xff]   ;;  %v5657_v0 = vld [vmem:[%s8924_s1 + $0x1b0] ss:$24 sps:$4 sm:$0xff]  }
  0x16   :  { %2394 = vmatprep.mubr.bf16.mxu1 %v6568_v54  ;;  %v5652_v61 = vld [vmem:[%s8924_s1 + $0x4e0] ss:$24 sps:$4 sm:$0xff]   ;;  %v5655_v63 = vld [vmem:[%s8924_s1 + $0x4b4] ss:$24 sps:$4 sm:$0xff]   ;;  %v5658_v1 = vld [vmem:[%s8924_s1 + $0x4b0] ss:$24 sps:$4 sm:$0xff]  }
  0x17   :  { %2300 = vmatpush1.bf16.msra.mxu0 %v5603_v22  ;;  %v5659_v2 = vld [vmem:[%s8924_s1 + $0x184] ss:$24 sps:$4 sm:$0xff]   ;;  %v5663_v4 = vld [vmem:[%s8924_s1 + $0x180] ss:$24 sps:$4 sm:$0xff]   ;;  %v5667_v6 = vld [vmem:[%s8924_s1 + $0x754] ss:$24 sps:$4 sm:$0xff]  }
  0x18   :  { %2373 = vmatpush1.bf16.msra.mxu1 %v5604_v23  ;;  %2301 = vmatprep.subr.bf16.mxu0 %v5605_v24  ;;  %v5661_v3 = vld [vmem:[%s8924_s1 + $0x484] ss:$24 sps:$4 sm:$0xff]   ;;  %v5664_v5 = vld [vmem:[%s8924_s1 + $0x480] ss:$24 sps:$4 sm:$0xff]   ;;  %v5670_v7 = vld [vmem:[%s8924_s1 + $0xa54] ss:$24 sps:$4 sm:$0xff]  }
  0x19   :  { %2374 = vmatprep.subr.bf16.mxu1 %v5607_v25  ;;  %v44_v10 = vld [vmem:[%s8925_s0 + $0x48] sm:$0xff]  ;;  %v5673_v14 = vld [vmem:[%s8924_s1 + $0x724] ss:$24 sps:$4 sm:$0xff]   ;;  %v5671_v17 = vld [vmem:[%s8924_s1 + $0x720] ss:$24 sps:$4 sm:$0xff]  }
  0x1a   :  { %v48_v11 = vld [vmem:[%s8925_s0 + $0x68] sm:$0xff]  ;;  %v5676_v15 = vld [vmem:[%s8924_s1 + $0xa24] ss:$24 sps:$4 sm:$0xff]   ;;  %v5674_v18 = vld [vmem:[%s8924_s1 + $0xa20] ss:$24 sps:$4 sm:$0xff]  }
  0x1b   :  { %2302 = vmatpush1.bf16.msra.mxu0 %v5609_v26  ;;  %v5665_v12 = vld [vmem:[%s8924_s1 + $0x750] ss:$24 sps:$4 sm:$0xff]   ;;  %v6645_v16 = vcombine.high %v44_v10, %v48_v11  ;;  %v5679_v19 = vld [vmem:[%s8924_s1 + $0x6f4] ss:$24 sps:$4 sm:$0xff]   ;;  %v43_v21 = vld [vmem:[%s8925_s0 + $0x40] sm:$0xff]  ;;  %v6673_v25 = vcombine.low %v44_v10, %v48_v11 }
  0x1c   :  { %2375 = vmatpush1.bf16.msra.mxu1 %v5610_v27  ;;  %2303 = vmatprep.subr.bf16.mxu0 %v5611_v28  ;;  %v5668_v13 = vld [vmem:[%s8924_s1 + $0xa50] ss:$24 sps:$4 sm:$0xff]   ;;  %v5682_v20 = vld [vmem:[%s8924_s1 + $0x9f4] ss:$24 sps:$4 sm:$0xff]   ;;  %v47_v22 = vld [vmem:[%s8925_s0 + $0x60] sm:$0xff] }
  0x1d   :  { %2376 = vmatprep.subr.bf16.mxu1 %v5613_v29  ;;  %v5677_v23 = vld [vmem:[%s8924_s1 + $0x6f0] ss:$24 sps:$4 sm:$0xff]   ;;  %v6671_v24 = vcombine.high %v43_v21, %v47_v22  ;;  %v6681_v28 = vcombine.low %v43_v21, %v47_v22  ;;  %v59_v48 = vld [vmem:[%s8925_s0 + $0xc0] sm:$0xff]  ;;  %v5715_v11 = vld [vmem:[%s8924_s1 + $0x8d4] ss:$24 sps:$4 sm:$0xff]  }
  0x1e   :  { %v52_v26 = vld [vmem:[%s8925_s0 + $0x88] sm:$0xff]  ;;  %v63_v50 = vld [vmem:[%s8925_s0 + $0xe0] sm:$0xff]  ;;  %v5721_v21 = vld [vmem:[%s8924_s1 + $0x158] ss:$24 sps:$4 sm:$0xff]  }
  0x1f   :  { %2304 = vmatpush1.bf16.msra.mxu0 %v5615_v30  ;;  %v56_v27 = vld [vmem:[%s8925_s0 + $0xa8] sm:$0xff]  ;;  %v5685_v30 = vld [vmem:[%s8924_s1 + $0x6c4] ss:$24 sps:$4 sm:$0xff]   ;;  %v5695_v51 = vld [vmem:[%s8924_s1 + $0x660] ss:$24 sps:$4 sm:$0xff]  }
  0x20   :  { %2377 = vmatpush1.bf16.msra.mxu1 %v5616_v31  ;;  %2305 = vmatprep.subr.bf16.mxu0 %v5617_v32  ;;  %v5680_v29 = vld [vmem:[%s8924_s1 + $0x9f0] ss:$24 sps:$4 sm:$0xff]   ;;  %v5688_v31 = vld [vmem:[%s8924_s1 + $0x9c4] ss:$24 sps:$4 sm:$0xff]   ;;  %v6692_v32 = vcombine.high %v52_v26, %v56_v27  ;;  %v5710_v10 = vld [vmem:[%s8924_s1 + $0x900] ss:$24 sps:$4 sm:$0xff]  }
  0x21   :  { %2378 = vmatprep.subr.bf16.mxu1 %v5619_v33  ;;  %v5683_v33 = vld [vmem:[%s8924_s1 + $0x6c0] ss:$24 sps:$4 sm:$0xff]  }
  0x22   :  { %v46_v22 = vld [vmem:[%s8925_s0 + $0x58] sm:$0xff] }
  0x23   :  { %2306 = vmatpush2.bf16.msra.mxu0 %v5621_v34  ;;  %v5686_v34 = vld [vmem:[%s8924_s1 + $0x9c0] ss:$24 sps:$4 sm:$0xff]  }
  0x24   :  { %2379 = vmatpush2.bf16.msra.mxu1 %v5622_v35  ;;  %2307 = vmatprep.subr.bf16.mxu0 %v5623_v36  ;;  %v51_v35 = vld [vmem:[%s8925_s0 + $0x80] sm:$0xff] }
  0x25   :  { %2380 = vmatprep.subr.bf16.mxu1 %v5625_v37  ;;  %v55_v36 = vld [vmem:[%s8925_s0 + $0xa0] sm:$0xff]  ;;  %v5691_v37 = vld [vmem:[%s8924_s1 + $0x694] ss:$24 sps:$4 sm:$0xff]  }
  0x27   :  { %2308 = vmatpush2.bf16.msra.mxu0 %v5627_v38  ;;  %v5694_v38 = vld [vmem:[%s8924_s1 + $0x994] ss:$24 sps:$4 sm:$0xff]  }
  0x28   :  { %2381 = vmatpush2.bf16.msra.mxu1 %v5628_v39  ;;  %2309 = vmatprep.subr.bf16.mxu0 %v5629_v40  ;;  %v6715_v39 = vcombine.high %v51_v35, %v55_v36  ;;  %v5689_v40 = vld [vmem:[%s8924_s1 + $0x690] ss:$24 sps:$4 sm:$0xff]  }
  0x29   :  { %2382 = vmatprep.subr.bf16.mxu1 %v5631_v41  ;;  %v60_v41 = vld [vmem:[%s8925_s0 + $0xc8] sm:$0xff] }
  0x2b   :  { %2310 = vmatpush2.bf16.msra.mxu0 %v5633_v42  ;;  %v6724_v42 = vcombine.low %v52_v26, %v56_v27  ;;  %v5726_v26 = vld [vmem:[%s8924_s1 + $0x874] ss:$24 sps:$4 sm:$0xff]  }
  0x2c   :  { %2383 = vmatpush2.bf16.msra.mxu1 %v5634_v43  ;;  %2311 = vmatprep.subr.bf16.mxu0 %v5635_v44  ;;  %v64_v43 = vld [vmem:[%s8925_s0 + $0xe8] sm:$0xff]  ;;  %v6730_v44 = vcombine.low %v51_v35, %v55_v36  ;;  %v5730_v35 = vld [vmem:[%s8924_s1 + $0x840] ss:$24 sps:$4 sm:$0xff]  }
  0x2d   :  { %2384 = vmatprep.subr.bf16.mxu1 %v5637_v45  ;;  %v5692_v45 = vld [vmem:[%s8924_s1 + $0x990] ss:$24 sps:$4 sm:$0xff]   ;;  %v6744_v49 = vcombine.high %v60_v41, %v64_v43  ;;  %v5729_v27 = vld [vmem:[%s8924_s1 + $0x12c] ss:$24 sps:$4 sm:$0xff]   ;;  %v54_v36 = vld [vmem:[%s8925_s0 + $0x98] sm:$0xff] }
  0x2f   :  { %2312 = vmatpush2.bf16.msra.mxu0 %v5639_v46  ;;  %v5697_v46 = vld [vmem:[%s8924_s1 + $0x664] ss:$24 sps:$4 sm:$0xff]  }
  0x30   :  { %2385 = vmatpush2.bf16.msra.mxu1 %v5640_v47  ;;  %2313 = vmatprep.subr.bf16.mxu0 %v5641_v52  ;;  %v5700_v47 = vld [vmem:[%s8924_s1 + $0x964] ss:$24 sps:$4 sm:$0xff]   ;;  %v6754_v52 = vcombine.high %v59_v48, %v63_v50 }
  0x31   :  { %2386 = vmatprep.subr.bf16.mxu1 %v5643_v55  ;;  %v5698_v55 = vld [vmem:[%s8924_s1 + $0x960] ss:$24 sps:$4 sm:$0xff]  }
  0x33   :  { %2314 = vmatpush2.bf16.msra.mxu0 %v5645_v56  ;;  %v5703_v56 = vld [vmem:[%s8924_s1 + $0x634] ss:$24 sps:$4 sm:$0xff]  }
  0x34   :  { %2387 = vmatpush2.bf16.msra.mxu1 %v5646_v57  ;;  %2315 = vmatprep.subr.bf16.mxu0 %v5647_v58  ;;  %v5706_v57 = vld [vmem:[%s8924_s1 + $0x934] ss:$24 sps:$4 sm:$0xff]   ;;  %v5701_v58 = vld [vmem:[%s8924_s1 + $0x630] ss:$24 sps:$4 sm:$0xff]  }
  0x35   :  { %2388 = vmatprep.subr.bf16.mxu1 %v5649_v59  ;;  %v6770_v59 = vcombine.low %v60_v41, %v64_v43  ;;  %v5738_v41 = vld [vmem:[%s8924_s1 + $0x814] ss:$24 sps:$4 sm:$0xff]  }
  0x36   :  { %v5741_v43 = vld [vmem:[%s8924_s1 + $0xcc] ss:$24 sps:$4 sm:$0xff]  }
  0x37   :  { %2316 = vmatpush2.bf16.msra.mxu0 %v5651_v60  ;;  %v38_v60 = vld [vmem:[%s8925_s0 + $0x18] sm:$0xff] }
  0x38   :  { %2389 = vmatpush2.bf16.msra.mxu1 %v5652_v61  ;;  %2317 = vmatprep.subr.bf16.mxu0 %v5653_v62  ;;  %v42_v61 = vld [vmem:[%s8925_s0 + $0x38] sm:$0xff]  ;;  %v6778_v62 = vcombine.low %v59_v48, %v63_v50 }
  0x39   :  { %2390 = vmatprep.subr.bf16.mxu1 %v5655_v63  ;;  %v5704_v63 = vld [vmem:[%s8924_s1 + $0x930] ss:$24 sps:$4 sm:$0xff]   ;;  %v5744_v48 = vld [vmem:[%s8924_s1 + $0x7e4] ss:$24 sps:$4 sm:$0xff]  }
  0x3a   :  { %v5747_v50 = vld [vmem:[%s8924_s1 + $0x9c] ss:$24 sps:$4 sm:$0xff]  }
  0x3b   :  { %2318 = vmatpush2.bf16.msra.mxu0 %v5657_v0  ;;  %v5709_v0 = vld [vmem:[%s8924_s1 + $0x604] ss:$24 sps:$4 sm:$0xff]  }
  0x3c   :  { %2391 = vmatpush2.bf16.msra.mxu1 %v5658_v1  ;;  %2319 = vmatprep.subr.bf16.mxu0 %v5659_v2  ;;  %v5712_v1 = vld [vmem:[%s8924_s1 + $0x904] ss:$24 sps:$4 sm:$0xff]  }
  0x3d   :  { %2392 = vmatprep.subr.bf16.mxu1 %v5661_v3  ;;  %v403_v2 = vld [vmem:[%s8924_s1 + $0xa80] sm:$0x33]  ;;  %v6792_v3 = vcombine.high %v38_v60, %v42_v61 }
  0x3f   :  { %2320 = vmatpush2.bf16.msra.mxu0 %v5663_v4  ;;  %v6797_v4 = vld [vmem:[%s8925_s0 + $0x10] sm:$0xff] }
  0x40   :  { %2393 = vmatpush2.bf16.msra.mxu1 %v5664_v5  ;;  %2435 = vmatprep.subr.bf16.mxu0 %v5667_v6  ;;  %v6802_v5 = vld [vmem:[%s8925_s0 + $0x30] sm:$0xff]  ;;  %v5707_v6 = vld [vmem:[%s8924_s1 + $0x600] ss:$24 sps:$4 sm:$0xff]  }
  0x41   :  { %2508 = vmatprep.subr.bf16.mxu1 %v5670_v7  ;;  %v6811_v7 = vcombine.high %v6797_v4, %v6802_v5 }
  0x42   :  { %2322 = vmatmul.mubr.bf16.vlgmr.msra.gmra.mxu0 %v6623_v8 }
  0x43   :  { %2395 = vmatmul.mubr.bf16.vlgmr.msra.gmra.mxu1 %v6625_v9  ;;  %2436 = vmatpush1.bf16.msra.mxu0 %v5665_v12  ;;  %v5282_v12 = vcombine.high %v403_v2, %v403_v2 }
  0x44   :  { %2509 = vmatpush1.bf16.msra.mxu1 %v5668_v13  ;;  %2437 = vmatprep.subr.bf16.mxu0 %v5673_v14  ;;  %v5281_v13 = vcombine.low %v403_v2, %v403_v2  ;;  %v5713_v14 = vld [vmem:[%s8924_s1 + $0x8d0] ss:$24 sps:$4 sm:$0xff]   ;;  %v5756_v2 = vld [vmem:[%s8924_s1 + $0x784] ss:$24 sps:$4 sm:$0xff]  }
  0x45   :  { %2510 = vmatprep.subr.bf16.mxu1 %v5676_v15  ;;  %2404 = vmatprep.mubr.bf16.mxu1 %v6645_v16  ;;  %v5720_v15 = vld [vmem:[%s8924_s1 + $0x8a4] ss:$24 sps:$4 sm:$0xff]  }
  0x46   :  { %2331 = vmatprep.mubr.bf16.mxu0 %v6671_v24 }
  0x47   :  { %2438 = vmatpush1.bf16.msra.mxu0 %v5671_v17  ;;  %v2272_v17 = vsel %vm2270_vm1, %v5281_v13, 0  ;;  %v5762_v13 = vld [vmem:[%s8924_s1 + $0xc] ss:$24 sps:$4 sm:$0xff]  }
  0x48   :  { %2511 = vmatpush1.bf16.msra.mxu1 %v5674_v18  ;;  %2439 = vmatprep.subr.bf16.mxu0 %v5679_v19  ;;  %v5723_v18 = vld [vmem:[%s8924_s1 + $0x15c] ss:$24 sps:$4 sm:$0xff]   ;;  %v5718_v19 = vld [vmem:[%s8924_s1 + $0x8a0] ss:$24 sps:$4 sm:$0xff]  }
  0x49   :  { %2512 = vmatprep.subr.bf16.mxu1 %v5682_v20  ;;  %v6836_v20 = vcombine.low %v38_v60, %v42_v61  ;;  %v5750_v60 = vld [vmem:[%s8924_s1 + $0x7b4] ss:$24 sps:$4 sm:$0xff]  }
  0x4a   :  { %2332 = vmatmul.mubr.bf16.gmra.mxu0 %v6681_v28  ;;  %v5753_v61 = vld [vmem:[%s8924_s1 + $0x6c] ss:$24 sps:$4 sm:$0xff]  }
  0x4b   :  { %2405 = vmatmul.mubr.bf16.gmra.mxu1 %v6673_v25  ;;  %2440 = vmatpush1.bf16.msra.mxu0 %v5677_v23  ;;  %v50_v23 = vld [vmem:[%s8925_s0 + $0x78] sm:$0xff] }
  0x4c   :  { %2513 = vmatpush1.bf16.msra.mxu1 %v5680_v29  ;;  %2441 = vmatprep.subr.bf16.mxu0 %v5685_v30  ;;  %v6853_v29 = vcombine.high %v46_v22, %v50_v23  ;;  %v5724_v30 = vld [vmem:[%s8924_s1 + $0x870] ss:$24 sps:$4 sm:$0xff]  }
  0x4d   :  { %2514 = vmatprep.subr.bf16.mxu1 %v5688_v31  ;;  %2414 = vmatprep.mubr.bf16.mxu1 %v6692_v32  ;;  %v5727_v31 = vld [vmem:[%s8924_s1 + $0x128] ss:$24 sps:$4 sm:$0xff]  }
  0x4e   :  { %2341 = vmatprep.mubr.bf16.mxu0 %v6715_v39 }
  0x4f   :  { %2442 = vmatpush1.bf16.msra.mxu0 %v5683_v33  ;;  %v5732_v33 = vld [vmem:[%s8924_s1 + $0x844] ss:$24 sps:$4 sm:$0xff]  }
  0x50   :  { %2515 = vmatpush1.bf16.msra.mxu1 %v5686_v34  ;;  %2443 = vmatprep.subr.bf16.mxu0 %v5691_v37  ;;  %v5735_v34 = vld [vmem:[%s8924_s1 + $0xfc] ss:$24 sps:$4 sm:$0xff]   ;;  %v6876_v37 = vcombine.low %v46_v22, %v50_v23  ;;  %v5766_v23 = vld [vmem:[%s8924_s1 + $0x2d8] ss:$24 sps:$4 sm:$0xff]  }
  0x51   :  { %2516 = vmatprep.subr.bf16.mxu1 %v5694_v38  ;;  %v58_v38 = vld [vmem:[%s8925_s0 + $0xb8] sm:$0xff] }
  0x52   :  { %2342 = vmatmul.mubr.bf16.gmra.mxu0 %v6730_v44  ;;  %v5768_v22 = vld [vmem:[%s8924_s1 + $0x2dc] ss:$24 sps:$4 sm:$0xff]  }
  0x53   :  { %2415 = vmatmul.mubr.bf16.gmra.mxu1 %v6724_v42  ;;  %2444 = vmatpush1.bf16.msra.mxu0 %v5689_v40  ;;  %v5733_v40 = vld [vmem:[%s8924_s1 + $0xf8] ss:$24 sps:$4 sm:$0xff]  }
  0x54   :  { %2517 = vmatpush1.bf16.msra.mxu1 %v5692_v45  ;;  %2445 = vmatprep.subr.bf16.mxu0 %v5697_v46  ;;  %v6890_v45 = vcombine.high %v54_v36, %v58_v38  ;;  %v5736_v46 = vld [vmem:[%s8924_s1 + $0x810] ss:$24 sps:$4 sm:$0xff]  }
  0x55   :  { %2518 = vmatprep.subr.bf16.mxu1 %v5700_v47  ;;  %2424 = vmatprep.mubr.bf16.mxu1 %v6744_v49  ;;  %v5739_v47 = vld [vmem:[%s8924_s1 + $0xc8] ss:$24 sps:$4 sm:$0xff]  }
  0x56   :  { %2351 = vmatprep.mubr.bf16.mxu0 %v6754_v52 }
  0x57   :  { %2446 = vmatpush1.bf16.msra.mxu0 %v5695_v51  ;;  %v5742_v51 = vld [vmem:[%s8924_s1 + $0x7e0] ss:$24 sps:$4 sm:$0xff]  }
  0x58   :  { %2519 = vmatpush1.bf16.msra.mxu1 %v5698_v55  ;;  %2447 = vmatprep.subr.bf16.mxu0 %v5703_v56  ;;  %v62_v55 = vld [vmem:[%s8925_s0 + $0xd8] sm:$0xff]  ;;  %v6913_v56 = vcombine.low %v54_v36, %v58_v38 }
  0x59   :  { %2520 = vmatprep.subr.bf16.mxu1 %v5706_v57  ;;  %v66_v57 = vld [vmem:[%s8925_s0 + $0xf8] sm:$0xff] }
  0x5a   :  { %2352 = vmatmul.mubr.bf16.gmra.mxu0 %v6778_v62  ;;  %v5775_v36 = vld [vmem:[%s8924_s1 + $0x3f8] ss:$24 sps:$4 sm:$0xff]   ;;  %v5780_v38 = vld [vmem:[%s8924_s1 + $0x27c] ss:$24 sps:$4 sm:$0xff]  }
  0x5b   :  { %2425 = vmatmul.mubr.bf16.gmra.mxu1 %v6770_v59  ;;  %2448 = vmatpush1.bf16.msra.mxu0 %v5701_v58  ;;  %v5745_v58 = vld [vmem:[%s8924_s1 + $0x98] ss:$24 sps:$4 sm:$0xff]  }
  0x5c   :  { %2521 = vmatpush1.bf16.msra.mxu1 %v5704_v63  ;;  %2449 = vmatprep.subr.bf16.mxu0 %v5709_v0  ;;  %v6927_v63 = vcombine.high %v62_v55, %v66_v57  ;;  %v5748_v0 = vld [vmem:[%s8924_s1 + $0x7b0] ss:$24 sps:$4 sm:$0xff]  }
  0x5d   :  { %2522 = vmatprep.subr.bf16.mxu1 %v5712_v1  ;;  %5288 = vmatprep.mubr.msk.bf16.mxu1 %vm2257_vm0, %v6792_v3  ;;  %v5751_v1 = vld [vmem:[%s8924_s1 + $0x68] ss:$24 sps:$4 sm:$0xff]  }
  0x5e   :  { %2467 = vmatprep.mubr.bf16.mxu0 %v6811_v7 }
  0x5f   :  { %2450 = vmatpush1.bf16.msra.mxu0 %v5707_v6  ;;  %v5759_v6 = vld [vmem:[%s8924_s1 + $0x3c] ss:$24 sps:$4 sm:$0xff]  }
  0x60   :  { %2523 = vmatpush1.bf16.msra.mxu1 %v5710_v10  ;;  %2451 = vmatprep.subr.bf16.mxu0 %v5715_v11  ;;  %v5754_v10 = vld [vmem:[%s8924_s1 + $0x780] ss:$24 sps:$4 sm:$0xff]   ;;  %v6947_v11 = vcombine.low %v62_v55, %v66_v57  ;;  %v65_v57 = vld [vmem:[%s8925_s0 + $0xf0] sm:$0xff] }
  0x61   :  { %5287 = vmatprep.subr.msk.bf16.mxu1 %vm2270_vm1, %v5282_v12  ;;  %v5757_v12 = vld [vmem:[%s8924_s1 + $0x38] ss:$24 sps:$4 sm:$0xff]  }
  0x63   :  { %2452 = vmatpush2.bf16.msra.mxu0 %v5713_v14  ;;  %v5765_v14 = vld [vmem:[%s8924_s1 + $0x45c] ss:$24 sps:$4 sm:$0xff]  }
  0x64   :  { %2539 = vmatpush2.bf16.msra.mxu1 %v2272_v17  ;;  %2453 = vmatprep.subr.bf16.mxu0 %v5720_v15  ;;  %v5760_v15 = vld [vmem:[%s8924_s1 + $0x8] ss:$24 sps:$4 sm:$0xff]   ;;  %v45_v17 = vld [vmem:[%s8925_s0 + $0x50] sm:$0xff] }
  0x65   :  { %2581 = vmatprep.subr.bf16.mxu1 %v5723_v18  ;;  %v6966_v18 = vcombine.low %v6797_v4, %v6802_v5  ;;  %v5771_v4 = vld [vmem:[%s8924_s1 + $0x42c] ss:$24 sps:$4 sm:$0xff]  }
  0x67   :  { %2541 = vmatmul.mubr.bf16.vlgmr.msra.gmra.mxu1 %v6836_v20  ;;  %2454 = vmatpush2.bf16.msra.mxu0 %v5718_v19  ;;  %v49_v19 = vld [vmem:[%s8925_s0 + $0x70] sm:$0xff] }
  0x68   :  { %2582 = vmatpush1.bf16.msra.mxu1 %v5721_v21  ;;  %2455 = vmatprep.subr.bf16.mxu0 %v5726_v26  ;;  %v5763_v21 = vld [vmem:[%s8924_s1 + $0x458] ss:$24 sps:$4 sm:$0xff]   ;;  %v6981_v5 = vcombine.high %v45_v17, %v49_v19  ;;  %v5769_v26 = vld [vmem:[%s8924_s1 + $0x428] ss:$24 sps:$4 sm:$0xff]  }
  0x69   :  { %2583 = vmatprep.subr.bf16.mxu1 %v5729_v27  ;;  %5289 = vmatprep.mubr.msk.bf16.mxu1 %vm2257_vm0, %v6853_v29  ;;  %v5774_v27 = vld [vmem:[%s8924_s1 + $0x2ac] ss:$24 sps:$4 sm:$0xff]  }
  0x6b   :  { %2456 = vmatpush2.bf16.msra.mxu0 %v5724_v30  ;;  %v5777_v30 = vld [vmem:[%s8924_s1 + $0x3fc] ss:$24 sps:$4 sm:$0xff]  }
  0x6c   :  { %2584 = vmatpush1.bf16.msra.mxu1 %v5727_v31  ;;  %2457 = vmatprep.subr.bf16.mxu0 %v5732_v33  ;;  %v5772_v31 = vld [vmem:[%s8924_s1 + $0x2a8] ss:$24 sps:$4 sm:$0xff]   ;;  %v53_v33 = vld [vmem:[%s8925_s0 + $0x90] sm:$0xff] }
  0x6d   :  { %2585 = vmatprep.subr.bf16.mxu1 %v5735_v34  ;;  %v7004_v34 = vcombine.low %v45_v17, %v49_v19  ;;  %v5807_v17 = vld [vmem:[%s8924_s1 + $0x30c] ss:$24 sps:$4 sm:$0xff]   ;;  %v5802_v19 = vld [vmem:[%s8924_s1 + $0x1b8] ss:$24 sps:$4 sm:$0xff]  }
  0x6f   :  { %2551 = vmatmul.mubr.bf16.gmra.mxu1 %v6876_v37  ;;  %2458 = vmatpush2.bf16.msra.mxu0 %v5730_v35  ;;  %v57_v35 = vld [vmem:[%s8925_s0 + $0xb0] sm:$0xff] }
  0x70   :  { %2586 = vmatpush1.bf16.msra.mxu1 %v5733_v40  ;;  %2459 = vmatprep.subr.bf16.mxu0 %v5738_v41  ;;  %v5783_v40 = vld [vmem:[%s8924_s1 + $0x3cc] ss:$24 sps:$4 sm:$0xff]   ;;  %v7018_v41 = vcombine.high %v53_v33, %v57_v35  ;;  %v7040_v55 = vcombine.low %v53_v33, %v57_v35  ;;  %v5817_v33 = vld [vmem:[%s8924_s1 + $0x758] ss:$24 sps:$4 sm:$0xff]   ;;  %v5822_v35 = vld [vmem:[%s8924_s1 + $0x57c] ss:$24 sps:$4 sm:$0xff]  }
  0x71   :  { %2587 = vmatprep.subr.bf16.mxu1 %v5741_v43  ;;  %5290 = vmatprep.mubr.msk.bf16.mxu1 %vm2257_vm0, %v6890_v45  ;;  %v5778_v43 = vld [vmem:[%s8924_s1 + $0x278] ss:$24 sps:$4 sm:$0xff]  }
  0x73   :  { %2460 = vmatpush2.bf16.msra.mxu0 %v5736_v46  ;;  %v5781_v46 = vld [vmem:[%s8924_s1 + $0x3c8] ss:$24 sps:$4 sm:$0xff]  }
  0x74   :  { %2588 = vmatpush1.bf16.msra.mxu1 %v5739_v47  ;;  %2461 = vmatprep.subr.bf16.mxu0 %v5744_v48  ;;  %v5786_v47 = vld [vmem:[%s8924_s1 + $0x24c] ss:$24 sps:$4 sm:$0xff]   ;;  %v5789_v48 = vld [vmem:[%s8924_s1 + $0x39c] ss:$24 sps:$4 sm:$0xff]  }
  0x75   :  { %2589 = vmatprep.subr.bf16.mxu1 %v5747_v50  ;;  %v5784_v50 = vld [vmem:[%s8924_s1 + $0x248] ss:$24 sps:$4 sm:$0xff]  }
  0x77   :  { %2561 = vmatmul.mubr.bf16.gmra.mxu1 %v6913_v56  ;;  %2462 = vmatpush2.bf16.msra.mxu0 %v5742_v51  ;;  %v61_v51 = vld [vmem:[%s8925_s0 + $0xd0] sm:$0xff] }
  0x78   :  { %2590 = vmatpush1.bf16.msra.mxu1 %v5745_v58  ;;  %2463 = vmatprep.subr.bf16.mxu0 %v5750_v60  ;;  %v5787_v58 = vld [vmem:[%s8924_s1 + $0x398] ss:$24 sps:$4 sm:$0xff]   ;;  %v5792_v60 = vld [vmem:[%s8924_s1 + $0x21c] ss:$24 sps:$4 sm:$0xff]  }
  0x79   :  { %2591 = vmatprep.subr.bf16.mxu1 %v5753_v61  ;;  %5291 = vmatprep.mubr.msk.bf16.mxu1 %vm2257_vm0, %v6927_v63  ;;  %v5795_v61 = vld [vmem:[%s8924_s1 + $0x36c] ss:$24 sps:$4 sm:$0xff]  }
  0x7b   :  { %2464 = vmatpush2.bf16.msra.mxu0 %v5748_v0  ;;  %v7054_v0 = vcombine.high %v61_v51, %v65_v57 }
  0x7c   :  { %2592 = vmatpush1.bf16.msra.mxu1 %v5751_v1  ;;  %2465 = vmatprep.subr.bf16.mxu0 %v5756_v2  ;;  %v5790_v1 = vld [vmem:[%s8924_s1 + $0x218] ss:$24 sps:$4 sm:$0xff]   ;;  %v5793_v2 = vld [vmem:[%s8924_s1 + $0x368] ss:$24 sps:$4 sm:$0xff]  }
  0x7d   :  { %2593 = vmatprep.subr.bf16.mxu1 %v5759_v6  ;;  %v5798_v6 = vld [vmem:[%s8924_s1 + $0x1ec] ss:$24 sps:$4 sm:$0xff]  }
  0x7f   :  { %2571 = vmatmul.mubr.bf16.gmra.mxu1 %v6947_v11  ;;  %2466 = vmatpush2.bf16.msra.mxu0 %v5754_v10  ;;  %v5801_v10 = vld [vmem:[%s8924_s1 + $0x33c] ss:$24 sps:$4 sm:$0xff]  }
  0x80   :  { %2594 = vmatpush1.bf16.msra.mxu1 %v5757_v12  ;;  %2654 = vmatprep.subr.bf16.mxu0 %v5765_v14  ;;  %v7070_v12 = vcombine.low %v61_v51, %v65_v57  ;;  %v5799_v14 = vld [vmem:[%s8924_s1 + $0x338] ss:$24 sps:$4 sm:$0xff]   ;;  %v5837_v51 = vld [vmem:[%s8924_s1 + $0x6cc] ss:$24 sps:$4 sm:$0xff]  }
  0x81   :  { %2595 = vmatprep.subr.bf16.mxu1 %v5762_v13  ;;  %2613 = vmatprep.mubr.bf16.mxu1 %v6566_v53  ;;  %v5796_v13 = vld [vmem:[%s8924_s1 + $0x1e8] ss:$24 sps:$4 sm:$0xff]   ;;  %v5832_v57 = vld [vmem:[%s8924_s1 + $0x518] ss:$24 sps:$4 sm:$0xff]  }
  0x82   :  { %2468 = vmatmul.mubr.bf16.vlgmr.msra.gmra.mxu0 %v6966_v18  ;;  %8943 = vst [vmem:[#allocation2_spill] sm:$0xff] %v7070_v12 }
  0x83   :  { %2655 = vmatpush1.bf16.msra.mxu0 %v5763_v21  ;;  %2477 = vmatprep.mubr.bf16.mxu0 %v6981_v5  ;;  %v5805_v21 = vld [vmem:[%s8924_s1 + $0x308] ss:$24 sps:$4 sm:$0xff]  }
  0x84   :  { %2596 = vmatpush1.bf16.msra.mxu1 %v5760_v15  ;;  %2656 = vmatprep.subr.bf16.mxu0 %v5771_v4  ;;  %v5804_v15 = vld [vmem:[%s8924_s1 + $0x1bc] ss:$24 sps:$4 sm:$0xff]  }
  0x85   :  { %2597 = vmatprep.subr.bf16.mxu1 %v5768_v22  ;;  %v5810_v22 = vld [vmem:[%s8924_s1 + $0x18c] ss:$24 sps:$4 sm:$0xff]   ;;  %v5813_v4 = vld [vmem:[%s8924_s1 + $0x5dc] ss:$24 sps:$4 sm:$0xff]  }
  0x87   :  { %2657 = vmatpush1.bf16.msra.mxu0 %v5769_v26  ;;  %v5811_v26 = vld [vmem:[%s8924_s1 + $0x5d8] ss:$24 sps:$4 sm:$0xff]  }
  0x88   :  { %2598 = vmatpush2.bf16.msra.mxu1 %v5766_v23  ;;  %2658 = vmatprep.subr.bf16.mxu0 %v5777_v30  ;;  %v5808_v23 = vld [vmem:[%s8924_s1 + $0x188] ss:$24 sps:$4 sm:$0xff]   ;;  %v5819_v30 = vld [vmem:[%s8924_s1 + $0x75c] ss:$24 sps:$4 sm:$0xff]  }
  0x89   :  { %2599 = vmatprep.subr.bf16.mxu1 %v5774_v27  ;;  %v5816_v27 = vld [vmem:[%s8924_s1 + $0x5ac] ss:$24 sps:$4 sm:$0xff]  }
  0x8a   :  { %2478 = vmatmul.mubr.bf16.gmra.mxu0 %v7004_v34 }
  0x8b   :  { %2659 = vmatpush1.bf16.msra.mxu0 %v5775_v36  ;;  %2487 = vmatprep.mubr.bf16.mxu0 %v7018_v41  ;;  %v5825_v36 = vld [vmem:[%s8924_s1 + $0x72c] ss:$24 sps:$4 sm:$0xff]  }
  0x8c   :  { %2600 = vmatpush2.bf16.msra.mxu1 %v5772_v31  ;;  %2660 = vmatprep.subr.bf16.mxu0 %v5783_v40  ;;  %v5814_v31 = vld [vmem:[%s8924_s1 + $0x5a8] ss:$24 sps:$4 sm:$0xff]  }
  0x8d   :  { %2601 = vmatprep.subr.bf16.mxu1 %v5780_v38  ;;  %v5820_v38 = vld [vmem:[%s8924_s1 + $0x578] ss:$24 sps:$4 sm:$0xff]   ;;  %v5823_v40 = vld [vmem:[%s8924_s1 + $0x728] ss:$24 sps:$4 sm:$0xff]  }
  0x8f   :  { %2661 = vmatpush1.bf16.msra.mxu0 %v5781_v46  ;;  %v5831_v46 = vld [vmem:[%s8924_s1 + $0x6fc] ss:$24 sps:$4 sm:$0xff]  }
  0x90   :  { %2602 = vmatpush2.bf16.msra.mxu1 %v5778_v43  ;;  %2662 = vmatprep.subr.bf16.mxu0 %v5789_v48  ;;  %v5828_v43 = vld [vmem:[%s8924_s1 + $0x54c] ss:$24 sps:$4 sm:$0xff]   ;;  %v5829_v48 = vld [vmem:[%s8924_s1 + $0x6f8] ss:$24 sps:$4 sm:$0xff]  }
  0x91   :  { %2603 = vmatprep.subr.bf16.mxu1 %v5786_v47  ;;  %v5826_v47 = vld [vmem:[%s8924_s1 + $0x548] ss:$24 sps:$4 sm:$0xff]  }
  0x92   :  { %2488 = vmatmul.mubr.bf16.gmra.mxu0 %v7040_v55 }
  0x93   :  { %2663 = vmatpush1.bf16.msra.mxu0 %v5787_v58  ;;  %2497 = vmatprep.mubr.bf16.mxu0 %v7054_v0  ;;  %v5835_v58 = vld [vmem:[%s8924_s1 + $0x6c8] ss:$24 sps:$4 sm:$0xff]  }
  0x94   :  { %2604 = vmatpush2.bf16.msra.mxu1 %v5784_v50  ;;  %2664 = vmatprep.subr.bf16.mxu0 %v5795_v61  ;;  %v5834_v50 = vld [vmem:[%s8924_s1 + $0x51c] ss:$24 sps:$4 sm:$0xff]  }
  0x95   :  { %2605 = vmatprep.subr.bf16.mxu1 %v5792_v60  ;;  %v5840_v60 = vld [vmem:[%s8924_s1 + $0x4ec] ss:$24 sps:$4 sm:$0xff]   ;;  %v5843_v61 = vld [vmem:[%s8924_s1 + $0x69c] ss:$24 sps:$4 sm:$0xff]  }
  0x97   :  { %2665 = vmatpush1.bf16.msra.mxu0 %v5793_v2  ;;  %v5841_v2 = vld [vmem:[%s8924_s1 + $0x698] ss:$24 sps:$4 sm:$0xff]  }
  0x98   :  { %2606 = vmatpush2.bf16.msra.mxu1 %v5790_v1  ;;  %2666 = vmatprep.subr.bf16.mxu0 %v5801_v10  ;;  %v5838_v1 = vld [vmem:[%s8924_s1 + $0x4e8] ss:$24 sps:$4 sm:$0xff]   ;;  %v5849_v10 = vld [vmem:[%s8924_s1 + $0x66c] ss:$24 sps:$4 sm:$0xff]  }
  0x99   :  { %2607 = vmatprep.subr.bf16.mxu1 %v5798_v6  ;;  %v5846_v6 = vld [vmem:[%s8924_s1 + $0x4bc] ss:$24 sps:$4 sm:$0xff]  }
  0x9a   :  { %2498 = vmatmul.mubr.bf16.gmra.mxu0 %v7070_v12 }
  0x9b   :  { %2667 = vmatpush1.bf16.msra.mxu0 %v5799_v14  ;;  %2686 = vmatprep.mubr.bf16.mxu0 %v6568_v54  ;;  %v5847_v14 = vld [vmem:[%s8924_s1 + $0x668] ss:$24 sps:$4 sm:$0xff]  }
  0x9c   :  { %2608 = vmatpush2.bf16.msra.mxu1 %v5796_v13  ;;  %2668 = vmatprep.subr.bf16.mxu0 %v5807_v17  ;;  %v5844_v13 = vld [vmem:[%s8924_s1 + $0x4b8] ss:$24 sps:$4 sm:$0xff]   ;;  %v5855_v17 = vld [vmem:[%s8924_s1 + $0x63c] ss:$24 sps:$4 sm:$0xff]  }
  0x9d   :  { %2609 = vmatprep.subr.bf16.mxu1 %v5804_v15  ;;  %v5852_v15 = vld [vmem:[%s8924_s1 + $0x48c] ss:$24 sps:$4 sm:$0xff]  }
  0x9f   :  { %2669 = vmatpush1.bf16.msra.mxu0 %v5805_v21  ;;  %v5853_v21 = vld [vmem:[%s8924_s1 + $0x638] ss:$24 sps:$4 sm:$0xff]  }
  0xa0   :  { %2610 = vmatpush2.bf16.msra.mxu1 %v5802_v19  ;;  %2670 = vmatprep.subr.bf16.mxu0 %v5813_v4  ;;  %v5850_v19 = vld [vmem:[%s8924_s1 + $0x488] ss:$24 sps:$4 sm:$0xff]   ;;  %v5861_v4 = vld [vmem:[%s8924_s1 + $0xa5c] ss:$24 sps:$4 sm:$0xff]  }
  0xa1   :  { %2611 = vmatprep.subr.bf16.mxu1 %v5810_v22  ;;  %v5858_v22 = vld [vmem:[%s8924_s1 + $0x60c] ss:$24 sps:$4 sm:$0xff]  }
  0xa3   :  { %2671 = vmatpush2.bf16.msra.mxu0 %v5811_v26  ;;  %v5859_v26 = vld [vmem:[%s8924_s1 + $0xa58] ss:$24 sps:$4 sm:$0xff]  }
  0xa4   :  { %2612 = vmatpush2.bf16.msra.mxu1 %v5808_v23  ;;  %2672 = vmatprep.subr.bf16.mxu0 %v5816_v27  ;;  %v5856_v23 = vld [vmem:[%s8924_s1 + $0x608] ss:$24 sps:$4 sm:$0xff]   ;;  %v5864_v27 = vld [vmem:[%s8924_s1 + $0x8dc] ss:$24 sps:$4 sm:$0xff]  }
  0xa5   :  { %2727 = vmatprep.subr.bf16.mxu1 %v5819_v30  ;;  %v5867_v30 = vld [vmem:[%s8924_s1 + $0xa2c] ss:$24 sps:$4 sm:$0xff]  }
  0xa7   :  { %2614 = vmatmul.mubr.bf16.vlgmr.msra.gmra.mxu1 %v6623_v8  ;;  %2673 = vmatpush2.bf16.msra.mxu0 %v5814_v31  ;;  %v5862_v31 = vld [vmem:[%s8924_s1 + $0x8d8] ss:$24 sps:$4 sm:$0xff]  }
  0xa8   :  { %2728 = vmatpush1.bf16.msra.mxu1 %v5817_v33  ;;  %2674 = vmatprep.subr.bf16.mxu0 %v5822_v35  ;;  %v5865_v33 = vld [vmem:[%s8924_s1 + $0xa28] ss:$24 sps:$4 sm:$0xff]   ;;  %v5870_v35 = vld [vmem:[%s8924_s1 + $0x8ac] ss:$24 sps:$4 sm:$0xff]  }
  0xa9   :  { %2729 = vmatprep.subr.bf16.mxu1 %v5825_v36  ;;  %2623 = vmatprep.mubr.bf16.mxu1 %v6671_v24  ;;  %v5873_v36 = vld [vmem:[%s8924_s1 + $0x9fc] ss:$24 sps:$4 sm:$0xff]  }
  0xab   :  { %2675 = vmatpush2.bf16.msra.mxu0 %v5820_v38  ;;  %v5868_v38 = vld [vmem:[%s8924_s1 + $0x8a8] ss:$24 sps:$4 sm:$0xff]  }
  0xac   :  { %2730 = vmatpush1.bf16.msra.mxu1 %v5823_v40  ;;  %2676 = vmatprep.subr.bf16.mxu0 %v5828_v43  ;;  %v5871_v40 = vld [vmem:[%s8924_s1 + $0x9f8] ss:$24 sps:$4 sm:$0xff]   ;;  %v5876_v43 = vld [vmem:[%s8924_s1 + $0x87c] ss:$24 sps:$4 sm:$0xff]  }
  0xad   :  { %2731 = vmatprep.subr.bf16.mxu1 %v5831_v46  ;;  %v5879_v46 = vld [vmem:[%s8924_s1 + $0x9cc] ss:$24 sps:$4 sm:$0xff]  }
  0xaf   :  { %2624 = vmatmul.mubr.bf16.gmra.mxu1 %v6681_v28  ;;  %2677 = vmatpush2.bf16.msra.mxu0 %v5826_v47  ;;  %v5874_v47 = vld [vmem:[%s8924_s1 + $0x878] ss:$24 sps:$4 sm:$0xff]  }
  0xb0   :  { %2732 = vmatpush1.bf16.msra.mxu1 %v5829_v48  ;;  %2678 = vmatprep.subr.bf16.mxu0 %v5834_v50  ;;  %v5877_v48 = vld [vmem:[%s8924_s1 + $0x9c8] ss:$24 sps:$4 sm:$0xff]   ;;  %v5882_v50 = vld [vmem:[%s8924_s1 + $0x84c] ss:$24 sps:$4 sm:$0xff]  }
  0xb1   :  { %2733 = vmatprep.subr.bf16.mxu1 %v5837_v51  ;;  %2633 = vmatprep.mubr.bf16.mxu1 %v6715_v39  ;;  %v5885_v51 = vld [vmem:[%s8924_s1 + $0x99c] ss:$24 sps:$4 sm:$0xff]  }
  0xb3   :  { %2679 = vmatpush2.bf16.msra.mxu0 %v5832_v57  ;;  %v5880_v57 = vld [vmem:[%s8924_s1 + $0x848] ss:$24 sps:$4 sm:$0xff]  }
  0xb4   :  { %2734 = vmatpush1.bf16.msra.mxu1 %v5835_v58  ;;  %2680 = vmatprep.subr.bf16.mxu0 %v5840_v60  ;;  %v5883_v58 = vld [vmem:[%s8924_s1 + $0x998] ss:$24 sps:$4 sm:$0xff]   ;;  %v5888_v60 = vld [vmem:[%s8924_s1 + $0x81c] ss:$24 sps:$4 sm:$0xff]  }
  0xb5   :  { %2735 = vmatprep.subr.bf16.mxu1 %v5843_v61  ;;  %v5891_v61 = vld [vmem:[%s8924_s1 + $0x96c] ss:$24 sps:$4 sm:$0xff]  }
  0xb7   :  { %2634 = vmatmul.mubr.bf16.gmra.mxu1 %v6730_v44  ;;  %2681 = vmatpush2.bf16.msra.mxu0 %v5838_v1  ;;  %v5886_v1 = vld [vmem:[%s8924_s1 + $0x818] ss:$24 sps:$4 sm:$0xff]  }
  0xb8   :  { %2736 = vmatpush1.bf16.msra.mxu1 %v5841_v2  ;;  %2682 = vmatprep.subr.bf16.mxu0 %v5846_v6  ;;  %v5889_v2 = vld [vmem:[%s8924_s1 + $0x968] ss:$24 sps:$4 sm:$0xff]   ;;  %v5894_v6 = vld [vmem:[%s8924_s1 + $0x7ec] ss:$24 sps:$4 sm:$0xff]  }
  0xb9   :  { %2737 = vmatprep.subr.bf16.mxu1 %v5849_v10  ;;  %2643 = vmatprep.mubr.bf16.mxu1 %v6754_v52  ;;  %v5897_v10 = vld [vmem:[%s8924_s1 + $0x93c] ss:$24 sps:$4 sm:$0xff]  }
  0xbb   :  { %2683 = vmatpush2.bf16.msra.mxu0 %v5844_v13  ;;  %v5892_v13 = vld [vmem:[%s8924_s1 + $0x7e8] ss:$24 sps:$4 sm:$0xff]  }
  0xbc   :  { %2738 = vmatpush1.bf16.msra.mxu1 %v5847_v14  ;;  %2684 = vmatprep.subr.bf16.mxu0 %v5852_v15  ;;  %v5895_v14 = vld [vmem:[%s8924_s1 + $0x938] ss:$24 sps:$4 sm:$0xff]   ;;  %v5900_v15 = vld [vmem:[%s8924_s1 + $0x7bc] ss:$24 sps:$4 sm:$0xff]  }
  0xbd   :  { %2739 = vmatprep.subr.bf16.mxu1 %v5855_v17  ;;  %v5903_v17 = vld [vmem:[%s8924_s1 + $0x90c] ss:$24 sps:$4 sm:$0xff]  }
  0xbf   :  { %2644 = vmatmul.mubr.bf16.gmra.mxu1 %v6778_v62  ;;  %2685 = vmatpush2.bf16.msra.mxu0 %v5850_v19  ;;  %v404_v19 = vld [vmem:[%s8924_s1 + $0xa88] sm:$0x33] }
  0xc0   :  { %2740 = vmatpush1.bf16.msra.mxu1 %v5853_v21  ;;  %2800 = vmatprep.subr.bf16.mxu0 %v5861_v4  ;;  %v5898_v21 = vld [vmem:[%s8924_s1 + $0x7b8] ss:$24 sps:$4 sm:$0xff]   ;;  %v5906_v4 = vld [vmem:[%s8924_s1 + $0x78c] ss:$24 sps:$4 sm:$0xff]  }
  0xc1   :  { %2741 = vmatprep.subr.bf16.mxu1 %v5858_v22  ;;  %2759 = vmatprep.mubr.bf16.mxu1 %v6811_v7  ;;  %v5901_v22 = vld [vmem:[%s8924_s1 + $0x908] ss:$24 sps:$4 sm:$0xff]  }
  0xc2   :  { %2687 = vmatmul.mubr.bf16.vlgmr.msra.gmra.mxu0 %v6625_v9 }
  0xc3   :  { %2801 = vmatpush1.bf16.msra.mxu0 %v5859_v26  ;;  %2696 = vmatprep.mubr.bf16.mxu0 %v6645_v16  ;;  %v5283_v26 = vcombine.low %v404_v19, %v404_v19 }
  0xc4   :  { %2742 = vmatpush1.bf16.msra.mxu1 %v5856_v23  ;;  %2802 = vmatprep.subr.bf16.mxu0 %v5867_v30  ;;  %v5284_v23 = vcombine.high %v404_v19, %v404_v19  ;;  %v5947_v19 = vld [vmem:[%s8924_s1 + $0x44] ss:$24 sps:$4 sm:$0xff]  }
  0xc5   :  { %2743 = vmatprep.subr.bf16.mxu1 %v5864_v27  ;;  %v5904_v27 = vld [vmem:[%s8924_s1 + $0x788] ss:$24 sps:$4 sm:$0xff]   ;;  %v2278_v30 = vsel %vm2270_vm1, %v5283_v26, 0  ;;  %v5956_v26 = vld [vmem:[%s8924_s1 + $0x314] ss:$24 sps:$4 sm:$0xff]  }
  0xc7   :  { %2803 = vmatpush1.bf16.msra.mxu0 %v5865_v33  ;;  %v5914_v33 = vld [vmem:[%s8924_s1 + $0x464] ss:$24 sps:$4 sm:$0xff]  }
  0xc8   :  { %2744 = vmatpush2.bf16.msra.mxu1 %v5862_v31  ;;  %2804 = vmatprep.subr.bf16.mxu0 %v5873_v36  ;;  %v5911_v31 = vld [vmem:[%s8924_s1 + $0x164] ss:$24 sps:$4 sm:$0xff]   ;;  %v5912_v36 = vld [vmem:[%s8924_s1 + $0x460] ss:$24 sps:$4 sm:$0xff]  }
  0xc9   :  { %2745 = vmatprep.subr.bf16.mxu1 %v5870_v35  ;;  %v5909_v35 = vld [vmem:[%s8924_s1 + $0x160] ss:$24 sps:$4 sm:$0xff]  }
  0xca   :  { %2697 = vmatmul.mubr.bf16.gmra.mxu0 %v6673_v25 }
  0xcb   :  { %2805 = vmatpush1.bf16.msra.mxu0 %v5871_v40  ;;  %2706 = vmatprep.mubr.bf16.mxu0 %v6692_v32  ;;  %v5920_v40 = vld [vmem:[%s8924_s1 + $0x434] ss:$24 sps:$4 sm:$0xff]  }
  0xcc   :  { %2746 = vmatpush2.bf16.msra.mxu1 %v5868_v38  ;;  %2806 = vmatprep.subr.bf16.mxu0 %v5879_v46  ;;  %v5917_v38 = vld [vmem:[%s8924_s1 + $0x134] ss:$24 sps:$4 sm:$0xff]   ;;  %v5918_v46 = vld [vmem:[%s8924_s1 + $0x430] ss:$24 sps:$4 sm:$0xff]  }
  0xcd   :  { %2747 = vmatprep.subr.bf16.mxu1 %v5876_v43  ;;  %v5915_v43 = vld [vmem:[%s8924_s1 + $0x130] ss:$24 sps:$4 sm:$0xff]  }
  0xcf   :  { %2807 = vmatpush1.bf16.msra.mxu0 %v5877_v48  ;;  %v5926_v48 = vld [vmem:[%s8924_s1 + $0x404] ss:$24 sps:$4 sm:$0xff]  }
  0xd0   :  { %2748 = vmatpush2.bf16.msra.mxu1 %v5874_v47  ;;  %2808 = vmatprep.subr.bf16.mxu0 %v5885_v51  ;;  %v5923_v47 = vld [vmem:[%s8924_s1 + $0x104] ss:$24 sps:$4 sm:$0xff]   ;;  %v5924_v51 = vld [vmem:[%s8924_s1 + $0x400] ss:$24 sps:$4 sm:$0xff]  }
  0xd1   :  { %2749 = vmatprep.subr.bf16.mxu1 %v5882_v50  ;;  %v5921_v50 = vld [vmem:[%s8924_s1 + $0x100] ss:$24 sps:$4 sm:$0xff]  }
  0xd2   :  { %2707 = vmatmul.mubr.bf16.gmra.mxu0 %v6724_v42 }
  0xd3   :  { %2809 = vmatpush1.bf16.msra.mxu0 %v5883_v58  ;;  %2716 = vmatprep.mubr.bf16.mxu0 %v6744_v49  ;;  %v5932_v58 = vld [vmem:[%s8924_s1 + $0x3d4] ss:$24 sps:$4 sm:$0xff]  }
  0xd4   :  { %2750 = vmatpush2.bf16.msra.mxu1 %v5880_v57  ;;  %2810 = vmatprep.subr.bf16.mxu0 %v5891_v61  ;;  %v5929_v57 = vld [vmem:[%s8924_s1 + $0xd4] ss:$24 sps:$4 sm:$0xff]   ;;  %v5930_v61 = vld [vmem:[%s8924_s1 + $0x3d0] ss:$24 sps:$4 sm:$0xff]  }
  0xd5   :  { %2751 = vmatprep.subr.bf16.mxu1 %v5888_v60  ;;  %v5927_v60 = vld [vmem:[%s8924_s1 + $0xd0] ss:$24 sps:$4 sm:$0xff]  }
  0xd7   :  { %2811 = vmatpush1.bf16.msra.mxu0 %v5889_v2  ;;  %v5938_v2 = vld [vmem:[%s8924_s1 + $0x3a4] ss:$24 sps:$4 sm:$0xff]  }
  0xd8   :  { %2752 = vmatpush2.bf16.msra.mxu1 %v5886_v1  ;;  %2812 = vmatprep.subr.bf16.mxu0 %v5897_v10  ;;  %v5935_v1 = vld [vmem:[%s8924_s1 + $0xa4] ss:$24 sps:$4 sm:$0xff]   ;;  %v5936_v10 = vld [vmem:[%s8924_s1 + $0x3a0] ss:$24 sps:$4 sm:$0xff]  }
  0xd9   :  { %2753 = vmatprep.subr.bf16.mxu1 %v5894_v6  ;;  %v5933_v6 = vld [vmem:[%s8924_s1 + $0xa0] ss:$24 sps:$4 sm:$0xff]  }
  0xda   :  { %2717 = vmatmul.mubr.bf16.gmra.mxu0 %v6770_v59 }
  0xdb   :  { %2813 = vmatpush1.bf16.msra.mxu0 %v5895_v14  ;;  %5293 = vmatprep.mubr.msk.bf16.mxu0 %vm2257_vm0, %v6792_v3  ;;  %v5944_v14 = vld [vmem:[%s8924_s1 + $0x374] ss:$24 sps:$4 sm:$0xff]  }
  0xdc   :  { %2754 = vmatpush2.bf16.msra.mxu1 %v5892_v13  ;;  %2814 = vmatprep.subr.bf16.mxu0 %v5903_v17  ;;  %v5941_v13 = vld [vmem:[%s8924_s1 + $0x74] ss:$24 sps:$4 sm:$0xff]   ;;  %v5942_v17 = vld [vmem:[%s8924_s1 + $0x370] ss:$24 sps:$4 sm:$0xff]  }
  0xdd   :  { %2755 = vmatprep.subr.bf16.mxu1 %v5900_v15  ;;  %v5939_v15 = vld [vmem:[%s8924_s1 + $0x70] ss:$24 sps:$4 sm:$0xff]  }
  0xdf   :  { %2815 = vmatpush1.bf16.msra.mxu0 %v5901_v22  ;;  %v5945_v22 = vld [vmem:[%s8924_s1 + $0x40] ss:$24 sps:$4 sm:$0xff]  }
  0xe0   :  { %2756 = vmatpush2.bf16.msra.mxu1 %v5898_v21  ;;  %5292 = vmatprep.subr.msk.bf16.mxu0 %vm2270_vm1, %v5284_v23  ;;  %v5950_v21 = vld [vmem:[%s8924_s1 + $0x344] ss:$24 sps:$4 sm:$0xff]   ;;  %v5953_v23 = vld [vmem:[%s8924_s1 + $0x14] ss:$24 sps:$4 sm:$0xff]  }
  0xe1   :  { %2757 = vmatprep.subr.bf16.mxu1 %v5906_v4  ;;  %v5948_v4 = vld [vmem:[%s8924_s1 + $0x340] ss:$24 sps:$4 sm:$0xff]  }
  0xe3   :  { %2831 = vmatpush2.bf16.msra.mxu0 %v2278_v30  ;;  %v5954_v30 = vld [vmem:[%s8924_s1 + $0x310] ss:$24 sps:$4 sm:$0xff]  }
  0xe4   :  { %2758 = vmatpush2.bf16.msra.mxu1 %v5904_v27  ;;  %2873 = vmatprep.subr.bf16.mxu0 %v5911_v31  ;;  %v5951_v27 = vld [vmem:[%s8924_s1 + $0x10] ss:$24 sps:$4 sm:$0xff]   ;;  %v5959_v31 = vld [vmem:[%s8924_s1 + $0x2e4] ss:$24 sps:$4 sm:$0xff]  }
  0xe5   :  { %2946 = vmatprep.subr.bf16.mxu1 %v5914_v33  ;;  %v5962_v33 = vld [vmem:[%s8924_s1 + $0x5e4] ss:$24 sps:$4 sm:$0xff]  }
  0xe6   :  { %2833 = vmatmul.mubr.bf16.vlgmr.msra.gmra.mxu0 %v6836_v20 }
  0xe7   :  { %2760 = vmatmul.mubr.bf16.vlgmr.msra.gmra.mxu1 %v6966_v18  ;;  %2874 = vmatpush1.bf16.msra.mxu0 %v5909_v35  ;;  %v5957_v35 = vld [vmem:[%s8924_s1 + $0x2e0] ss:$24 sps:$4 sm:$0xff]  }
  0xe8   :  { %2947 = vmatpush1.bf16.msra.mxu1 %v5912_v36  ;;  %2875 = vmatprep.subr.bf16.mxu0 %v5917_v38  ;;  %v5960_v36 = vld [vmem:[%s8924_s1 + $0x5e0] ss:$24 sps:$4 sm:$0xff]  }
  0xe9   :  { %2948 = vmatprep.subr.bf16.mxu1 %v5920_v40  ;;  %2769 = vmatprep.mubr.bf16.mxu1 %v6981_v5 }
  0xea   :  { %5294 = vmatprep.mubr.msk.bf16.mxu0 %vm2257_vm0, %v6853_v29 }
  0xeb   :  { %2876 = vmatpush1.bf16.msra.mxu0 %v5915_v43  ;;  %v5965_v43 = vld [vmem:[%s8924_s1 + $0x2b4] ss:$24 sps:$4 sm:$0xff]  }
  0xec   :  { %2949 = vmatpush1.bf16.msra.mxu1 %v5918_v46  ;;  %2877 = vmatprep.subr.bf16.mxu0 %v5923_v47  ;;  %v5968_v46 = vld [vmem:[%s8924_s1 + $0x5b4] ss:$24 sps:$4 sm:$0xff]  }
  0xed   :  { %2950 = vmatprep.subr.bf16.mxu1 %v5926_v48 }
  0xee   :  { %2843 = vmatmul.mubr.bf16.gmra.mxu0 %v6876_v37 }
  0xef   :  { %2770 = vmatmul.mubr.bf16.gmra.mxu1 %v7004_v34  ;;  %2878 = vmatpush1.bf16.msra.mxu0 %v5921_v50 }
  0xf0   :  { %2951 = vmatpush1.bf16.msra.mxu1 %v5924_v51  ;;  %2879 = vmatprep.subr.bf16.mxu0 %v5929_v57 }
  0xf1   :  { %2952 = vmatprep.subr.bf16.mxu1 %v5932_v58  ;;  %2779 = vmatprep.mubr.bf16.mxu1 %v7018_v41  ;;  %v5971_v58 = vld [vmem:[%s8924_s1 + $0x284] ss:$24 sps:$4 sm:$0xff]  }
  0xf2   :  { %5295 = vmatprep.mubr.msk.bf16.mxu0 %vm2257_vm0, %v6890_v45 }
  0xf3   :  { %2880 = vmatpush1.bf16.msra.mxu0 %v5927_v60  ;;  %v5974_v60 = vld [vmem:[%s8924_s1 + $0x584] ss:$24 sps:$4 sm:$0xff]  }
  0xf4   :  { %2953 = vmatpush1.bf16.msra.mxu1 %v5930_v61  ;;  %2881 = vmatprep.subr.bf16.mxu0 %v5935_v1 }
  0xf5   :  { %2954 = vmatprep.subr.bf16.mxu1 %v5938_v2 }
  0xf6   :  { %2853 = vmatmul.mubr.bf16.gmra.mxu0 %v6913_v56 }
  0xf7   :  { %2780 = vmatmul.mubr.bf16.gmra.mxu1 %v7040_v55  ;;  %2882 = vmatpush1.bf16.msra.mxu0 %v5933_v6  ;;  %v5969_v6 = vld [vmem:[%s8924_s1 + $0x280] ss:$24 sps:$4 sm:$0xff]  }
  0xf8   :  { %2955 = vmatpush1.bf16.msra.mxu1 %v5936_v10  ;;  %2883 = vmatprep.subr.bf16.mxu0 %v5941_v13  ;;  %v5972_v10 = vld [vmem:[%s8924_s1 + $0x580] ss:$24 sps:$4 sm:$0xff]   ;;  %v5977_v13 = vld [vmem:[%s8924_s1 + $0x254] ss:$24 sps:$4 sm:$0xff]  }
  0xf9   :  { %2956 = vmatprep.subr.bf16.mxu1 %v5944_v14  ;;  %2789 = vmatprep.mubr.bf16.mxu1 %v7054_v0  ;;  %v5980_v14 = vld [vmem:[%s8924_s1 + $0x554] ss:$24 sps:$4 sm:$0xff]  }
  0xfa   :  { %5296 = vmatprep.mubr.msk.bf16.mxu0 %vm2257_vm0, %v6927_v63 }
  0xfb   :  { %2884 = vmatpush1.bf16.msra.mxu0 %v5939_v15 }
  0xfc   :  { %2957 = vmatpush1.bf16.msra.mxu1 %v5942_v17  ;;  %2885 = vmatprep.subr.bf16.mxu0 %v5947_v19 }
  0xfd   :  { %2958 = vmatprep.subr.bf16.mxu1 %v5950_v21 }
  0xfe   :  { %2863 = vmatmul.mubr.bf16.gmra.mxu0 %v6947_v11 }
  0xff   :  { %2790 = vmatmul.mubr.bf16.gmra.mxu1 %v7070_v12  ;;  %2886 = vmatpush1.bf16.msra.mxu0 %v5945_v22 }
 0x100   :  { %2959 = vmatpush1.bf16.msra.mxu1 %v5948_v4  ;;  %2887 = vmatprep.subr.bf16.mxu0 %v5953_v23  ;;  %v5975_v4 = vld [vmem:[%s8924_s1 + $0x250] ss:$24 sps:$4 sm:$0xff]  }
 0x101   :  { %2960 = vmatprep.subr.bf16.mxu1 %v5956_v26  ;;  %2905 = vmatprep.mubr.bf16.mxu0 %v6566_v53  ;;  %v5963_v53 = vld [vmem:[%s8924_s1 + $0x2b0] ss:$24 sps:$4 sm:$0xff]   ;;  %v5983_v26 = vld [vmem:[%s8924_s1 + $0x224] ss:$24 sps:$4 sm:$0xff]  }
 0x102   :  { %2978 = vmatprep.mubr.bf16.mxu1 %v6568_v54  ;;  %v2323_v38 = vpop.f32.mrf.mxu0  ;;  %v5966_v54 = vld [vmem:[%s8924_s1 + $0x5b0] ss:$24 sps:$4 sm:$0xff]  }
 0x103   :  { %v2396_v40 = vpop.f32.mrf.mxu1  ;;  %2888 = vmatpush1.bf16.msra.mxu0 %v5951_v27  ;;  %v5978_v23 = vld [vmem:[%s8924_s1 + $0x550] ss:$24 sps:$4 sm:$0xff]   ;;  %v5986_v27 = vld [vmem:[%s8924_s1 + $0x524] ss:$24 sps:$4 sm:$0xff]  }
 0x104   :  { %v7445_v47 = vadd.f32 %v2396_v40, %v2323_v38  ;;  %2961 = vmatpush1.bf16.msra.mxu1 %v5954_v30  ;;  %v7447_v48 = vpop.f32.mrf.mxu0  ;;  %2889 = vmatprep.subr.bf16.mxu0 %v5959_v31  ;;  %v5981_v38 = vld [vmem:[%s8924_s1 + $0x220] ss:$24 sps:$4 sm:$0xff]  }
 0x105   :  { %v7449_v50 = vpop.f32.mrf.mxu1  ;;  %2962 = vmatprep.subr.bf16.mxu1 %v5962_v33  ;;  %v5984_v40 = vld [vmem:[%s8924_s1 + $0x520] ss:$24 sps:$4 sm:$0xff]  }
 0x106   :  { %v2327_v51 = vpop.f32.mrf.mxu0 }
 0x107   :  { %v2400_v57 = vpop.f32.mrf.mxu1  ;;  %2890 = vmatpush2.bf16.msra.mxu0 %v5957_v35 }
 0x108   :  { %v7463_v61 = vadd.f32 %v2400_v57, %v2327_v51  ;;  %2963 = vmatpush2.bf16.msra.mxu1 %v5960_v36  ;;  %v7465_v1 = vpop.f32.mrf.mxu0  ;;  %2891 = vmatprep.subr.bf16.mxu0 %v5965_v43  ;;  %v5989_v43 = vld [vmem:[%s8924_s1 + $0x1f4] ss:$24 sps:$4 sm:$0xff]  }
 0x109   :  { %v7467_v2 = vpop.f32.mrf.mxu1  ;;  %2964 = vmatprep.subr.bf16.mxu1 %v5968_v46 }
 0x10a   :  { %v2333_v15 = vpop.f32.mrf.mxu0 }
 0x10b   :  { %v2406_v17 = vpop.f32.mrf.mxu1  ;;  %2892 = vmatpush2.bf16.msra.mxu0 %v5963_v53 }
 0x10c   :  { %2965 = vmatpush2.bf16.msra.mxu1 %v5966_v54  ;;  %v7481_v19 = vadd.f32 %v2406_v17, %v2333_v15  ;;  %2893 = vmatprep.subr.bf16.mxu0 %v5971_v58  ;;  %v7483_v21 = vpop.f32.mrf.mxu0  ;;  %v5992_v54 = vld [vmem:[%s8924_s1 + $0x4f4] ss:$24 sps:$4 sm:$0xff]   ;;  %v5998_v15 = vld [vmem:[%s8924_s1 + $0x4c4] ss:$24 sps:$4 sm:$0xff]  }
 0x10d   :  { %2966 = vmatprep.subr.bf16.mxu1 %v5974_v60  ;;  %v7485_v22 = vpop.f32.mrf.mxu1  ;;  %v5987_v60 = vld [vmem:[%s8924_s1 + $0x1f0] ss:$24 sps:$4 sm:$0xff]  }
 0x10e   :  { %v2337_v30 = vpop.f32.mrf.mxu0 }
 0x10f   :  { %v2410_v31 = vpop.f32.mrf.mxu1  ;;  %2894 = vmatpush2.bf16.msra.mxu0 %v5969_v6  ;;  %v5990_v6 = vld [vmem:[%s8924_s1 + $0x4f0] ss:$24 sps:$4 sm:$0xff]  }
 0x110   :  { %2967 = vmatpush2.bf16.msra.mxu1 %v5972_v10  ;;  %v7499_v33 = vadd.f32 %v2410_v31, %v2337_v30  ;;  %2895 = vmatprep.subr.bf16.mxu0 %v5977_v13  ;;  %v7501_v35 = vpop.f32.mrf.mxu0  ;;  %v5995_v10 = vld [vmem:[%s8924_s1 + $0x1c4] ss:$24 sps:$4 sm:$0xff]   ;;  %v6004_v31 = vld [vmem:[%s8924_s1 + $0x494] ss:$24 sps:$4 sm:$0xff]  }
 0x111   :  { %2968 = vmatprep.subr.bf16.mxu1 %v5980_v14  ;;  %v7503_v36 = vpop.f32.mrf.mxu1 }
 0x112   :  { %v2343_v46 = vpop.f32.mrf.mxu0 }
 0x113   :  { %v2416_v53 = vpop.f32.mrf.mxu1  ;;  %2896 = vmatpush2.bf16.msra.mxu0 %v5975_v4 }
 0x114   :  { %2969 = vmatpush2.bf16.msra.mxu1 %v5978_v23  ;;  %v7517_v51 = vadd.f32 %v2416_v53, %v2343_v46  ;;  %2897 = vmatprep.subr.bf16.mxu0 %v5983_v26  ;;  %v7519_v57 = vpop.f32.mrf.mxu0  ;;  %v5993_v23 = vld [vmem:[%s8924_s1 + $0x1c0] ss:$24 sps:$4 sm:$0xff]   ;;  %v6007_v46 = vld [vmem:[%s8924_s1 + $0x764] ss:$24 sps:$4 sm:$0xff]  }
 0x115   :  { %2970 = vmatprep.subr.bf16.mxu1 %v5986_v27  ;;  %v7521_v58 = vpop.f32.mrf.mxu1  ;;  %v5996_v26 = vld [vmem:[%s8924_s1 + $0x4c0] ss:$24 sps:$4 sm:$0xff]   ;;  %v6001_v27 = vld [vmem:[%s8924_s1 + $0x194] ss:$24 sps:$4 sm:$0xff]   ;;  %v6010_v53 = vld [vmem:[%s8924_s1 + $0xa64] ss:$24 sps:$4 sm:$0xff]  }
 0x116   :  { %v2347_v13 = vpop.f32.mrf.mxu0 }
 0x117   :  { %v2420_v14 = vpop.f32.mrf.mxu1  ;;  %2898 = vmatpush2.bf16.msra.mxu0 %v5981_v38 }
 0x118   :  { %2971 = vmatpush2.bf16.msra.mxu1 %v5984_v40  ;;  %v7535_v17 = vadd.f32 %v2420_v14, %v2347_v13  ;;  %2899 = vmatprep.subr.bf16.mxu0 %v5989_v43  ;;  %v5999_v40 = vld [vmem:[%s8924_s1 + $0x190] ss:$24 sps:$4 sm:$0xff]   ;;  %v6016_v13 = vld [vmem:[%s8924_s1 + $0xa34] ss:$24 sps:$4 sm:$0xff]  }
 0x119   :  { %2972 = vmatprep.subr.bf16.mxu1 %v5992_v54  ;;  %v7537_v4 = vpop.f32.mrf.mxu1  ;;  %v6002_v43 = vld [vmem:[%s8924_s1 + $0x490] ss:$24 sps:$4 sm:$0xff]  }
 0x11b   :  { %v7548_v30 = vpop.f32.mrf.mxu1  ;;  %2900 = vmatpush2.bf16.msra.mxu0 %v5987_v60  ;;  %v6005_v60 = vld [vmem:[%s8924_s1 + $0x760] ss:$24 sps:$4 sm:$0xff]  }
 0x11c   :  { %2973 = vmatpush2.bf16.msra.mxu1 %v5990_v6  ;;  %2901 = vmatprep.subr.bf16.mxu0 %v5995_v10  ;;  %v6008_v6 = vld [vmem:[%s8924_s1 + $0xa60] ss:$24 sps:$4 sm:$0xff]   ;;  %v6013_v10 = vld [vmem:[%s8924_s1 + $0x734] ss:$24 sps:$4 sm:$0xff]  }
 0x11d   :  { %2974 = vmatprep.subr.bf16.mxu1 %v5998_v15  ;;  %v7553_v38 = vpop.f32.mrf.mxu1  ;;  %v6011_v15 = vld [vmem:[%s8924_s1 + $0x730] ss:$24 sps:$4 sm:$0xff]  }
 0x11f   :  { %2902 = vmatpush2.bf16.msra.mxu0 %v5993_v23  ;;  %v7567_v54 = vpop.f32.mrf.mxu1  ;;  %v6014_v23 = vld [vmem:[%s8924_s1 + $0xa30] ss:$24 sps:$4 sm:$0xff]  }
 0x120   :  { %2975 = vmatpush2.bf16.msra.mxu1 %v5996_v26  ;;  %2903 = vmatprep.subr.bf16.mxu0 %v6001_v27  ;;  %v6019_v26 = vld [vmem:[%s8924_s1 + $0x704] ss:$24 sps:$4 sm:$0xff]  }
 0x121   :  { %2976 = vmatprep.subr.bf16.mxu1 %v6004_v31  ;;  %v7581_v14 = vpop.f32.mrf.mxu1  ;;  %v6022_v31 = vld [vmem:[%s8924_s1 + $0xa04] ss:$24 sps:$4 sm:$0xff]  }
 0x123   :  { %2904 = vmatpush2.bf16.msra.mxu0 %v5999_v40  ;;  %v6025_v40 = vld [vmem:[%s8924_s1 + $0x6d4] ss:$24 sps:$4 sm:$0xff]  }
 0x124   :  { %2977 = vmatpush2.bf16.msra.mxu1 %v6002_v43  ;;  %3019 = vmatprep.subr.bf16.mxu0 %v6007_v46  ;;  %v6028_v46 = vld [vmem:[%s8924_s1 + $0x9d4] ss:$24 sps:$4 sm:$0xff]  }
 0x125   :  { %3092 = vmatprep.subr.bf16.mxu1 %v6010_v53  ;;  %v6031_v53 = vld [vmem:[%s8924_s1 + $0x6a4] ss:$24 sps:$4 sm:$0xff]  }
 0x126   :  { %2906 = vmatmul.mubr.bf16.vlgmr.msra.gmra.mxu0 %v6623_v8  ;;  %v6017_v8 = vld [vmem:[%s8924_s1 + $0x700] ss:$24 sps:$4 sm:$0xff]  }
 0x127   :  { %2979 = vmatmul.mubr.bf16.vlgmr.msra.gmra.mxu1 %v6625_v9  ;;  %v7594_v27 = vpop.f32.mrf.mxu1  ;;  %3020 = vmatpush1.bf16.msra.mxu0 %v6005_v60  ;;  %v6020_v9 = vld [vmem:[%s8924_s1 + $0xa00] ss:$24 sps:$4 sm:$0xff]  }
 0x128   :  { %3093 = vmatpush1.bf16.msra.mxu1 %v6008_v6  ;;  %3021 = vmatprep.subr.bf16.mxu0 %v6013_v10  ;;  %v6034_v6 = vld [vmem:[%s8924_s1 + $0x9a4] ss:$24 sps:$4 sm:$0xff]   ;;  %v7631_v10 = vpop.f32.mrf.mxu0 }
 0x129   :  { %3094 = vmatprep.subr.bf16.mxu1 %v6016_v13  ;;  %2988 = vmatprep.mubr.bf16.mxu1 %v6645_v16  ;;  %v7610_v43 = vpop.f32.mrf.mxu1  ;;  %v6023_v16 = vld [vmem:[%s8924_s1 + $0x6d0] ss:$24 sps:$4 sm:$0xff]   ;;  %v6032_v13 = vld [vmem:[%s8924_s1 + $0x9a0] ss:$24 sps:$4 sm:$0xff]  }
 0x12a   :  { %2915 = vmatprep.mubr.bf16.mxu0 %v6671_v24  ;;  %v6026_v24 = vld [vmem:[%s8924_s1 + $0x9d0] ss:$24 sps:$4 sm:$0xff]  }
 0x12b   :  { %3022 = vmatpush1.bf16.msra.mxu0 %v6011_v15  ;;  %v7625_v60 = vpop.f32.mrf.mxu1 }
 0x12c   :  { %3095 = vmatpush1.bf16.msra.mxu1 %v6014_v23  ;;  %3023 = vmatprep.subr.bf16.mxu0 %v6019_v26  ;;  %v6040_v23 = vld [vmem:[%s8924_s1 + $0x974] ss:$24 sps:$4 sm:$0xff]   ;;  %v7649_v26 = vpop.f32.mrf.mxu0 }
 0x12d   :  { %3096 = vmatprep.subr.bf16.mxu1 %v6022_v31  ;;  %v7644_v15 = vpop.f32.mrf.mxu1 }
 0x12e   :  { %2916 = vmatmul.mubr.bf16.gmra.mxu0 %v6681_v28  ;;  %v6037_v28 = vld [vmem:[%s8924_s1 + $0x674] ss:$24 sps:$4 sm:$0xff]  }
 0x12f   :  { %2989 = vmatmul.mubr.bf16.gmra.mxu1 %v6673_v25  ;;  %3024 = vmatpush1.bf16.msra.mxu0 %v6017_v8  ;;  %v6029_v25 = vld [vmem:[%s8924_s1 + $0x6a0] ss:$24 sps:$4 sm:$0xff]   ;;  %v7651_v31 = vpop.f32.mrf.mxu1  ;;  %v7661_v8 = vpop.f32.mrf.mxu0 }
 0x130   :  { %3097 = vmatpush1.bf16.msra.mxu1 %v6020_v9  ;;  %3025 = vmatprep.subr.bf16.mxu0 %v6025_v40  ;;  %v6043_v9 = vld [vmem:[%s8924_s1 + $0x644] ss:$24 sps:$4 sm:$0xff]  }
 0x131   :  { %3098 = vmatprep.subr.bf16.mxu1 %v6028_v46  ;;  %2998 = vmatprep.mubr.bf16.mxu1 %v6692_v32  ;;  %v6035_v32 = vld [vmem:[%s8924_s1 + $0x670] ss:$24 sps:$4 sm:$0xff]   ;;  %v7669_v40 = vpop.f32.mrf.mxu1  ;;  %v6044_v46 = vld [vmem:[%s8924_s1 + $0x940] ss:$24 sps:$4 sm:$0xff]  }
 0x132   :  { %2925 = vmatprep.mubr.bf16.mxu0 %v6715_v39  ;;  %v6038_v39 = vld [vmem:[%s8924_s1 + $0x970] ss:$24 sps:$4 sm:$0xff]  }
 0x133   :  { %3026 = vmatpush1.bf16.msra.mxu0 %v6023_v16  ;;  %v7679_v16 = vpop.f32.mrf.mxu0 }
 0x134   :  { %3099 = vmatpush1.bf16.msra.mxu1 %v6026_v24  ;;  %3027 = vmatprep.subr.bf16.mxu0 %v6031_v53  ;;  %v7687_v24 = vpop.f32.mrf.mxu1  ;;  %v405_v53 = vld [vmem:[%s8924_s1 + $0xa90] sm:$0x33] }
 0x135   :  { %3100 = vmatprep.subr.bf16.mxu1 %v6034_v6  ;;  %v6047_v6 = vld [vmem:[%s8924_s1 + $0x610] ss:$24 sps:$4 sm:$0xff]  }
 0x136   :  { %2926 = vmatmul.mubr.bf16.gmra.mxu0 %v6730_v44  ;;  %v6041_v44 = vld [vmem:[%s8924_s1 + $0x640] ss:$24 sps:$4 sm:$0xff]  }
 0x137   :  { %2999 = vmatmul.mubr.bf16.gmra.mxu1 %v6724_v42  ;;  %3028 = vmatpush1.bf16.msra.mxu0 %v6029_v25  ;;  %v6046_v42 = vld [vmem:[%s8924_s1 + $0x944] ss:$24 sps:$4 sm:$0xff]   ;;  %v6050_v25 = vld [vmem:[%s8924_s1 + $0x910] ss:$24 sps:$4 sm:$0xff]  }
 0x138   :  { %3101 = vmatpush1.bf16.msra.mxu1 %v6032_v13  ;;  %3029 = vmatprep.subr.bf16.mxu0 %v6037_v28  ;;  %v7700_v13 = vpop.f32.mrf.mxu0  ;;  %v5286_v28 = vcombine.high %v405_v53, %v405_v53 }
 0x139   :  { %3102 = vmatprep.subr.bf16.mxu1 %v6040_v23  ;;  %3008 = vmatprep.mubr.bf16.mxu1 %v6744_v49  ;;  %v6049_v49 = vld [vmem:[%s8924_s1 + $0x614] ss:$24 sps:$4 sm:$0xff]   ;;  %v7705_v23 = vpop.f32.mrf.mxu1 }
 0x13a   :  { %2935 = vmatprep.mubr.bf16.mxu0 %v6754_v52  ;;  %v6052_v52 = vld [vmem:[%s8924_s1 + $0x914] ss:$24 sps:$4 sm:$0xff]  }
 0x13b   :  { %3030 = vmatpush1.bf16.msra.mxu0 %v6035_v32 }
 0x13c   :  { %3103 = vmatpush1.bf16.msra.mxu1 %v6038_v39  ;;  %3031 = vmatprep.subr.bf16.mxu0 %v6043_v9  ;;  %v6053_v39 = vld [vmem:[%s8924_s1 + $0x8e0] ss:$24 sps:$4 sm:$0xff]  }
 0x13d   :  { %3104 = vmatprep.subr.bf16.mxu1 %v6046_v42 }
 0x13e   :  { %2936 = vmatmul.mubr.bf16.gmra.mxu0 %v6778_v62  ;;  %v5285_v62 = vcombine.low %v405_v53, %v405_v53 }
 0x13f   :  { %3009 = vmatmul.mubr.bf16.gmra.mxu1 %v6770_v59  ;;  %3032 = vmatpush1.bf16.msra.mxu0 %v6041_v44  ;;  %v6055_v59 = vld [vmem:[%s8924_s1 + $0x8e4] ss:$24 sps:$4 sm:$0xff]   ;;  %v7723_v44 = vpop.f32.mrf.mxu1 }
 0x140   :  { %3105 = vmatpush1.bf16.msra.mxu1 %v6044_v46  ;;  %3033 = vmatprep.subr.bf16.mxu0 %v6049_v49  ;;  %v2284_v42 = vsel %vm2270_vm1, %v5285_v62, 0  ;;  %v6058_v49 = vld [vmem:[%s8924_s1 + $0x8b0] ss:$24 sps:$4 sm:$0xff]  }
 0x141   :  { %3106 = vmatprep.subr.bf16.mxu1 %v6052_v52  ;;  %5298 = vmatprep.mubr.msk.bf16.mxu1 %vm2257_vm0, %v6792_v3  ;;  %v6060_v3 = vld [vmem:[%s8924_s1 + $0x8b4] ss:$24 sps:$4 sm:$0xff]   ;;  %v6061_v52 = vld [vmem:[%s8926_s3 + $0xe0] ss:$16 sps:$4 sm:$0xff]  }
 0x142   :  { %3051 = vmatprep.mubr.bf16.mxu0 %v6811_v7  ;;  %v2469_v32 = vpop.f32.mrf.mxu0  ;;  %v6063_v7 = vld [vmem:[%s8926_s3 + $0xe4] ss:$16 sps:$4 sm:$0xff]  }
 0x143   :  { %3034 = vmatpush1.bf16.msra.mxu0 %v6047_v6  ;;  %v6066_v6 = vld [vmem:[%s8924_s1 + $0x884] ss:$24 sps:$4 sm:$0xff]  }
 0x144   :  { %3107 = vmatpush1.bf16.msra.mxu1 %v6050_v25  ;;  %v7713_v9 = vpop.f32.mrf.mxu0  ;;  %3035 = vmatprep.subr.bf16.mxu0 %v6055_v59  ;;  %v6069_v25 = vld [vmem:[%s8926_s3 + $0xc4] ss:$16 sps:$4 sm:$0xff]   ;;  %v7739_v59 = vpop.f32.mrf.mxu1 }
 0x145   :  { %5297 = vmatprep.subr.msk.bf16.mxu1 %vm2270_vm1, %v5286_v28  ;;  %v2470_v28 = vadd.f32 %v2469_v32, %v7445_v47  ;;  %v6072_v47 = vld [vmem:[%s8924_s1 + $0x854] ss:$24 sps:$4 sm:$0xff]  }
 0x146   :  { %v2473_v46 = vpop.f32.mrf.mxu0 }
 0x147   :  { %3036 = vmatpush2.bf16.msra.mxu0 %v6053_v39  ;;  %v7759_v32 = vadd.f32 %v7594_v27, %v2470_v28  ;;  %v6070_v27 = vld [vmem:[%s8924_s1 + $0x850] ss:$24 sps:$4 sm:$0xff]  }
 0x148   :  { %3123 = vmatpush2.bf16.msra.mxu1 %v2284_v42  ;;  %v7731_v53 = vpop.f32.mrf.mxu0  ;;  %3037 = vmatprep.subr.bf16.mxu0 %v6060_v3  ;;  %v6064_v42 = vld [vmem:[%s8924_s1 + $0x880] ss:$24 sps:$4 sm:$0xff]  }
 0x149   :  { %4369 = vmatprep.subr.bf16.mxu1 %v6063_v7  ;;  %v6067_v3 = vld [vmem:[%s8926_s3 + $0xc0] ss:$16 sps:$4 sm:$0xff]  }
 0x14a   :  { %v2479_v62 = vpop.f32.mrf.mxu0 }
 0x14b   :  { %3125 = vmatmul.mubr.bf16.vlgmr.msra.gmra.mxu1 %v6836_v20  ;;  %v2480_v39 = vadd.f32 %v2479_v62, %v7481_v19  ;;  %3038 = vmatpush2.bf16.msra.mxu0 %v6058_v49  ;;  %v6075_v20 = vld [vmem:[%s8926_s3 + $0xa4] ss:$16 sps:$4 sm:$0xff]   ;;  %v7756_v19 = vpop.f32.mrf.mxu1  ;;  %v2474_v49 = vadd.f32 %v2473_v46, %v7463_v61  ;;  %v6073_v61 = vld [vmem:[%s8926_s3 + $0xa0] ss:$16 sps:$4 sm:$0xff]  }
 0x14c   :  { %4370 = vmatpush1.bf16.msra.mxu1 %v6061_v52  ;;  %v2481_v7 = vpop.f32.mrf.mxu0  ;;  %3039 = vmatprep.subr.bf16.mxu0 %v6066_v6  ;;  %v3203_v6 = vlaneseq  ;;  %v6093_v62 = vld [vmem:[%s8926_s3 + $0x44] ss:$16 sps:$4 sm:$0xff]  }
 0x14d   :  { %4371 = vmatprep.subr.bf16.mxu1 %v6069_v25  ;;  %v7763_v52 = vadd.f32 %v7651_v31, %v2480_v39  ;;  %5299 = vmatprep.mubr.msk.bf16.mxu1 %vm2257_vm0, %v6853_v29  ;;  %v6078_v29 = vld [vmem:[%s8924_s1 + $0x824] ss:$24 sps:$4 sm:$0xff]   ;;  %v7782_v46 = vpop.f32.mrf.mxu1  ;;  %v7785_v28 = vadd.f32 %v7625_v60, %v2474_v49  ;;  %v6079_v60 = vld [vmem:[%s8926_s3 + $0x80] ss:$16 sps:$4 sm:$0xff]  }
 0x14e   :  { %v2483_v25 = vpop.f32.mrf.mxu0 }
 0x14f   :  { %v2484_v12 = vadd.f32 %v2483_v25, %v7499_v33  ;;  %3040 = vmatpush2.bf16.msra.mxu0 %v6064_v42  ;;  %v6081_v33 = vld [vmem:[%s8926_s3 + $0x84] ss:$16 sps:$4 sm:$0xff]   ;;  %v7790_v42 = vshrl.u32 %v3203_v6, 7  ;;  %v2572_v49 = vpop.f32.mrf.mxu1  ;;  %v2409_v25 = vadd.f32 %v7485_v22, %v7483_v21  ;;  %v2419_v21 = vadd.f32 %v7521_v58, %v7519_v57 }
 0x150   :  { %4372 = vmatpush1.bf16.msra.mxu1 %v6067_v3  ;;  %v2485_v31 = vpop.f32.mrf.mxu0  ;;  %3041 = vmatprep.subr.bf16.mxu0 %v6072_v47  ;;  %v2403_v6 = vadd.f32 %v7467_v2, %v7465_v1  ;;  %v2429_v2 = vadd.f32 %v7553_v38, %v7661_v8  ;;  %v6099_v8 = vld [vmem:[%s8926_s3 + $0x24] ss:$16 sps:$4 sm:$0xff]  }
 0x151   :  { %4373 = vmatprep.subr.bf16.mxu1 %v6075_v20  ;;  %v7788_v39 = vadd.f32 %v7687_v24, %v2484_v12  ;;  %v6076_v20 = vld [vmem:[%s8924_s1 + $0x820] ss:$24 sps:$4 sm:$0xff]   ;;  %v6087_v24 = vld [vmem:[%s8926_s3 + $0x64] ss:$16 sps:$4 sm:$0xff]   ;;  %v2482_v22 = vadd.f32 %v2481_v7, %v2409_v25  ;;  %v8944_v57 = vsub.s32 0, %v7790_v42  ;;  %v2413_v7 = vadd.f32 %v7503_v36, %v7501_v35 }
 0x152   :  { %v2489_v3 = vpop.f32.mrf.mxu0  ;;  %v6088_v35 = vld [vmem:[%s8924_s1 + $0x7c0] ss:$24 sps:$4 sm:$0xff]  }
 0x153   :  { %3135 = vmatmul.mubr.bf16.gmra.mxu1 %v6876_v37  ;;  %3042 = vmatpush2.bf16.msra.mxu0 %v6070_v27  ;;  %v6084_v37 = vld [vmem:[%s8924_s1 + $0x7f4] ss:$24 sps:$4 sm:$0xff]   ;;  %v6091_v36 = vld [vmem:[%s8926_s3 + $0x40] ss:$16 sps:$4 sm:$0xff]  }
 0x154   :  { %4374 = vmatpush1.bf16.msra.mxu1 %v6073_v61  ;;  %v2491_v12 = vpop.f32.mrf.mxu0  ;;  %3043 = vmatprep.subr.bf16.mxu0 %v6078_v29  ;;  %v7815_v61 = vld [vmem:[%s8927_s2] sm:$0x3f]  ;;  %v6082_v29 = vld [vmem:[%s8924_s1 + $0x7f0] ss:$24 sps:$4 sm:$0xff]  }
 0x155   :  { %4375 = vmatprep.subr.bf16.mxu1 %v6081_v33  ;;  %5300 = vmatprep.mubr.msk.bf16.mxu1 %vm2257_vm0, %v6890_v45  ;;  %v6085_v33 = vld [vmem:[%s8926_s3 + $0x60] ss:$16 sps:$4 sm:$0xff]   ;;  %v2399_v45 = vadd.f32 %v7449_v50, %v7447_v48  ;;  %v2427_v48 = vadd.f32 %v7548_v30, %v7649_v26  ;;  %v2490_v50 = vadd.f32 %v2489_v3, %v7517_v51  ;;  %v6096_v26 = vld [vmem:[%s8924_s1 + $0x794] ss:$24 sps:$4 sm:$0xff]  }
 0x156   :  { %v2493_v27 = vpop.f32.mrf.mxu0  ;;  %v7841_v58 = vrot.slane %v7815_v61, %v8944_v57  ;;  %v2492_v25 = vadd.f32 %v2491_v12, %v2419_v21  ;;  %v2431_v51 = vadd.f32 %v7567_v54, %v7679_v16  ;;  %v8936_v16 = vsub.s32 1, %v7790_v42 }
 0x157   :  { %3044 = vmatpush2.bf16.msra.mxu0 %v6076_v20  ;;  %v2574_v20 = vpop.f32.mrf.mxu1  ;;  %v2476_v3 = vadd.f32 %v7731_v53, %v2403_v6 }
 0x158   :  { %4376 = vmatpush1.bf16.msra.mxu1 %v6079_v60  ;;  %v2495_v47 = vpop.f32.mrf.mxu0  ;;  %3045 = vmatprep.subr.bf16.mxu0 %v6084_v37  ;;  %v6090_v60 = vld [vmem:[%s8924_s1 + $0x7c4] ss:$24 sps:$4 sm:$0xff]   ;;  %v2423_v37 = vadd.f32 %v7537_v4, %v7631_v10  ;;  %v2555_v4 = vadd.f32 %v7669_v40, %v2482_v22  ;;  %v2494_v10 = vadd.f32 %v2493_v27, %v7535_v17 }
 0x159   :  { %4377 = vmatprep.subr.bf16.mxu1 %v6087_v24  ;;  %v2472_v24 = vadd.f32 %v7713_v9, %v2399_v45  ;;  %v2576_v54 = vpop.f32.mrf.mxu1  ;;  %v2433_v40 = vadd.f32 %v7581_v14, %v7700_v13  ;;  %v2563_v9 = vadd.f32 %v7723_v44, %v2490_v50  ;;  %v2565_v12 = vadd.f32 %v7739_v59, %v2492_v25  ;;  %v6094_v14 = vld [vmem:[%s8924_s1 + $0x790] ss:$24 sps:$4 sm:$0xff]  }
 0x15a   :  { %v2499_v1 = vpop.f32.mrf.mxu0  ;;  %v2496_v27 = vadd.f32 %v2495_v47, %v2423_v37  ;;  %v6097_v59 = vld [vmem:[%s8926_s3 + $0x20] ss:$16 sps:$4 sm:$0xff]   ;;  %v6129_v47 = vld [vmem:[%s8926_s3 + $0x2e4] ss:$16 sps:$4 sm:$0xff]  }
 0x15b   :  { %3145 = vmatmul.mubr.bf16.gmra.mxu1 %v6913_v56  ;;  %v2500_v30 = vadd.f32 %v2499_v1, %v2427_v48  ;;  %3046 = vmatpush2.bf16.msra.mxu0 %v6082_v29  ;;  %v2486_v56 = vadd.f32 %v2485_v31, %v2413_v7  ;;  %v2578_v53 = vpop.f32.mrf.mxu1  ;;  %v3210_v48 = vrot.slane %v7815_v61, %v8936_v16  ;;  %v6127_v7 = vld [vmem:[%s8926_s3 + $0x2e0] ss:$16 sps:$4 sm:$0xff]  }
 0x15c   :  { %4378 = vmatpush1.bf16.msra.mxu1 %v6085_v33  ;;  %v2501_v38 = vpop.f32.mrf.mxu0  ;;  %3047 = vmatprep.subr.bf16.mxu0 %v6090_v60  ;;  %v2549_v60 = vadd.f32 %v7644_v15, %v2476_v3  ;;  %v2569_v50 = vadd.f32 %v7782_v46, %v2496_v27  ;;  %v6100_v15 = vld [vmem:[%s8926_s3] ss:$16 sps:$4 sm:$0xff]  }
 0x15d   :  { %4379 = vmatprep.subr.bf16.mxu1 %v6093_v62  ;;  %v2502_v17 = vadd.f32 %v2501_v38, %v2429_v2  ;;  %v2573_v31 = vadd.f32 %v2572_v49, %v2500_v30  ;;  %5301 = vmatprep.mubr.msk.bf16.mxu1 %vm2257_vm0, %v6927_v63  ;;  %v2545_v62 = vadd.f32 %v7610_v43, %v2472_v24  ;;  %v6105_v2 = vld [vmem:[%s8926_s3 + $0x1e4] ss:$16 sps:$4 sm:$0xff]   ;;  %v6136_v3 = vld [vmem:[%s8926_s3 + $0x280] ss:$16 sps:$4 sm:$0xff]  }
 0x15e   :  { %v2503_v29 = vpop.f32.mrf.mxu0  ;;  %v2559_v63 = vadd.f32 %v7705_v23, %v2486_v56  ;;  %v2567_v43 = vadd.f32 %v7756_v19, %v2494_v10  ;;  %v8945_v49 = vmax.f32 %v7759_v32, %v7763_v52  ;;  %v6102_v19 = vld [vmem:[%s8926_s3 + $0x4] ss:$16 sps:$4 sm:$0xff]   ;;  %v8946_v24 = vmax.f32 %v7785_v28, %v7788_v39  ;;  %v6130_v28 = vld [vmem:[%s8926_s3 + $0x2c0] ss:$16 sps:$4 sm:$0xff]  }
 0x15f   :  { %v3177_v33 = vmax.f32 %v2563_v9, %v2573_v31  ;;  %v2504_v45 = vadd.f32 %v2503_v29, %v2431_v51  ;;  %v2575_v21 = vadd.f32 %v2574_v20, %v2502_v17  ;;  %3048 = vmatpush2.bf16.msra.mxu0 %v6088_v35  ;;  %v3166_v13 = vmax.f32 %v2545_v62, %v2555_v4  ;;  %v6103_v39 = vld [vmem:[%s8926_s3 + $0x1e0] ss:$16 sps:$4 sm:$0xff]   ;;  %v6111_v9 = vld [vmem:[%s8926_s3 + $0x1a4] ss:$16 sps:$4 sm:$0xff]  }
 0x160   :  { %4380 = vmatpush1.bf16.msra.mxu1 %v6091_v36  ;;  %v2505_v44 = vpop.f32.mrf.mxu0  ;;  %3049 = vmatprep.subr.bf16.mxu0 %v6096_v26  ;;  %v3172_v37 = vmax.f32 %v2549_v60, %v2559_v63  ;;  %v6106_v26 = vld [vmem:[%s8926_s3 + $0x1c0] ss:$16 sps:$4 sm:$0xff]   ;;  %v6138_v17 = vld [vmem:[%s8926_s3 + $0x284] ss:$16 sps:$4 sm:$0xff]  }
 0x161   :  { %4381 = vmatprep.subr.bf16.mxu1 %v6099_v8  ;;  %v3189_v6 = vmax.f32 %v8945_v49, %v3177_v33  ;;  %v3178_v22 = vmax.f32 %v2565_v12, %v2575_v21  ;;  %v2506_v23 = vadd.f32 %v2505_v44, %v2433_v40  ;;  %v2577_v20 = vadd.f32 %v2576_v54, %v2504_v45  ;;  %v6133_v8 = vld [vmem:[%s8926_s3 + $0x2a0] ss:$16 sps:$4 sm:$0xff]   ;;  %v6117_v33 = vld [vmem:[%s8926_s3 + $0x164] ss:$16 sps:$4 sm:$0xff]  }
 0x162   :  { %v6109_v62 = vld [vmem:[%s8926_s3 + $0x1a0] ss:$16 sps:$4 sm:$0xff]   ;;  %v6144_v45 = vld [vmem:[%s8926_s3 + $0x244] ss:$16 sps:$4 sm:$0xff]  }
 0x163   :  { %3155 = vmatmul.mubr.bf16.gmra.mxu1 %v6947_v11  ;;  %v3190_v57 = vmax.f32 %v3166_v13, %v3178_v22  ;;  %v3183_v32 = vmax.f32 %v2567_v43, %v2577_v20  ;;  %v2579_v52 = vadd.f32 %v2578_v53, %v2506_v23  ;;  %3050 = vmatpush2.bf16.msra.mxu0 %v6094_v14  ;;  %v6132_v11 = vld [vmem:[%s8926_s3 + $0x2c4] ss:$16 sps:$4 sm:$0xff]   ;;  %v6112_v27 = vld [vmem:[%s8926_s3 + $0x180] ss:$16 sps:$4 sm:$0xff]  }
 0x164   :  { %4382 = vmatpush1.bf16.msra.mxu1 %v6097_v59  ;;  %4412 = vmatprep.subr.bf16.mxu0 %v6129_v47  ;;  %v3233_v46 = vadd.f32 %v7841_v58, %v3189_v6  ;;  %v6139_v29 = vld [vmem:[%s8926_s3 + $0x260] ss:$16 sps:$4 sm:$0xff]   ;;  %v6123_v59 = vld [vmem:[%s8926_s3 + $0x124] ss:$16 sps:$4 sm:$0xff]  }
 0x165   :  { %v3195_v25 = vmax.f32 %v8946_v24, %v3183_v32  ;;  %v3184_v1 = vmax.f32 %v2569_v50, %v2579_v52  ;;  %4383 = vmatprep.subr.bf16.mxu1 %v6102_v19  ;;  %v3234_v35 = vadd.f32 %v3210_v48, %v3190_v57  ;;  %v6115_v14 = vld [vmem:[%s8926_s3 + $0x160] ss:$16 sps:$4 sm:$0xff]   ;;  %v6150_v47 = vld [vmem:[%s8926_s3 + $0x204] ss:$16 sps:$4 sm:$0xff]  }
 0x166   :  { %3052 = vmatmul.mubr.bf16.vlgmr.msra.gmra.mxu0 %v6966_v18  ;;  %v6135_v18 = vld [vmem:[%s8926_s3 + $0x2a4] ss:$16 sps:$4 sm:$0xff]   ;;  %v6142_v63 = vld [vmem:[%s8926_s3 + $0x240] ss:$16 sps:$4 sm:$0xff]  }
 0x167   :  { %v3239_v51 = vadd.f32 %v7841_v58, %v3195_v25  ;;  %v3196_v30 = vmax.f32 %v3172_v37, %v3184_v1  ;;  %3061 = vmatprep.mubr.bf16.mxu0 %v6981_v5  ;;  %4413 = vmatpush1.bf16.msra.mxu0 %v6127_v7  ;;  %v3245_v58 = vmax.f32 %v3233_v46, 0.0  ;;  %v6108_v5 = vld [vmem:[%s8926_s3 + $0x1c4] ss:$16 sps:$4 sm:$0xff]   ;;  %v7930_v56 = vpop.f32.mrf.mxu1  ;;  %v3246_v38 = vmax.f32 %v3234_v35, 0.0  ;;  %v6118_v43 = vld [vmem:[%s8926_s3 + $0x140] ss:$16 sps:$4 sm:$0xff]  }
 0x168   :  { %4384 = vmatpush1.bf16.msra.mxu1 %v6100_v15  ;;  %4414 = vmatprep.subr.bf16.mxu0 %v6132_v11  ;;  %v6145_v53 = vld [vmem:[%s8926_s3 + $0x220] ss:$16 sps:$4 sm:$0xff]   ;;  %v6126_v20 = vld [vmem:[%s8926_s3 + $0x104] ss:$16 sps:$4 sm:$0xff]  }
 0x169   :  { %v3251_v36 = vmax.f32 %v3239_v51, 0.0  ;;  %4385 = vmatprep.subr.bf16.mxu1 %v6105_v2  ;;  %v3240_v4 = vadd.f32 %v3210_v48, %v3196_v30  ;;  %v7949_v31 = vpop.f32.mrf.mxu1  ;;  %v8949_v49 = vld [vmem:[#allocation2_spill] sm:$0xff] }
 0x16a   :  { %v6121_v6 = vld [vmem:[%s8926_s3 + $0x120] ss:$16 sps:$4 sm:$0xff]   ;;  %v6153_v19 = vld [vmem:[%s8926_s3 + $0x3e4] ss:$16 sps:$4 sm:$0xff]  }
 0x16b   :  { %v7932_v10 = vpack.c.bf16 %v3251_v36, %v3245_v58  ;;  %v3252_v54 = vmax.f32 %v3240_v4, 0.0  ;;  %4415 = vmatpush1.bf16.msra.mxu0 %v6130_v28  ;;  %v7965_v12 = vpop.f32.mrf.mxu1  ;;  %v6148_v23 = vld [vmem:[%s8926_s3 + $0x200] ss:$16 sps:$4 sm:$0xff]   ;;  %v6156_v52 = vld [vmem:[%s8926_s3 + $0x3c4] ss:$16 sps:$4 sm:$0xff]  }
 0x16c   :  { %4386 = vmatpush2.bf16.msra.mxu1 %v6103_v39  ;;  %4416 = vmatprep.subr.bf16.mxu0 %v6135_v18  ;;  %v6124_v50 = vld [vmem:[%s8926_s3 + $0x100] ss:$16 sps:$4 sm:$0xff]   ;;  %v6159_v46 = vld [vmem:[%s8926_s3 + $0x3a4] ss:$16 sps:$4 sm:$0xff]  }
 0x16d   :  { %8947 = vst [vmem:[#allocation3_spill] sm:$0xff] %v7932_v10  ;;  %4387 = vmatprep.subr.bf16.mxu1 %v6108_v5  ;;  %v7940_v40 = vpack.c.bf16 %v3252_v54, %v3246_v38  ;;  %v7980_v21 = vpop.f32.mrf.mxu1  ;;  %v6151_v32 = vld [vmem:[%s8926_s3 + $0x3e0] ss:$16 sps:$4 sm:$0xff]   ;;  %v6162_v51 = vld [vmem:[%s8926_s3 + $0x384] ss:$16 sps:$4 sm:$0xff]  }
 0x16e   :  { %3062 = vmatmul.mubr.bf16.gmra.mxu0 %v7004_v34  ;;  %v6114_v34 = vld [vmem:[%s8926_s3 + $0x184] ss:$16 sps:$4 sm:$0xff]   ;;  %v6154_v37 = vld [vmem:[%s8926_s3 + $0x3c0] ss:$16 sps:$4 sm:$0xff]  }
 0x16f   :  { %8948 = vst [vmem:[#allocation4_spill] sm:$0xff] %v7940_v40  ;;  %4401 = vmatprep.mubr.bf16.mxu1 %v7940_v40  ;;  %3071 = vmatprep.mubr.bf16.mxu0 %v7018_v41  ;;  %v6141_v41 = vld [vmem:[%s8926_s3 + $0x264] ss:$16 sps:$4 sm:$0xff]   ;;  %v7986_v13 = vpop.f32.mrf.mxu1  ;;  %v6157_v2 = vld [vmem:[%s8926_s3 + $0x3a0] ss:$16 sps:$4 sm:$0xff]  }
 0x170   :  { %4388 = vmatpush2.bf16.msra.mxu1 %v6106_v26  ;;  %4417 = vmatpush1.bf16.msra.mxu0 %v6133_v8  ;;  %v6160_v39 = vld [vmem:[%s8926_s3 + $0x380] ss:$16 sps:$4 sm:$0xff]   ;;  %v6165_v18 = vld [vmem:[%s8926_s3 + $0x364] ss:$16 sps:$4 sm:$0xff]  }
 0x171   :  { %4389 = vmatprep.subr.bf16.mxu1 %v6111_v9  ;;  %4418 = vmatprep.subr.bf16.mxu0 %v6138_v17  ;;  %v8000_v44 = vpop.f32.mrf.mxu1  ;;  %v6163_v4 = vld [vmem:[%s8926_s3 + $0x360] ss:$16 sps:$4 sm:$0xff]   ;;  %v6225_v54 = vld [vmem:[%s8926_s3 + $0x4e4] ss:$16 sps:$4 sm:$0xff]  }
 0x172   :  { %v6223_v38 = vld [vmem:[%s8926_s3 + $0x4e0] ss:$16 sps:$4 sm:$0xff]   ;;  %v6168_v26 = vld [vmem:[%s8926_s3 + $0x344] ss:$16 sps:$4 sm:$0xff]  }
 0x173   :  { %v8015_v22 = vpop.f32.mrf.mxu1  ;;  %v6231_v8 = vld [vmem:[%s8926_s3 + $0x4c4] ss:$16 sps:$4 sm:$0xff]   ;;  %v6229_v17 = vld [vmem:[%s8926_s3 + $0x4c0] ss:$16 sps:$4 sm:$0xff]  }
 0x174   :  { %4390 = vmatpush2.bf16.msra.mxu1 %v6109_v62  ;;  %4419 = vmatpush1.bf16.msra.mxu0 %v6136_v3 }
 0x175   :  { %4391 = vmatprep.subr.bf16.mxu1 %v6114_v34  ;;  %4420 = vmatprep.subr.bf16.mxu0 %v6141_v41  ;;  %v8033_v57 = vpop.f32.mrf.mxu1  ;;  %v6166_v34 = vld [vmem:[%s8926_s3 + $0x340] ss:$16 sps:$4 sm:$0xff]   ;;  %v6171_v41 = vld [vmem:[%s8926_s3 + $0x324] ss:$16 sps:$4 sm:$0xff]  }
 0x176   :  { %3072 = vmatmul.mubr.bf16.gmra.mxu0 %v7040_v55  ;;  %v6120_v55 = vld [vmem:[%s8926_s3 + $0x144] ss:$16 sps:$4 sm:$0xff]  }
 0x177   :  { %3081 = vmatprep.mubr.bf16.mxu0 %v7054_v0  ;;  %v6147_v0 = vld [vmem:[%s8926_s3 + $0x224] ss:$16 sps:$4 sm:$0xff]   ;;  %v8045_v11 = vpop.f32.mrf.mxu1 }
 0x178   :  { %4392 = vmatpush2.bf16.msra.mxu1 %v6112_v27  ;;  %4421 = vmatpush1.bf16.msra.mxu0 %v6139_v29 }
 0x179   :  { %4393 = vmatprep.subr.bf16.mxu1 %v6117_v33  ;;  %4422 = vmatprep.subr.bf16.mxu0 %v6144_v45  ;;  %v8058_v1 = vpop.f32.mrf.mxu1  ;;  %v6169_v45 = vld [vmem:[%s8926_s3 + $0x320] ss:$16 sps:$4 sm:$0xff]  }
 0x17b   :  { %v8070_v28 = vpop.f32.mrf.mxu1 }
 0x17c   :  { %4394 = vmatpush2.bf16.msra.mxu1 %v6115_v14  ;;  %4423 = vmatpush1.bf16.msra.mxu0 %v6142_v63  ;;  %v6174_v14 = vld [vmem:[%s8926_s3 + $0x304] ss:$16 sps:$4 sm:$0xff]  }
 0x17d   :  { %4395 = vmatprep.subr.bf16.mxu1 %v6120_v55  ;;  %4424 = vmatprep.subr.bf16.mxu0 %v6147_v0  ;;  %v8082_v5 = vpop.f32.mrf.mxu1  ;;  %v6172_v0 = vld [vmem:[%s8926_s3 + $0x300] ss:$16 sps:$4 sm:$0xff]  }
 0x17e   :  { %3082 = vmatmul.mubr.bf16.gmra.mxu0 %v8949_v49 }
 0x17f   :  { %v8106_v3 = vpop.f32.mrf.mxu1 }
 0x180   :  { %4396 = vmatpush2.bf16.msra.mxu1 %v6118_v43  ;;  %4425 = vmatpush1.bf16.msra.mxu0 %v6145_v53  ;;  %v6177_v43 = vld [vmem:[%s8926_s3 + $0xec] ss:$16 sps:$4 sm:$0xff]  }
 0x181   :  { %4397 = vmatprep.subr.bf16.mxu1 %v6123_v59  ;;  %4426 = vmatprep.subr.bf16.mxu0 %v6150_v47  ;;  %v8116_v29 = vpop.f32.mrf.mxu1 }
 0x182   :  { %v8026_v60 = vpop.f32.mrf.mxu0 }
 0x183   :  { %v8126_v63 = vpop.f32.mrf.mxu1 }
 0x184   :  { %4398 = vmatpush2.bf16.msra.mxu1 %v6121_v6  ;;  %v8028_v48 = vpop.f32.mrf.mxu0  ;;  %4427 = vmatpush1.bf16.msra.mxu0 %v6148_v23  ;;  %v6237_v6 = vld [vmem:[%s8926_s3 + $0x4a4] ss:$16 sps:$4 sm:$0xff]   ;;  %v6235_v23 = vld [vmem:[%s8926_s3 + $0x4a0] ss:$16 sps:$4 sm:$0xff]  }
 0x185   :  { %4399 = vmatprep.subr.bf16.mxu1 %v6126_v20  ;;  %4428 = vmatprep.subr.bf16.mxu0 %v6153_v19  ;;  %v8136_v53 = vpop.f32.mrf.mxu1 }
 0x186   :  { %v8041_v7 = vpop.f32.mrf.mxu0 }
 0x188   :  { %4400 = vmatpush2.bf16.msra.mxu1 %v6124_v50  ;;  %v8043_v15 = vpop.f32.mrf.mxu0  ;;  %4429 = vmatpush2.bf16.msra.mxu0 %v6151_v32 }
 0x189   :  { %4430 = vmatprep.subr.bf16.mxu0 %v6156_v52  ;;  %4455 = vmatprep.subr.bf16.mxu1 %v6225_v54  ;;  %v6243_v52 = vld [vmem:[%s8926_s3 + $0x484] ss:$16 sps:$4 sm:$0xff]  }
 0x18a   :  { %v8053_v24 = vpop.f32.mrf.mxu0 }
 0x18b   :  { %4402 = vmatmul.mubr.bf16.vlgmr.msra.gmra.mxu1 %v7932_v10 }
 0x18c   :  { %v8056_v25 = vpop.f32.mrf.mxu0  ;;  %4431 = vmatpush2.bf16.msra.mxu0 %v6154_v37  ;;  %4456 = vmatpush1.bf16.msra.mxu1 %v6223_v38  ;;  %v6241_v37 = vld [vmem:[%s8926_s3 + $0x480] ss:$16 sps:$4 sm:$0xff]  }
 0x18d   :  { %4432 = vmatprep.subr.bf16.mxu0 %v6159_v46  ;;  %4457 = vmatprep.subr.bf16.mxu1 %v6231_v8  ;;  %v2701_v16 = vadd.f32 %v8056_v25, %v8000_v44  ;;  %v6265_v44 = vld [vmem:[%s8926_s3 + $0x400] ss:$16 sps:$4 sm:$0xff]  }
 0x18e   :  { %v8066_v30 = vpop.f32.mrf.mxu0 }
 0x190   :  { %v8068_v35 = vpop.f32.mrf.mxu0  ;;  %4433 = vmatpush2.bf16.msra.mxu0 %v6157_v2  ;;  %4458 = vmatpush1.bf16.msra.mxu1 %v6229_v17  ;;  %v6255_v17 = vld [vmem:[%s8926_s3 + $0x444] ss:$16 sps:$4 sm:$0xff]  }
 0x191   :  { %4434 = vmatprep.subr.bf16.mxu0 %v6162_v51  ;;  %4459 = vmatprep.subr.bf16.mxu1 %v6237_v6  ;;  %v6259_v6 = vld [vmem:[%s8926_s3 + $0x420] ss:$16 sps:$4 sm:$0xff]  }
 0x192   :  { %v8078_v58 = vpop.f32.mrf.mxu0 }
 0x194   :  { %v8080_v36 = vpop.f32.mrf.mxu0  ;;  %4435 = vmatpush2.bf16.msra.mxu0 %v6160_v39  ;;  %4460 = vmatpush1.bf16.msra.mxu1 %v6235_v23 }
 0x195   :  { %4436 = vmatprep.subr.bf16.mxu0 %v6165_v18  ;;  %4461 = vmatprep.subr.bf16.mxu1 %v6243_v52  ;;  %v6249_v18 = vld [vmem:[%s8926_s3 + $0x464] ss:$16 sps:$4 sm:$0xff]  }
 0x196   :  { %v8099_v9 = vpop.f32.mrf.mxu0 }
 0x198   :  { %v8104_v62 = vpop.f32.mrf.mxu0  ;;  %4437 = vmatpush2.bf16.msra.mxu0 %v6163_v4  ;;  %4462 = vmatpush1.bf16.msra.mxu1 %v6241_v37  ;;  %v6247_v4 = vld [vmem:[%s8926_s3 + $0x460] ss:$16 sps:$4 sm:$0xff]   ;;  %v8940_v37 = vsub.s32 2, %v7790_v42 }
 0x199   :  { %4438 = vmatprep.subr.bf16.mxu0 %v6168_v26  ;;  %4463 = vmatprep.subr.bf16.mxu1 %v6249_v18  ;;  %v8939_v18 = vsub.s32 3, %v7790_v42 }
 0x19a   :  { %v8114_v27 = vpop.f32.mrf.mxu0 }
 0x19c   :  { %v8118_v33 = vpop.f32.mrf.mxu0  ;;  %4439 = vmatpush2.bf16.msra.mxu0 %v6166_v34  ;;  %4464 = vmatpush1.bf16.msra.mxu1 %v6247_v4  ;;  %v6253_v34 = vld [vmem:[%s8926_s3 + $0x440] ss:$16 sps:$4 sm:$0xff]   ;;  %v2689_v4 = vadd.f32 %v8026_v60, %v7930_v56  ;;  %v2699_v56 = vadd.f32 %v8053_v24, %v7986_v13  ;;  %v2709_v60 = vadd.f32 %v8078_v58, %v8045_v11 }
 0x19d   :  { %4440 = vmatprep.subr.bf16.mxu0 %v6171_v41  ;;  %4465 = vmatprep.subr.bf16.mxu1 %v6255_v17  ;;  %v2691_v17 = vadd.f32 %v8028_v48, %v7949_v31  ;;  %v2703_v31 = vadd.f32 %v8066_v30, %v8015_v22  ;;  %v2711_v48 = vadd.f32 %v8080_v36, %v8058_v1 }
 0x19e   :  { %v8128_v55 = vpop.f32.mrf.mxu0  ;;  %v2713_v22 = vadd.f32 %v8099_v9, %v8070_v28  ;;  %v2719_v24 = vadd.f32 %v8114_v27, %v8106_v3  ;;  %v2721_v11 = vadd.f32 %v8118_v33, %v8116_v29  ;;  %v6273_v28 = vld [vmem:[%s8926_s3 + $0x584] ss:$16 sps:$4 sm:$0xff]   ;;  %v6271_v3 = vld [vmem:[%s8926_s3 + $0x580] ss:$16 sps:$4 sm:$0xff]  }
 0x19f   :  { %v2723_v36 = vadd.f32 %v8128_v55, %v8126_v63 }
 0x1a0   :  { %4441 = vmatpush2.bf16.msra.mxu0 %v6169_v45  ;;  %v8138_v59 = vpop.f32.mrf.mxu0  ;;  %4466 = vmatpush1.bf16.msra.mxu1 %v6253_v34  ;;  %v2693_v34 = vadd.f32 %v8041_v7, %v7965_v12  ;;  %v2705_v12 = vadd.f32 %v8068_v35, %v8033_v57  ;;  %v2715_v57 = vadd.f32 %v8104_v62, %v8082_v5 }
 0x1a1   :  { %4442 = vmatprep.subr.bf16.mxu0 %v6174_v14  ;;  %v2725_v5 = vadd.f32 %v8138_v59, %v8136_v53 }
 0x1a4   :  { %4443 = vmatpush2.bf16.msra.mxu0 %v6172_v0 }
 0x1a5   :  { %4498 = vmatprep.subr.bf16.mxu0 %v6177_v43  ;;  %v6261_v43 = vld [vmem:[%s8926_s3 + $0x424] ss:$16 sps:$4 sm:$0xff]  }
 0x1a6   :  { %v8140_v49 = vpop.f32.mrf.mxu0  ;;  %4467 = vmatprep.subr.bf16.mxu1 %v6261_v43  ;;  %v6267_v43 = vld [vmem:[%s8926_s3 + $0x404] ss:$16 sps:$4 sm:$0xff]  }
 0x1a7   :  { %v2761_v47 = vpop.f32.mrf.mxu1  ;;  %4468 = vmatpush1.bf16.msra.mxu1 %v6259_v6  ;;  %v2695_v6 = vadd.f32 %v8043_v15, %v7980_v21 }
 0x1a8   :  { %v8148_v19 = vpop.f32.mrf.mxu0  ;;  %v2762_v21 = vadd.f32 %v2761_v47, %v2689_v4  ;;  %4469 = vmatprep.subr.bf16.mxu1 %v6267_v43 }
 0x1a9   :  { %v2763_v20 = vpop.f32.mrf.mxu1 }
 0x1aa   :  { %v8152_v32 = vpop.f32.mrf.mxu0  ;;  %v2764_v25 = vadd.f32 %v2763_v20, %v2691_v17  ;;  %v2835_v27 = vadd.f32 %v8140_v49, %v2762_v21  ;;  %v6277_v17 = vld [vmem:[%s8926_s3 + $0x560] ss:$16 sps:$4 sm:$0xff]  }
 0x1ab   :  { %v8150_v50 = vpop.f32.mrf.mxu1  ;;  %4470 = vmatpush1.bf16.msra.mxu1 %v6265_v44 }
 0x1ac   :  { %v8162_v2 = vpop.f32.mrf.mxu0  ;;  %v2766_v29 = vadd.f32 %v8150_v50, %v2693_v34  ;;  %4477 = vmatprep.subr.bf16.mxu1 %v6273_v28  ;;  %v2837_v63 = vadd.f32 %v8148_v19, %v2764_v25  ;;  %v6297_v28 = vld [vmem:[%s8926_s3 + $0x504] ss:$16 sps:$4 sm:$0xff]  }
 0x1ad   :  { %v8160_v46 = vpop.f32.mrf.mxu1 }
 0x1ae   :  { %v8164_v39 = vpop.f32.mrf.mxu0  ;;  %v2768_v59 = vadd.f32 %v8160_v46, %v2695_v6  ;;  %v2839_v46 = vadd.f32 %v8152_v32, %v2766_v29  ;;  %v3218_v32 = vrot.slane %v7815_v61, %v8939_v18 }
 0x1af   :  { %v2771_v51 = vpop.f32.mrf.mxu1  ;;  %4478 = vmatpush2.bf16.msra.mxu1 %v6271_v3 }
 0x1b0   :  { %v2846_v54 = vpop.f32.mrf.mxu0  ;;  %v2772_v1 = vadd.f32 %v2771_v51, %v2699_v56 }
 0x1b1   :  { %v2773_v38 = vpop.f32.mrf.mxu1 }
 0x1b2   :  { %v8172_v8 = vpop.f32.mrf.mxu0  ;;  %v2774_v7 = vadd.f32 %v2773_v38, %v2701_v16 }
 0x1b3   :  { %v2775_v26 = vpop.f32.mrf.mxu1 }
 0x1b4   :  { %v8180_v45 = vpop.f32.mrf.mxu0  ;;  %v2776_v30 = vadd.f32 %v2775_v26, %v2703_v31  ;;  %v2847_v33 = vadd.f32 %v2846_v54, %v2774_v7  ;;  %v2845_v26 = vadd.f32 %v8164_v39, %v2772_v1  ;;  %v6279_v54 = vld [vmem:[%s8926_s3 + $0x564] ss:$16 sps:$4 sm:$0xff]  }
 0x1b5   :  { %v2777_v41 = vpop.f32.mrf.mxu1  ;;  %4479 = vmatprep.subr.bf16.mxu1 %v6279_v54 }
 0x1b6   :  { %v2854_v0 = vpop.f32.mrf.mxu0  ;;  %v2778_v47 = vadd.f32 %v2777_v41, %v2705_v12  ;;  %v3168_v39 = vmax.f32 %v2837_v63, %v2847_v33  ;;  %4480 = vmatpush2.bf16.msra.mxu1 %v6277_v17  ;;  %v2841_v12 = vadd.f32 %v8162_v2, %v2768_v59  ;;  %v3167_v44 = vmax.f32 %v2835_v27, %v2845_v26  ;;  %v6175_v27 = vld [vmem:[%s8926_s3 + $0xe8] ss:$16 sps:$4 sm:$0xff]   ;;  %v6180_v33 = vld [vmem:[%s8926_s3 + $0xcc] ss:$16 sps:$4 sm:$0xff]  }
 0x1b7   :  { %v2781_v14 = vpop.f32.mrf.mxu1  ;;  %v3214_v2 = vrot.slane %v7815_v61, %v8940_v37  ;;  %v6183_v63 = vld [vmem:[%s8926_s3 + $0xac] ss:$16 sps:$4 sm:$0xff]   ;;  %v6187_v26 = vld [vmem:[%s8926_s3 + $0x68] ss:$16 sps:$4 sm:$0xff]  }
 0x1b8   :  { %v2856_v52 = vpop.f32.mrf.mxu0  ;;  %v2782_v16 = vadd.f32 %v2781_v14, %v2709_v60  ;;  %v2849_v14 = vadd.f32 %v8172_v8, %v2776_v30  ;;  %v2851_v8 = vadd.f32 %v8180_v45, %v2778_v47  ;;  %v6285_v45 = vld [vmem:[%s8926_s3 + $0x544] ss:$16 sps:$4 sm:$0xff]   ;;  %v6303_v47 = vld [vmem:[%s8926_s3 + $0x2ec] ss:$16 sps:$4 sm:$0xff]  }
 0x1b9   :  { %v2783_v23 = vpop.f32.mrf.mxu1  ;;  %4481 = vmatprep.subr.bf16.mxu1 %v6285_v45  ;;  %v6189_v59 = vld [vmem:[%s8926_s3 + $0x6c] ss:$16 sps:$4 sm:$0xff]  }
 0x1ba   :  { %v2858_v40 = vpop.f32.mrf.mxu0  ;;  %v2784_v9 = vadd.f32 %v2783_v23, %v2711_v48  ;;  %v2855_v49 = vadd.f32 %v2854_v0, %v2782_v16  ;;  %v3173_v60 = vmax.f32 %v2839_v46, %v2849_v14  ;;  %v6289_v16 = vld [vmem:[%s8926_s3 + $0x520] ss:$16 sps:$4 sm:$0xff]   ;;  %v6192_v14 = vld [vmem:[%s8926_s3 + $0x4c] ss:$16 sps:$4 sm:$0xff]   ;;  %v6196_v46 = vld [vmem:[%s8926_s3 + $0x8] ss:$16 sps:$4 sm:$0xff]  }
 0x1bb   :  { %v2785_v10 = vpop.f32.mrf.mxu1 }
 0x1bc   :  { %v2860_v13 = vpop.f32.mrf.mxu0  ;;  %v2786_v55 = vadd.f32 %v2785_v10, %v2713_v22  ;;  %v2857_v41 = vadd.f32 %v2856_v52, %v2784_v9  ;;  %v6295_v9 = vld [vmem:[%s8926_s3 + $0x500] ss:$16 sps:$4 sm:$0xff]  }
 0x1bd   :  { %v2787_v15 = vpop.f32.mrf.mxu1 }
 0x1be   :  { %v2864_v58 = vpop.f32.mrf.mxu0  ;;  %v2788_v4 = vadd.f32 %v2787_v15, %v2715_v57  ;;  %v2859_v6 = vadd.f32 %v2858_v40, %v2786_v55  ;;  %v6283_v15 = vld [vmem:[%s8926_s3 + $0x540] ss:$16 sps:$4 sm:$0xff]   ;;  %v3174_v57 = vmax.f32 %v2841_v12, %v2851_v8  ;;  %v6181_v55 = vld [vmem:[%s8926_s3 + $0xa8] ss:$16 sps:$4 sm:$0xff]   ;;  %v6201_v8 = vld [vmem:[%s8926_s3 + $0x1ec] ss:$16 sps:$4 sm:$0xff]  }
 0x1bf   :  { %v2791_v35 = vpop.f32.mrf.mxu1  ;;  %4482 = vmatpush2.bf16.msra.mxu1 %v6283_v15  ;;  %v6202_v12 = vld [vmem:[%s8926_s3 + $0x1c8] ss:$16 sps:$4 sm:$0xff]  }
 0x1c0   :  { %v2792_v62 = vadd.f32 %v2791_v35, %v2719_v24  ;;  %v2866_v51 = vpop.f32.mrf.mxu0  ;;  %v2861_v48 = vadd.f32 %v2860_v13, %v2788_v4  ;;  %v6291_v13 = vld [vmem:[%s8926_s3 + $0x524] ss:$16 sps:$4 sm:$0xff]  }
 0x1c1   :  { %v2793_v20 = vpop.f32.mrf.mxu1  ;;  %4483 = vmatprep.subr.bf16.mxu1 %v6291_v13 }
 0x1c2   :  { %v2794_v38 = vadd.f32 %v2793_v20, %v2721_v11  ;;  %v2865_v53 = vadd.f32 %v2864_v58, %v2792_v62  ;;  %v2868_v50 = vpop.f32.mrf.mxu0  ;;  %v8952_v20 = vld [vmem:[#allocation4_spill] sm:$0xff] }
 0x1c3   :  { %v2795_v23 = vpop.f32.mrf.mxu1  ;;  %4484 = vmatpush2.bf16.msra.mxu1 %v6289_v16 }
 0x1c4   :  { %v2796_v19 = vadd.f32 %v2795_v23, %v2723_v36  ;;  %v2867_v10 = vadd.f32 %v2866_v51, %v2794_v38  ;;  %v3179_v0 = vmax.f32 %v2855_v49, %v2865_v53  ;;  %v2870_v43 = vpop.f32.mrf.mxu0  ;;  %4485 = vmatprep.subr.bf16.mxu1 %v6297_v28  ;;  %v6178_v51 = vld [vmem:[%s8926_s3 + $0xc8] ss:$16 sps:$4 sm:$0xff]   ;;  %v6186_v38 = vld [vmem:[%s8926_s3 + $0x8c] ss:$16 sps:$4 sm:$0xff]  }
 0x1c5   :  { %v2797_v34 = vpop.f32.mrf.mxu1  ;;  %v6184_v53 = vld [vmem:[%s8926_s3 + $0x88] ss:$16 sps:$4 sm:$0xff]  }
 0x1c6   :  { %v3180_v56 = vmax.f32 %v2857_v41, %v2867_v10  ;;  %v2798_v31 = vadd.f32 %v2797_v34, %v2725_v5  ;;  %v2869_v52 = vadd.f32 %v2868_v50, %v2796_v19  ;;  %v3191_v22 = vmax.f32 %v3167_v44, %v3179_v0  ;;  %v6190_v49 = vld [vmem:[%s8926_s3 + $0x48] ss:$16 sps:$4 sm:$0xff]   ;;  %v6195_v50 = vld [vmem:[%s8926_s3 + $0x2c] ss:$16 sps:$4 sm:$0xff]  }
 0x1c7   :  { %4486 = vmatpush2.bf16.msra.mxu1 %v6295_v9  ;;  %v6193_v41 = vld [vmem:[%s8926_s3 + $0x28] ss:$16 sps:$4 sm:$0xff]   ;;  %v6198_v10 = vld [vmem:[%s8926_s3 + $0xc] ss:$16 sps:$4 sm:$0xff]  }
 0x1c8   :  { %v3192_v21 = vmax.f32 %v3168_v39, %v3180_v56  ;;  %v3185_v7 = vmax.f32 %v2859_v6, %v2869_v52  ;;  %v2871_v40 = vadd.f32 %v2870_v43, %v2798_v31  ;;  %v3235_v35 = vadd.f32 %v3214_v2, %v3191_v22  ;;  %4541 = vmatprep.subr.bf16.mxu1 %v6303_v47  ;;  %v6199_v43 = vld [vmem:[%s8926_s3 + $0x1e8] ss:$16 sps:$4 sm:$0xff]   ;;  %v6204_v56 = vld [vmem:[%s8926_s3 + $0x1cc] ss:$16 sps:$4 sm:$0xff]  }
 0x1ca   :  { %v3197_v24 = vmax.f32 %v3173_v60, %v3185_v7  ;;  %v3186_v25 = vmax.f32 %v2861_v48, %v2871_v40  ;;  %v3236_v30 = vadd.f32 %v3218_v32, %v3192_v21  ;;  %v3247_v62 = vmax.f32 %v3235_v35, 0.0  ;;  %v6207_v60 = vld [vmem:[%s8926_s3 + $0x1ac] ss:$16 sps:$4 sm:$0xff]   ;;  %v6205_v21 = vld [vmem:[%s8926_s3 + $0x1a8] ss:$16 sps:$4 sm:$0xff]  }
 0x1cb   :  { %v6210_v7 = vld [vmem:[%s8926_s3 + $0x18c] ss:$16 sps:$4 sm:$0xff]   ;;  %v6214_v35 = vld [vmem:[%s8926_s3 + $0x148] ss:$16 sps:$4 sm:$0xff]  }
 0x1cc   :  { %v3241_v11 = vadd.f32 %v3214_v2, %v3197_v24  ;;  %v3198_v1 = vmax.f32 %v3174_v57, %v3186_v25  ;;  %v3248_v36 = vmax.f32 %v3236_v30, 0.0  ;;  %v6208_v2 = vld [vmem:[%s8926_s3 + $0x188] ss:$16 sps:$4 sm:$0xff]   ;;  %v6213_v57 = vld [vmem:[%s8926_s3 + $0x16c] ss:$16 sps:$4 sm:$0xff]  }
 0x1ce   :  { %v3242_v58 = vadd.f32 %v3218_v32, %v3198_v1  ;;  %v3253_v61 = vmax.f32 %v3241_v11, 0.0  ;;  %v6211_v11 = vld [vmem:[%s8926_s3 + $0x168] ss:$16 sps:$4 sm:$0xff]   ;;  %v6216_v1 = vld [vmem:[%s8926_s3 + $0x14c] ss:$16 sps:$4 sm:$0xff]  }
 0x1d0   :  { %v3254_v5 = vmax.f32 %v3242_v58, 0.0  ;;  %v8278_v29 = vpack.c.bf16 %v3253_v61, %v3247_v62  ;;  %v6219_v58 = vld [vmem:[%s8926_s3 + $0x12c] ss:$16 sps:$4 sm:$0xff]  }
 0x1d2   :  { %v8273_v3 = vpack.c.bf16 %v3254_v5, %v3248_v36  ;;  %8951 = vst [vmem:[#allocation5_spill] sm:$0xff] %v8278_v29  ;;  %v6217_v36 = vld [vmem:[%s8926_s3 + $0x128] ss:$16 sps:$4 sm:$0xff]   ;;  %v6222_v5 = vld [vmem:[%s8926_s3 + $0x10c] ss:$16 sps:$4 sm:$0xff]  }
 0x1d4   :  { %8950 = vst [vmem:[#allocation2_spill] sm:$0xff] %v8273_v3  ;;  %4444 = vmatprep.mubr.bf16.mxu0 %v8273_v3 }
 0x1d5   :  { %4445 = vmatmul.mubr.bf16.vlgmr.msra.gmra.mxu0 %v8278_v29 }
 0x1d6   :  { %4499 = vmatpush1.bf16.msra.mxu0 %v6175_v27  ;;  %4530 = vmatprep.mubr.bf16.mxu0 %v8952_v20  ;;  %v6220_v27 = vld [vmem:[%s8926_s3 + $0x108] ss:$16 sps:$4 sm:$0xff]  }
 0x1d7   :  { %4500 = vmatprep.subr.bf16.mxu0 %v6180_v33  ;;  %v6228_v33 = vld [vmem:[%s8926_s3 + $0x4ec] ss:$16 sps:$4 sm:$0xff]  }
 0x1da   :  { %4501 = vmatpush1.bf16.msra.mxu0 %v6178_v51  ;;  %v6226_v51 = vld [vmem:[%s8926_s3 + $0x4e8] ss:$16 sps:$4 sm:$0xff]  }
 0x1db   :  { %4502 = vmatprep.subr.bf16.mxu0 %v6183_v63  ;;  %v6234_v63 = vld [vmem:[%s8926_s3 + $0x4cc] ss:$16 sps:$4 sm:$0xff]  }
 0x1de   :  { %4503 = vmatpush1.bf16.msra.mxu0 %v6181_v55 }
 0x1df   :  { %4504 = vmatprep.subr.bf16.mxu0 %v6186_v38  ;;  %v8953_v38 = vld [vmem:[#allocation3_spill] sm:$0xff] }
 0x1e2   :  { %4505 = vmatpush1.bf16.msra.mxu0 %v6184_v53 }
 0x1e3   :  { %4506 = vmatprep.subr.bf16.mxu0 %v6189_v59  ;;  %v6232_v59 = vld [vmem:[%s8926_s3 + $0x4c8] ss:$16 sps:$4 sm:$0xff]  }
 0x1e6   :  { %4507 = vmatpush1.bf16.msra.mxu0 %v6187_v26  ;;  %v8326_v4 = vpop.f32.mrf.mxu0 }
 0x1e7   :  { %v8316_v23 = vpop.f32.mrf.mxu1  ;;  %4508 = vmatprep.subr.bf16.mxu0 %v6192_v14  ;;  %v6240_v14 = vld [vmem:[%s8926_s3 + $0x4ac] ss:$16 sps:$4 sm:$0xff]  }
 0x1e8   :  { %v8338_v39 = vpop.f32.mrf.mxu0  ;;  %v2981_v37 = vadd.f32 %v8316_v23, %v8326_v4 }
 0x1e9   :  { %v8321_v54 = vpop.f32.mrf.mxu1 }
 0x1ea   :  { %4509 = vmatpush1.bf16.msra.mxu0 %v6190_v49  ;;  %v8350_v6 = vpop.f32.mrf.mxu0 }
 0x1eb   :  { %v8328_v19 = vpop.f32.mrf.mxu1  ;;  %4510 = vmatprep.subr.bf16.mxu0 %v6195_v50  ;;  %v6238_v50 = vld [vmem:[%s8926_s3 + $0x4a8] ss:$16 sps:$4 sm:$0xff]  }
 0x1ec   :  { %v8362_v44 = vpop.f32.mrf.mxu0  ;;  %v2985_v29 = vadd.f32 %v8328_v19, %v8350_v6 }
 0x1ed   :  { %v8333_v17 = vpop.f32.mrf.mxu1 }
 0x1ee   :  { %4511 = vmatpush1.bf16.msra.mxu0 %v6193_v41  ;;  %v8369_v45 = vpop.f32.mrf.mxu0  ;;  %v2987_v18 = vadd.f32 %v8333_v17, %v8362_v44 }
 0x1ef   :  { %4512 = vmatprep.subr.bf16.mxu0 %v6198_v10  ;;  %v8343_v0 = vpop.f32.mrf.mxu1  ;;  %v6246_v10 = vld [vmem:[%s8926_s3 + $0x48c] ss:$16 sps:$4 sm:$0xff]  }
 0x1f0   :  { %v8381_v15 = vpop.f32.mrf.mxu0  ;;  %v2991_v23 = vadd.f32 %v8343_v0, %v8369_v45 }
 0x1f1   :  { %v8345_v34 = vpop.f32.mrf.mxu1 }
 0x1f2   :  { %4513 = vmatpush1.bf16.msra.mxu0 %v6196_v46  ;;  %v8393_v25 = vpop.f32.mrf.mxu0  ;;  %v2993_v3 = vadd.f32 %v8345_v34, %v8381_v15 }
 0x1f3   :  { %4514 = vmatprep.subr.bf16.mxu0 %v6201_v8  ;;  %v8355_v31 = vpop.f32.mrf.mxu1  ;;  %v6244_v8 = vld [vmem:[%s8926_s3 + $0x488] ss:$16 sps:$4 sm:$0xff]  }
 0x1f4   :  { %v8403_v30 = vpop.f32.mrf.mxu0 }
 0x1f5   :  { %v8357_v52 = vpop.f32.mrf.mxu1 }
 0x1f6   :  { %4515 = vmatpush2.bf16.msra.mxu0 %v6199_v43  ;;  %v8413_v61 = vpop.f32.mrf.mxu0  ;;  %v2997_v4 = vadd.f32 %v8357_v52, %v8403_v30  ;;  %v6292_v52 = vld [vmem:[%s8926_s3 + $0x528] ss:$16 sps:$4 sm:$0xff]  }
 0x1f7   :  { %4516 = vmatprep.subr.bf16.mxu0 %v6204_v56  ;;  %v8367_v32 = vpop.f32.mrf.mxu1  ;;  %v6252_v56 = vld [vmem:[%s8926_s3 + $0x46c] ss:$16 sps:$4 sm:$0xff]  }
 0x1f8   :  { %v8425_v62 = vpop.f32.mrf.mxu0  ;;  %v3001_v19 = vadd.f32 %v8367_v32, %v8413_v61 }
 0x1f9   :  { %v8371_v48 = vpop.f32.mrf.mxu1 }
 0x1fa   :  { %4517 = vmatpush2.bf16.msra.mxu0 %v6202_v12  ;;  %v8435_v20 = vpop.f32.mrf.mxu0 }
 0x1fb   :  { %4518 = vmatprep.subr.bf16.mxu0 %v6207_v60  ;;  %v8379_v40 = vpop.f32.mrf.mxu1  ;;  %v6250_v60 = vld [vmem:[%s8926_s3 + $0x468] ss:$16 sps:$4 sm:$0xff]  }
 0x1fc   :  { %v8446_v53 = vpop.f32.mrf.mxu0  ;;  %v3005_v17 = vadd.f32 %v8379_v40, %v8435_v20 }
 0x1fd   :  { %v8383_v22 = vpop.f32.mrf.mxu1 }
 0x1fe   :  { %4519 = vmatpush2.bf16.msra.mxu0 %v6205_v21  ;;  %v8456_v49 = vpop.f32.mrf.mxu0  ;;  %v3007_v0 = vadd.f32 %v8383_v22, %v8446_v53  ;;  %v6300_v22 = vld [vmem:[%s8926_s3 + $0x50c] ss:$16 sps:$4 sm:$0xff]  }
 0x1ff   :  { %4520 = vmatprep.subr.bf16.mxu0 %v6210_v7  ;;  %v8391_v24 = vpop.f32.mrf.mxu1  ;;  %v6258_v7 = vld [vmem:[%s8926_s3 + $0x44c] ss:$16 sps:$4 sm:$0xff]  }
 0x200   :  { %v8466_v46 = vpop.f32.mrf.mxu0 }
 0x201   :  { %v8395_v13 = vpop.f32.mrf.mxu1 }
 0x202   :  { %4521 = vmatpush2.bf16.msra.mxu0 %v6208_v2  ;;  %v8476_v12 = vpop.f32.mrf.mxu0 }
 0x203   :  { %4522 = vmatprep.subr.bf16.mxu0 %v6213_v57  ;;  %v8405_v16 = vpop.f32.mrf.mxu1  ;;  %v6256_v57 = vld [vmem:[%s8926_s3 + $0x448] ss:$16 sps:$4 sm:$0xff]  }
 0x204   :  { %v8486_v2 = vpop.f32.mrf.mxu0 }
 0x205   :  { %v8415_v28 = vpop.f32.mrf.mxu1 }
 0x206   :  { %4523 = vmatpush2.bf16.msra.mxu0 %v6211_v11 }
 0x207   :  { %4524 = vmatprep.subr.bf16.mxu0 %v6216_v1 }
 0x20a   :  { %4525 = vmatpush2.bf16.msra.mxu0 %v6214_v35  ;;  %v6264_v35 = vld [vmem:[%s8926_s3 + $0x42c] ss:$16 sps:$4 sm:$0xff]  }
 0x20b   :  { %4526 = vmatprep.subr.bf16.mxu0 %v6219_v58  ;;  %v8423_v9 = vpop.f32.mrf.mxu1 }
 0x20d   :  { %v8433_v47 = vpop.f32.mrf.mxu1 }
 0x20e   :  { %4527 = vmatpush2.bf16.msra.mxu0 %v6217_v36  ;;  %v6262_v36 = vld [vmem:[%s8926_s3 + $0x428] ss:$16 sps:$4 sm:$0xff]  }
 0x20f   :  { %4528 = vmatprep.subr.bf16.mxu0 %v6222_v5  ;;  %v8443_v55 = vpop.f32.mrf.mxu1 }
 0x211   :  { %v8451_v26 = vpop.f32.mrf.mxu1 }
 0x212   :  { %4529 = vmatpush2.bf16.msra.mxu0 %v6220_v27 }
 0x213   :  { %4584 = vmatprep.subr.bf16.mxu0 %v6228_v33  ;;  %v8461_v41 = vpop.f32.mrf.mxu1  ;;  %v6270_v33 = vld [vmem:[%s8926_s3 + $0x40c] ss:$16 sps:$4 sm:$0xff]  }
 0x215   :  { %4531 = vmatmul.mubr.bf16.vlgmr.msra.gmra.mxu0 %v8953_v38  ;;  %v8471_v43 = vpop.f32.mrf.mxu1 }
 0x216   :  { %4585 = vmatpush1.bf16.msra.mxu0 %v6226_v51 }
 0x217   :  { %4586 = vmatprep.subr.bf16.mxu0 %v6234_v63  ;;  %v8481_v21 = vpop.f32.mrf.mxu1  ;;  %v6268_v63 = vld [vmem:[%s8926_s3 + $0x408] ss:$16 sps:$4 sm:$0xff]  }
 0x219   :  { %v8491_v1 = vpop.f32.mrf.mxu1 }
 0x21a   :  { %4587 = vmatpush1.bf16.msra.mxu0 %v6232_v59 }
 0x21b   :  { %4588 = vmatprep.subr.bf16.mxu0 %v6240_v14  ;;  %v8501_v27 = vpop.f32.mrf.mxu1  ;;  %v6276_v14 = vld [vmem:[%s8926_s3 + $0x58c] ss:$16 sps:$4 sm:$0xff]  }
 0x21d   :  { %v8511_v59 = vpop.f32.mrf.mxu1 }
 0x21e   :  { %4589 = vmatpush1.bf16.msra.mxu0 %v6238_v50 }
 0x21f   :  { %4590 = vmatprep.subr.bf16.mxu0 %v6246_v10  ;;  %v6274_v10 = vld [vmem:[%s8926_s3 + $0x588] ss:$16 sps:$4 sm:$0xff]  }
 0x222   :  { %4591 = vmatpush1.bf16.msra.mxu0 %v6244_v8 }
 0x223   :  { %4592 = vmatprep.subr.bf16.mxu0 %v6252_v56  ;;  %v8519_v56 = vpop.f32.mrf.mxu1 }
 0x226   :  { %4593 = vmatpush1.bf16.msra.mxu0 %v6250_v60  ;;  %v3053_v11 = vpop.f32.mrf.mxu0  ;;  %v6282_v60 = vld [vmem:[%s8926_s3 + $0x56c] ss:$16 sps:$4 sm:$0xff]  }
 0x227   :  { %4594 = vmatprep.subr.bf16.mxu0 %v6258_v7  ;;  %v3054_v34 = vadd.f32 %v3053_v11, %v2981_v37  ;;  %v3013_v37 = vadd.f32 %v8395_v13, %v8466_v46 }
 0x228   :  { %v3055_v58 = vpop.f32.mrf.mxu0 }
 0x229   :  { %v3127_v13 = vadd.f32 %v8423_v9, %v3054_v34 }
 0x22a   :  { %4595 = vmatpush1.bf16.msra.mxu0 %v6256_v57  ;;  %v8499_v5 = vpop.f32.mrf.mxu0  ;;  %v6280_v57 = vld [vmem:[%s8926_s3 + $0x568] ss:$16 sps:$4 sm:$0xff]  }
 0x22b   :  { %4596 = vmatprep.subr.bf16.mxu0 %v6264_v35 }
 0x22c   :  { %v8506_v51 = vpop.f32.mrf.mxu0 }
 0x22e   :  { %4597 = vmatpush1.bf16.msra.mxu0 %v6262_v36  ;;  %v3063_v38 = vpop.f32.mrf.mxu0  ;;  %v8527_v36 = vpop.f32.mrf.mxu1 }
 0x22f   :  { %4598 = vmatprep.subr.bf16.mxu0 %v6270_v33  ;;  %8954 = vst [vmem:[#allocation4_spill] sm:$0xff] %v8527_v36  ;;  %v6288_v33 = vld [vmem:[%s8926_s3 + $0x54c] ss:$16 sps:$4 sm:$0xff]  }
 0x230   :  { %v3065_v50 = vpop.f32.mrf.mxu0  ;;  %v3156_v36 = vpop.f32.mrf.mxu1 }
 0x231   :  { %v3066_v6 = vadd.f32 %v3065_v50, %v2993_v3  ;;  %v3064_v3 = vadd.f32 %v3063_v38, %v2991_v23 }
 0x232   :  { %4599 = vmatpush1.bf16.msra.mxu0 %v6268_v63  ;;  %v3067_v8 = vpop.f32.mrf.mxu0 }
 0x233   :  { %4606 = vmatprep.subr.bf16.mxu0 %v6276_v14  ;;  %v3139_v20 = vadd.f32 %v8471_v43, %v3066_v6  ;;  %v3137_v9 = vadd.f32 %v8461_v41, %v3064_v3 }
 0x234   :  { %v3069_v7 = vpop.f32.mrf.mxu0 }
 0x235   :  { %v3070_v53 = vadd.f32 %v3069_v7, %v2997_v4 }
 0x236   :  { %4607 = vmatpush2.bf16.msra.mxu0 %v6274_v10  ;;  %v3073_v35 = vpop.f32.mrf.mxu0  ;;  %v6286_v10 = vld [vmem:[%s8926_s3 + $0x548] ss:$16 sps:$4 sm:$0xff]  }
 0x237   :  { %4608 = vmatprep.subr.bf16.mxu0 %v6282_v60  ;;  %v2983_v60 = vadd.f32 %v8321_v54, %v8338_v39  ;;  %v2995_v54 = vadd.f32 %v8355_v31, %v8393_v25  ;;  %v3003_v39 = vadd.f32 %v8371_v48, %v8425_v62  ;;  %v3011_v31 = vadd.f32 %v8391_v24, %v8456_v49  ;;  %v3158_v48 = vpop.f32.mrf.mxu1 }
 0x238   :  { %v3075_v63 = vpop.f32.mrf.mxu0  ;;  %v3074_v45 = vadd.f32 %v3073_v35, %v3001_v19  ;;  %v3015_v24 = vadd.f32 %v8405_v16, %v8476_v12  ;;  %v3017_v25 = vadd.f32 %v8415_v28, %v8486_v2  ;;  %v3058_v62 = vadd.f32 %v8499_v5, %v2985_v29  ;;  %v6298_v16 = vld [vmem:[%s8926_s3 + $0x508] ss:$16 sps:$4 sm:$0xff]  }
 0x239   :  { %v3056_v44 = vadd.f32 %v3055_v58, %v2983_v60  ;;  %v3068_v32 = vadd.f32 %v3067_v8, %v2995_v54  ;;  %v3076_v30 = vadd.f32 %v3075_v63, %v3003_v39  ;;  %v3060_v28 = vadd.f32 %v8506_v51, %v2987_v18  ;;  %v3160_v12 = vpop.f32.mrf.mxu1 }
 0x23a   :  { %4609 = vmatpush2.bf16.msra.mxu0 %v6280_v57  ;;  %v3077_v14 = vpop.f32.mrf.mxu0  ;;  %v6294_v57 = vld [vmem:[%s8926_s3 + $0x52c] ss:$16 sps:$4 sm:$0xff]   ;;  %v3147_v43 = vadd.f32 %v8501_v27, %v3074_v45  ;;  %v3131_v7 = vadd.f32 %v8443_v55, %v3058_v62  ;;  %v8955_v55 = vsub.s32 5, %v7790_v42  ;;  %v8957_v39 = vsub.s32 4, %v7790_v42 }
 0x23b   :  { %4610 = vmatprep.subr.bf16.mxu0 %v6288_v33  ;;  %v3129_v46 = vadd.f32 %v8433_v47, %v3056_v44  ;;  %v3078_v11 = vadd.f32 %v3077_v14, %v3005_v17  ;;  %v3141_v29 = vadd.f32 %v8481_v21, %v3068_v32  ;;  %v3149_v47 = vadd.f32 %v8511_v59, %v3076_v30  ;;  %v6304_v30 = vld [vmem:[%s8926_s3 + $0x2c8] ss:$16 sps:$4 sm:$0xff]   ;;  %v6312_v62 = vld [vmem:[%s8926_s3 + $0x28c] ss:$16 sps:$4 sm:$0xff]  }
 0x23c   :  { %v3079_v15 = vpop.f32.mrf.mxu0  ;;  %v3133_v63 = vadd.f32 %v8451_v26, %v3060_v28  ;;  %v3169_v14 = vmax.f32 %v3127_v13, %v3137_v9  ;;  %v6307_v13 = vld [vmem:[%s8926_s3 + $0x2a8] ss:$16 sps:$4 sm:$0xff]   ;;  %v6327_v9 = vld [vmem:[%s8926_s3 + $0x3ec] ss:$16 sps:$4 sm:$0xff]  }
 0x23d   :  { %v3080_v5 = vadd.f32 %v3079_v15, %v3007_v0  ;;  %v3170_v35 = vmax.f32 %v3129_v46, %v3139_v20  ;;  %v3151_v41 = vadd.f32 %v8519_v56, %v3078_v11  ;;  %v3175_v59 = vmax.f32 %v3131_v7, %v3141_v29  ;;  %v6310_v20 = vld [vmem:[%s8926_s3 + $0x288] ss:$16 sps:$4 sm:$0xff]   ;;  %v6318_v46 = vld [vmem:[%s8926_s3 + $0x24c] ss:$16 sps:$4 sm:$0xff]  }
 0x23e   :  { %4611 = vmatpush2.bf16.msra.mxu0 %v6286_v10  ;;  %v3083_v40 = vpop.f32.mrf.mxu0  ;;  %v6349_v10 = vld [vmem:[%s8927_s2] sm:$0x3f]  ;;  %v6316_v11 = vld [vmem:[%s8926_s3 + $0x248] ss:$16 sps:$4 sm:$0xff]  }
 0x23f   :  { %4612 = vmatprep.subr.bf16.mxu0 %v6294_v57  ;;  %v3084_v61 = vadd.f32 %v3083_v40, %v3011_v31  ;;  %v3226_v60 = vrot.slane %v6349_v10, %v8955_v55  ;;  %v8956_v57 = vld [vmem:[#allocation4_spill] sm:$0xff]  ;;  %v3222_v34 = vrot.slane %v6349_v10, %v8957_v39  ;;  %v6301_v40 = vld [vmem:[%s8926_s3 + $0x2e8] ss:$16 sps:$4 sm:$0xff]   ;;  %v4659_v39 = vld [vmem:[%s8928_s5 + $0xc0] sm:$0xff] }
 0x240   :  { %v3085_v49 = vpop.f32.mrf.mxu0  ;;  %v3153_v23 = vadd.f32 %v8956_v57, %v3080_v5  ;;  %v6322_v28 = vld [vmem:[%s8926_s3 + $0x208] ss:$16 sps:$4 sm:$0xff]   ;;  %v6336_v5 = vld [vmem:[%s8926_s3 + $0x38c] ss:$16 sps:$4 sm:$0xff]  }
 0x241   :  { %v3157_v58 = vadd.f32 %v3156_v36, %v3084_v61  ;;  %v3086_v38 = vadd.f32 %v3085_v49, %v3013_v37  ;;  %v3143_v36 = vadd.f32 %v8491_v1, %v3070_v53  ;;  %v3162_v1 = vpop.f32.mrf.mxu1  ;;  %v6309_v61 = vld [vmem:[%s8926_s3 + $0x2ac] ss:$16 sps:$4 sm:$0xff]   ;;  %v6313_v49 = vld [vmem:[%s8926_s3 + $0x268] ss:$16 sps:$4 sm:$0xff]  }
 0x242   :  { %4613 = vmatpush2.bf16.msra.mxu0 %v6292_v52  ;;  %v3087_v2 = vpop.f32.mrf.mxu0  ;;  %v6315_v53 = vld [vmem:[%s8926_s3 + $0x26c] ss:$16 sps:$4 sm:$0xff]   ;;  %v6325_v29 = vld [vmem:[%s8926_s3 + $0x3e8] ss:$16 sps:$4 sm:$0xff]  }
 0x243   :  { %4614 = vmatprep.subr.bf16.mxu0 %v6300_v22  ;;  %v3159_v50 = vadd.f32 %v3158_v48, %v3086_v38  ;;  %v3088_v8 = vadd.f32 %v3087_v2, %v3015_v24  ;;  %v3181_v18 = vmax.f32 %v3147_v43, %v3157_v58  ;;  %v3176_v26 = vmax.f32 %v3133_v63, %v3143_v36  ;;  %v6306_v24 = vld [vmem:[%s8926_s3 + $0x2cc] ss:$16 sps:$4 sm:$0xff]   ;;  %v6319_v38 = vld [vmem:[%s8926_s3 + $0x228] ss:$16 sps:$4 sm:$0xff]   ;;  %v4665_v63 = vld [vmem:[%s8928_s5 + $0xf0] sm:$0xff] }
 0x244   :  { %v3089_v51 = vpop.f32.mrf.mxu0  ;;  %v6321_v58 = vld [vmem:[%s8926_s3 + $0x22c] ss:$16 sps:$4 sm:$0xff]   ;;  %v6337_v7 = vld [vmem:[%s8926_s3 + $0x368] ss:$16 sps:$4 sm:$0xff]  }
 0x245   :  { %v3182_v21 = vmax.f32 %v3149_v47, %v3159_v50  ;;  %v3161_v33 = vadd.f32 %v3160_v12, %v3088_v8  ;;  %v3090_v27 = vadd.f32 %v3089_v51, %v3017_v25  ;;  %v3193_v19 = vmax.f32 %v3169_v14, %v3181_v18  ;;  %v8958_v25 = vld [vmem:[#allocation2_spill] sm:$0xff]  ;;  %v6330_v43 = vld [vmem:[%s8926_s3 + $0x3cc] ss:$16 sps:$4 sm:$0xff]   ;;  %v6328_v12 = vld [vmem:[%s8926_s3 + $0x3c8] ss:$16 sps:$4 sm:$0xff]  }
 0x246   :  { %4615 = vmatpush2.bf16.msra.mxu0 %v6298_v16  ;;  %v6324_v16 = vld [vmem:[%s8926_s3 + $0x20c] ss:$16 sps:$4 sm:$0xff]   ;;  %v6331_v47 = vld [vmem:[%s8926_s3 + $0x3a8] ss:$16 sps:$4 sm:$0xff]  }
 0x247   :  { %v3194_v54 = vmax.f32 %v3170_v35, %v3182_v21  ;;  %v3187_v56 = vmax.f32 %v3151_v41, %v3161_v33  ;;  %v3163_v4 = vadd.f32 %v3162_v1, %v3090_v27  ;;  %v3237_v44 = vadd.f32 %v3222_v34, %v3193_v19  ;;  %v6333_v2 = vld [vmem:[%s8926_s3 + $0x3ac] ss:$16 sps:$4 sm:$0xff]   ;;  %v6334_v50 = vld [vmem:[%s8926_s3 + $0x388] ss:$16 sps:$4 sm:$0xff]   ;;  %v4647_v1 = vld [vmem:[%s8928_s5 + $0x60] sm:$0xff] }
 0x248   :  { %v6339_v8 = vld [vmem:[%s8926_s3 + $0x36c] ss:$16 sps:$4 sm:$0xff]   ;;  %v6340_v36 = vld [vmem:[%s8926_s3 + $0x348] ss:$16 sps:$4 sm:$0xff]  }
 0x249   :  { %v3199_v6 = vmax.f32 %v3175_v59, %v3187_v56  ;;  %v3188_v15 = vmax.f32 %v3153_v23, %v3163_v4  ;;  %v3238_v17 = vadd.f32 %v3226_v60, %v3194_v54  ;;  %v3249_v45 = vmax.f32 %v3237_v44, 0.0  ;;  %v6342_v35 = vld [vmem:[%s8926_s3 + $0x34c] ss:$16 sps:$4 sm:$0xff]   ;;  %v6343_v51 = vld [vmem:[%s8926_s3 + $0x328] ss:$16 sps:$4 sm:$0xff]   ;;  %v4649_v59 = vld [vmem:[%s8928_s5 + $0x70] sm:$0xff] }
 0x24a   :  { %v6345_v18 = vld [vmem:[%s8926_s3 + $0x32c] ss:$16 sps:$4 sm:$0xff]   ;;  %v6346_v21 = vld [vmem:[%s8926_s3 + $0x308] ss:$16 sps:$4 sm:$0xff]   ;;  %v4661_v54 = vld [vmem:[%s8928_s5 + $0xd0] sm:$0xff] }
 0x24b   :  { %v3243_v0 = vadd.f32 %v3222_v34, %v3199_v6  ;;  %v3200_v31 = vmax.f32 %v3176_v26, %v3188_v15  ;;  %v3250_v3 = vmax.f32 %v3238_v17, 0.0  ;;  %v6348_v41 = vld [vmem:[%s8926_s3 + $0x30c] ss:$16 sps:$4 sm:$0xff]   ;;  %v4645_v56 = vld [vmem:[%s8928_s5 + $0x50] sm:$0xff]  ;;  %v4643_v34 = vld [vmem:[%s8928_s5 + $0x40] sm:$0xff] }
 0x24c   :  { %v4666_v33 = vld [vmem:[%s8928_s5 + $0xf8] sm:$0xff]  ;;  %v4664_v10 = vld [vmem:[%s8928_s5 + $0xe8] sm:$0xff]  ;;  %v4697_v15 = vld [vmem:[%s8928_s5 + $0x1f0] sm:$0xff] }
 0x24d   :  { %v3244_v52 = vadd.f32 %v3226_v60, %v3200_v31  ;;  %v3255_v37 = vmax.f32 %v3243_v0, 0.0  ;;  %v4650_v27 = vld [vmem:[%s8928_s5 + $0x78] sm:$0xff]  ;;  %v4648_v55 = vld [vmem:[%s8928_s5 + $0x68] sm:$0xff]  ;;  %v4663_v60 = vld [vmem:[%s8928_s5 + $0xe0] sm:$0xff] }
 0x24e   :  { %v8959_v14 = vld [vmem:[#allocation5_spill] sm:$0xff]  ;;  %v4660_v4 = vld [vmem:[%s8928_s5 + $0xc8] sm:$0xff]  ;;  %v4681_v0 = vld [vmem:[%s8928_s5 + $0x170] sm:$0xff] }
 0x24f   :  { %v3256_v32 = vmax.f32 %v3244_v52, 0.0  ;;  %v3261_v22 = vpack.c.bf16 %v3255_v37, %v3249_v45  ;;  %v4662_v57 = vld [vmem:[%s8928_s5 + $0xd8] sm:$0xff]  ;;  %v4644_v19 = vld [vmem:[%s8928_s5 + $0x48] sm:$0xff]  ;;  %v4657_v52 = vld [vmem:[%s8928_s5 + $0xb0] sm:$0xff] }
 0x250   :  { %v4646_v23 = vld [vmem:[%s8928_s5 + $0x58] sm:$0xff]  ;;  %v4696_v44 = vld [vmem:[%s8928_s5 + $0x1e8] sm:$0xff] }
 0x251   :  { %v3262_v48 = vpack.c.bf16 %v3256_v32, %v3250_v3  ;;  %v4698_v26 = vld [vmem:[%s8928_s5 + $0x1f8] sm:$0xff]  ;;  %v4680_v37 = vld [vmem:[%s8928_s5 + $0x168] sm:$0xff]  ;;  %v4641_v3 = vld [vmem:[%s8928_s5 + $0x30] sm:$0xff] }
 0x252   :  { %v4682_v6 = vld [vmem:[%s8928_s5 + $0x178] sm:$0xff]  ;;  %5526 = vmatprep.subr.mxu0 %v4698_v26  ;;  %v4695_v32 = vld [vmem:[%s8928_s5 + $0x1e0] sm:$0xff]  ;;  %v4656_v45 = vld [vmem:[%s8928_s5 + $0xa8] sm:$0xff] }
 0x253   :  { %5482 = vmatprep.mubr.msk.bf16.mxu1 %vm4365_vm2, %v3262_v48  ;;  %5483 = vmatprep.mubr.msk.bf16.mxu0 %vm4365_vm2, %v3262_v48  ;;  %v4658_v17 = vld [vmem:[%s8928_s5 + $0xb8] sm:$0xff]  ;;  %v4679_v48 = vld [vmem:[%s8928_s5 + $0x160] sm:$0xff] }
 0x254   :  { %4488 = vmatmul.mubr.bf16.vlgmr.msra.gmra.mxu1 %v3261_v22  ;;  %4617 = vmatmul.mubr.bf16.vlgmr.msra.gmra.mxu0 %v3261_v22  ;;  %v4642_v31 = vld [vmem:[%s8928_s5 + $0x38] sm:$0xff] }
 0x255   :  { %4542 = vmatpush1.bf16.msra.mxu1 %v6301_v40  ;;  %4573 = vmatprep.mubr.bf16.mxu1 %v8958_v25  ;;  %v4640_v40 = vld [vmem:[%s8928_s5 + $0x28] sm:$0xff]  ;;  %v4694_v22 = vld [vmem:[%s8928_s5 + $0x1d8] sm:$0xff] }
 0x256   :  { %4543 = vmatprep.subr.bf16.mxu1 %v6306_v24  ;;  %5527 = vmatpush3.msra.mxu0 %v4682_v6  ;;  %v4655_v24 = vld [vmem:[%s8928_s5 + $0xa0] sm:$0xff]  ;;  %v4678_v25 = vld [vmem:[%s8928_s5 + $0x158] sm:$0xff] }
 0x257   :  { %5528 = vmatprep.subr.mxu0 %v4697_v15 }
 0x258   :  { %5529 = vmatpush3.msra.mxu0 %v4681_v0 }
 0x259   :  { %4544 = vmatpush1.bf16.msra.mxu1 %v6304_v30  ;;  %5530 = vmatprep.subr.mxu0 %v4696_v44  ;;  %v4639_v30 = vld [vmem:[%s8928_s5 + $0x20] sm:$0xff] }
 0x25a   :  { %4545 = vmatprep.subr.bf16.mxu1 %v6309_v61  ;;  %5531 = vmatpush3.msra.mxu0 %v4680_v37  ;;  %v4693_v61 = vld [vmem:[%s8928_s5 + $0x1d0] sm:$0xff] }
 0x25b   :  { %5532 = vmatprep.subr.mxu0 %v4695_v32 }
 0x25c   :  { %5533 = vmatpush3.msra.mxu0 %v4679_v48 }
 0x25d   :  { %4546 = vmatpush1.bf16.msra.mxu1 %v6307_v13  ;;  %v4654_v13 = vld [vmem:[%s8928_s5 + $0x98] sm:$0xff]  ;;  %5534 = vmatprep.subr.mxu0 %v4694_v22 }
 0x25e   :  { %4547 = vmatprep.subr.bf16.mxu1 %v6312_v62  ;;  %v4677_v62 = vld [vmem:[%s8928_s5 + $0x150] sm:$0xff]  ;;  %5535 = vmatpush3.msra.mxu0 %v4678_v25 }
 0x25f   :  { %5536 = vmatprep.subr.mxu0 %v4693_v61 }
 0x260   :  { %5537 = vmatpush3.msra.mxu0 %v4677_v62 }
 0x261   :  { %4548 = vmatpush1.bf16.msra.mxu1 %v6310_v20  ;;  %v4638_v20 = vld [vmem:[%s8928_s5 + $0x18] sm:$0xff] }
 0x262   :  { %4549 = vmatprep.subr.bf16.mxu1 %v6315_v53  ;;  %v4692_v53 = vld [vmem:[%s8928_s5 + $0x1c8] sm:$0xff] }
 0x263   :  { %5538 = vmatprep.subr.mxu0 %v4692_v53  ;;  %v8962_v53 = vsub.s32 2, %v7790_v42 }
 0x265   :  { %4550 = vmatpush1.bf16.msra.mxu1 %v6313_v49  ;;  %v4653_v49 = vld [vmem:[%s8928_s5 + $0x90] sm:$0xff] }
 0x266   :  { %4551 = vmatprep.subr.bf16.mxu1 %v6318_v46  ;;  %v4676_v46 = vld [vmem:[%s8928_s5 + $0x148] sm:$0xff] }
 0x267   :  { %5539 = vmatpush3.msra.mxu0 %v4676_v46 }
 0x269   :  { %4552 = vmatpush1.bf16.msra.mxu1 %v6316_v11  ;;  %v4637_v11 = vld [vmem:[%s8928_s5 + $0x10] sm:$0xff] }
 0x26a   :  { %4553 = vmatprep.subr.bf16.mxu1 %v6321_v58  ;;  %v4691_v58 = vld [vmem:[%s8928_s5 + $0x1c0] sm:$0xff] }
 0x26b   :  { %5540 = vmatprep.subr.mxu0 %v4691_v58 }
 0x26d   :  { %4554 = vmatpush1.bf16.msra.mxu1 %v6319_v38  ;;  %v4652_v38 = vld [vmem:[%s8928_s5 + $0x88] sm:$0xff] }
 0x26e   :  { %4555 = vmatprep.subr.bf16.mxu1 %v6324_v16  ;;  %v4675_v16 = vld [vmem:[%s8928_s5 + $0x140] sm:$0xff] }
 0x26f   :  { %5541 = vmatpush3.msra.mxu0 %v4675_v16 }
 0x271   :  { %4556 = vmatpush1.bf16.msra.mxu1 %v6322_v28  ;;  %v4636_v28 = vld [vmem:[%s8928_s5 + $0x8] sm:$0xff] }
 0x272   :  { %4557 = vmatprep.subr.bf16.mxu1 %v6327_v9  ;;  %v4690_v9 = vld [vmem:[%s8928_s5 + $0x1b8] sm:$0xff] }
 0x273   :  { %5542 = vmatprep.subr.mxu0 %v4690_v9 }
 0x275   :  { %4558 = vmatpush2.bf16.msra.mxu1 %v6325_v29  ;;  %v4651_v29 = vld [vmem:[%s8928_s5 + $0x80] sm:$0xff] }
 0x276   :  { %4559 = vmatprep.subr.bf16.mxu1 %v6330_v43  ;;  %v4674_v43 = vld [vmem:[%s8928_s5 + $0x138] sm:$0xff] }
 0x277   :  { %5543 = vmatpush3.msra.mxu0 %v4674_v43 }
 0x279   :  { %4560 = vmatpush2.bf16.msra.mxu1 %v6328_v12  ;;  %v4635_v12 = vld [vmem:[%s8928_s5] sm:$0xff] }
 0x27a   :  { %4561 = vmatprep.subr.bf16.mxu1 %v6333_v2  ;;  %v4689_v2 = vld [vmem:[%s8928_s5 + $0x1b0] sm:$0xff] }
 0x27b   :  { %5544 = vmatprep.subr.mxu0 %v4689_v2 }
 0x27d   :  { %4562 = vmatpush2.bf16.msra.mxu1 %v6331_v47  ;;  %v4673_v47 = vld [vmem:[%s8928_s5 + $0x130] sm:$0xff] }
 0x27e   :  { %4563 = vmatprep.subr.bf16.mxu1 %v6336_v5  ;;  %v4688_v5 = vld [vmem:[%s8928_s5 + $0x1a8] sm:$0xff]  ;;  %5545 = vmatpush3.msra.mxu0 %v4673_v47 }
 0x27f   :  { %5546 = vmatprep.subr.mxu0 %v4688_v5 }
 0x281   :  { %4564 = vmatpush2.bf16.msra.mxu1 %v6334_v50  ;;  %v4672_v50 = vld [vmem:[%s8928_s5 + $0x128] sm:$0xff] }
 0x282   :  { %4565 = vmatprep.subr.bf16.mxu1 %v6339_v8  ;;  %5547 = vmatpush3.msra.mxu0 %v4672_v50  ;;  %v4687_v8 = vld [vmem:[%s8928_s5 + $0x1a0] sm:$0xff] }
 0x283   :  { %5548 = vmatprep.subr.mxu0 %v4687_v8 }
 0x285   :  { %4566 = vmatpush2.bf16.msra.mxu1 %v6337_v7  ;;  %v4671_v7 = vld [vmem:[%s8928_s5 + $0x120] sm:$0xff] }
 0x286   :  { %4567 = vmatprep.subr.bf16.mxu1 %v6342_v35  ;;  %5549 = vmatpush3.msra.mxu0 %v4671_v7  ;;  %v4686_v35 = vld [vmem:[%s8928_s5 + $0x198] sm:$0xff] }
 0x287   :  { %5550 = vmatprep.subr.mxu0 %v4686_v35 }
 0x289   :  { %4568 = vmatpush2.bf16.msra.mxu1 %v6340_v36  ;;  %v4670_v36 = vld [vmem:[%s8928_s5 + $0x118] sm:$0xff] }
 0x28a   :  { %4569 = vmatprep.subr.bf16.mxu1 %v6345_v18  ;;  %5551 = vmatpush3.msra.mxu0 %v4670_v36  ;;  %v4685_v18 = vld [vmem:[%s8928_s5 + $0x190] sm:$0xff] }
 0x28b   :  { %5552 = vmatprep.subr.mxu0 %v4685_v18 }
 0x28d   :  { %4570 = vmatpush2.bf16.msra.mxu1 %v6343_v51  ;;  %v4669_v51 = vld [vmem:[%s8928_s5 + $0x110] sm:$0xff] }
 0x28e   :  { %4571 = vmatprep.subr.bf16.mxu1 %v6348_v41  ;;  %5553 = vmatpush3.msra.mxu0 %v4669_v51  ;;  %v4684_v41 = vld [vmem:[%s8928_s5 + $0x188] sm:$0xff] }
 0x28f   :  { %5554 = vmatprep.subr.mxu0 %v4684_v41 }
 0x291   :  { %4572 = vmatpush2.bf16.msra.mxu1 %v6346_v21  ;;  %v4668_v21 = vld [vmem:[%s8928_s5 + $0x108] sm:$0xff] }
 0x292   :  { %5488 = vmatprep.subr.mxu1 %v4666_v33  ;;  %5555 = vmatpush3.msra.mxu0 %v4668_v21  ;;  %v4683_v33 = vld [vmem:[%s8928_s5 + $0x180] sm:$0xff] }
 0x293   :  { %5556 = vmatprep.subr.mxu0 %v4683_v33 }
 0x294   :  { %4574 = vmatmul.mubr.bf16.vlgmr.msra.gmra.mxu1 %v8959_v14 }
 0x295   :  { %5489 = vmatpush3.msra.mxu1 %v4650_v27  ;;  %v4667_v27 = vld [vmem:[%s8928_s5 + $0x100] sm:$0xff] }
 0x296   :  { %5490 = vmatprep.subr.mxu1 %v4665_v63  ;;  %5557 = vmatpush3.msra.mxu0 %v4667_v27  ;;  %v4403_v63 = vpop.f32.mrf.mxu1 }
 0x297   :  { %5491 = vmatpush3.msra.mxu1 %v4649_v59  ;;  %v4446_v59 = vpop.f32.mrf.mxu0 }
 0x298   :  { %5492 = vmatprep.subr.mxu1 %v4664_v10  ;;  %v4405_v14 = vpop.f32.mrf.mxu1  ;;  %v3443_v10 = vld [vmem:[%s8929_s4] sm:$0xf] }
 0x299   :  { %5493 = vmatpush3.msra.mxu1 %v4648_v55  ;;  %v8960_v55 = vsub.s32 0, %v7790_v42 }
 0x29a   :  { %5494 = vmatprep.subr.mxu1 %v4663_v60 }
 0x29b   :  { %5495 = vmatpush3.msra.mxu1 %v4647_v1  ;;  %v3448_v60 = vrot.slane %v3443_v10, %v8960_v55  ;;  %v4407_v1 = vpop.f32.mrf.mxu1 }
 0x29c   :  { %5496 = vmatprep.subr.mxu1 %v4662_v57  ;;  %v4448_v57 = vpop.f32.mrf.mxu0 }
 0x29d   :  { %5497 = vmatpush3.msra.mxu1 %v4646_v23  ;;  %v8961_v23 = vsub.s32 1, %v7790_v42  ;;  %v4408_v15 = vadd.f32 %v4407_v1, %v3448_v60 }
 0x29e   :  { %5498 = vmatprep.subr.mxu1 %v4661_v54 }
 0x29f   :  { %5499 = vmatpush3.msra.mxu1 %v4645_v56  ;;  %v3452_v54 = vrot.slane %v3443_v10, %v8961_v23  ;;  %v4404_v56 = vadd.f32 %v4403_v63, %v3448_v60 }
 0x2a0   :  { %5500 = vmatprep.subr.mxu1 %v4660_v4  ;;  %v4409_v4 = vpop.f32.mrf.mxu1 }
 0x2a1   :  { %5501 = vmatpush3.msra.mxu1 %v4644_v19  ;;  %v4450_v19 = vpop.f32.mrf.mxu0  ;;  %v4410_v44 = vadd.f32 %v4409_v4, %v3452_v54 }
 0x2a2   :  { %5502 = vmatprep.subr.mxu1 %v4659_v39  ;;  %v4406_v39 = vadd.f32 %v4405_v14, %v3452_v54  ;;  %v4451_v37 = vadd.f32 %v4450_v19, %v4408_v15  ;;  %v6350_v14 = vmov 1  }
 0x2a3   :  { %5503 = vmatpush3.msra.mxu1 %v4643_v34  ;;  %v4447_v34 = vadd.f32 %v4446_v59, %v4404_v56  ;;  %5567 = vset.pattern.permute.xlu1 %v6350_v14  ;;  %v6351_v59 = vmov 0  }
 0x2a4   :  { %5504 = vmatprep.subr.mxu1 %v4658_v17  ;;  %v4449_v6 = vadd.f32 %v4448_v57, %v4406_v39  ;;  %v4452_v17 = vpop.f32.mrf.mxu0  ;;  %5566 = vset.pattern.permute.xlu0 %v6351_v59  ;;  %v5484_v57 = vld [vmem:[%s8930_s6] ss:$0 sm:$0xff] }
 0x2a5   :  { %5505 = vmatpush3.msra.mxu1 %v4642_v31  ;;  %v4453_v32 = vadd.f32 %v4452_v17, %v4410_v44  ;;  %v5485_v44 = vld [vmem:[%s8932_s7] ss:$0 sm:$0xff] }
 0x2a6   :  { %5506 = vmatprep.subr.mxu1 %v4657_v52 }
 0x2a7   :  { %5507 = vmatpush3.msra.mxu1 %v4641_v3 }
 0x2a8   :  { %5508 = vmatprep.subr.mxu1 %v4656_v45 }
 0x2a9   :  { %5509 = vmatpush3.msra.mxu1 %v4640_v40 }
 0x2aa   :  { %5510 = vmatprep.subr.mxu1 %v4655_v24 }
 0x2ab   :  { %5511 = vmatpush3.msra.mxu1 %v4639_v30 }
 0x2ac   :  { %5512 = vmatprep.subr.mxu1 %v4654_v13 }
 0x2ad   :  { %5513 = vmatpush3.msra.mxu1 %v4638_v20 }
 0x2ae   :  { %5514 = vmatprep.subr.mxu1 %v4653_v49  ;;  %v3456_v49 = vrot.slane %v3443_v10, %v8962_v53 }
 0x2af   :  { %5515 = vmatpush3.msra.mxu1 %v4637_v11  ;;  %v8963_v11 = vsub.s32 3, %v7790_v42 }
 0x2b0   :  { %5516 = vmatprep.subr.mxu1 %v4652_v38 }
 0x2b1   :  { %5517 = vmatpush3.msra.mxu1 %v4636_v28  ;;  %v3460_v58 = vrot.slane %v3443_v10, %v8963_v11 }
 0x2b2   :  { %5518 = vmatprep.subr.mxu1 %v4651_v29 }
 0x2b3   :  { %5519 = vmatpush3.msra.mxu1 %v4635_v12 }
 0x2d5   :  { %v4532_v61 = vpop.f32.mrf.mxu0 }
 0x2d6   :  { %v4533_v38 = vadd.f32 %v4532_v61, %v3456_v49 }
 0x2d7   :  { %v4534_v13 = vpop.f32.mrf.mxu0 }
 0x2d8   :  { %v4535_v9 = vadd.f32 %v4534_v13, %v3460_v58 }
 0x2d9   :  { %v4536_v62 = vpop.f32.mrf.mxu0 }
 0x2da   :  { %v4537_v12 = vadd.f32 %v4536_v62, %v3456_v49 }
 0x2db   :  { %v4538_v20 = vpop.f32.mrf.mxu0 }
 0x2dc   :  { %v4539_v8 = vadd.f32 %v4538_v20, %v3460_v58 }
 0x314   :  { %v4489_v26 = vpop.f32.mrf.mxu1  ;;  %v4618_v46 = vpop.f32.mrf.mxu0 }
 0x315   :  { %v4490_v0 = vadd.f32 %v4489_v26, %v4447_v34 }
 0x316   :  { %v4491_v31 = vpop.f32.mrf.mxu1  ;;  %v4620_v16 = vpop.f32.mrf.mxu0 }
 0x317   :  { %v4492_v52 = vadd.f32 %v4491_v31, %v4449_v6  ;;  %v4627_v48 = vmax.f32 %v4490_v0, 0.0  ;;  %v5486_v31 = vld [vmem:[%s8932_s7 + $0x1] ss:$0 sm:$0xff] }
 0x318   :  { %v4493_v3 = vpop.f32.mrf.mxu1  ;;  %v4622_v47 = vpop.f32.mrf.mxu0 }
 0x319   :  { %v4628_v45 = vmax.f32 %v4492_v52, 0.0  ;;  %v4494_v40 = vadd.f32 %v4493_v3, %v4451_v37 }
 0x31a   :  { %v4495_v22 = vpop.f32.mrf.mxu1  ;;  %v4624_v41 = vpop.f32.mrf.mxu0 }
 0x31b   :  { %v4496_v24 = vadd.f32 %v4495_v22, %v4453_v32  ;;  %4770 = vmatprep.mubr.f32.mxu1 %v4628_v45  ;;  %v4631_v30 = vmax.f32 %v4494_v40, 0.0  ;;  %v5487_v45 = vld [vmem:[%s8933_s8] ss:$0 sm:$0xff] }
 0x31c   :  { %4771 = vmatmul.mubr.f32.vlgmr.msra.gmra.mxu1 %v4627_v48 }
 0x31d   :  { %v4632_v25 = vmax.f32 %v4496_v24, 0.0 }
 0x31f   :  { %4775 = vmatprep.mubr.f32.mxu1 %v4632_v25 }
 0x320   :  { %4776 = vmatmul.mubr.f32.gmra.mxu1 %v4631_v30 }
 0x354   :  { %v4575_v28 = vpop.f32.mrf.mxu1 }
 0x355   :  { %v4576_v29 = vadd.f32 %v4575_v28, %v4533_v38 }
 0x356   :  { %v4577_v43 = vpop.f32.mrf.mxu1 }
 0x357   :  { %v4578_v2 = vadd.f32 %v4577_v43, %v4535_v9  ;;  %v4619_v5 = vadd.f32 %v4618_v46, %v4576_v29 }
 0x358   :  { %v4579_v50 = vpop.f32.mrf.mxu1 }
 0x359   :  { %v4621_v7 = vadd.f32 %v4620_v16, %v4578_v2  ;;  %v4580_v35 = vadd.f32 %v4579_v50, %v4537_v12  ;;  %v4629_v42 = vmax.f32 %v4619_v5, 0.0 }
 0x35a   :  { %v4581_v36 = vpop.f32.mrf.mxu1 }
 0x35b   :  { %v4630_v18 = vmax.f32 %v4621_v7, 0.0  ;;  %v4582_v51 = vadd.f32 %v4581_v36, %v4539_v8  ;;  %v4623_v21 = vadd.f32 %v4622_v47, %v4580_v35 }
 0x35d   :  { %v4625_v33 = vadd.f32 %v4624_v41, %v4582_v51  ;;  %4845 = vmatprep.mubr.f32.mxu0 %v4630_v18  ;;  %v4633_v63 = vmax.f32 %v4623_v21, 0.0 }
 0x35e   :  { %4846 = vmatmul.mubr.f32.vlgmr.msra.gmra.mxu0 %v4629_v42 }
 0x35f   :  { %v4634_v27 = vmax.f32 %v4625_v33, 0.0 }
 0x361   :  { %4850 = vmatprep.mubr.f32.mxu0 %v4634_v27 }
 0x362   :  { %4851 = vmatmul.mubr.f32.gmra.mxu0 %v4633_v63 }
 0x3dc   :  { %v5520_v10 = vpop.f32.mrf.mxu1 }
 0x3de   :  { %v5521_v55 = vpop.f32.mrf.mxu1 }
 0x3df   :  { %v5522_v1 = vadd.f32 %v5521_v55, %v5520_v10 }
 0x3e0   :  { %v5523_v60 = vpop.f32.mrf.mxu1 }
 0x3e1   :  { %v4773_v4 = vadd.f32 %v5522_v1, %v5484_v57 }
 0x3e2   :  { %v5524_v23 = vpop.f32.mrf.mxu1 }
 0x3e3   :  { %v5525_v19 = vadd.f32 %v5524_v23, %v5523_v60 }
 0x3e5   :  { %v4778_v15 = vadd.f32 %v5525_v19, %v5484_v57 }
 0x41e   :  { %v5558_v54 = vpop.f32.mrf.mxu0 }
 0x420   :  { %v5559_v56 = vpop.f32.mrf.mxu0 }
 0x421   :  { %v5560_v39 = vadd.f32 %v5559_v56, %v5558_v54 }
 0x422   :  { %v5561_v34 = vpop.f32.mrf.mxu0 }
 0x423   :  { %v4848_v26 = vadd.f32 %v5560_v39, %v4773_v4 }
 0x424   :  { %v5562_v6 = vpop.f32.mrf.mxu0 }
 0x425   :  { %4900 = vst.msk [vmem:[%s8931_s10] sm:$0xff] %vm4899_vm3, %v4848_v26  ;;  %v5563_v17 = vadd.f32 %v5562_v6, %v5561_v34  ;;  %4875 = vperm.xlu1 %5567, %v4848_v26   ;;  %4859 = vperm.xlu0 %5566, %v4848_v26  }
 0x427   :  { %v4853_v0 = vadd.f32 %v5563_v17, %v4778_v15 }
 0x429   :  { %4901 = vst.msk [vmem:[%s8931_s10 + $0x8] sm:$0xff] %vm4899_vm3, %v4853_v0  ;;  %4879 = vperm.xlu1 %5567, %v4853_v0   ;;  %4864 = vperm.xlu0 %5566, %v4853_v0  }
 0x42d   :  { %5568 = vset.pattern.permute.xlu0 %v6350_v14 }
 0x4a0   :  { %v4876_v52 = vpop.permute.xlu1 %4875  ;;  %v4860_v37 = vpop.permute.xlu0 %4859 }
 0x4a1   :  { %v4886_v3 = vmul.f32 %v5486_v31, %v4876_v52  ;;  %v4871_v32 = vmul.f32 %v5485_v44, %v4860_v37 }
 0x4a3   :  { %v4888_v48 = vadd.f32 %v4886_v3, %v4871_v32 }
 0x4a4   :  { %v4880_v40 = vpop.permute.xlu1 %4879  ;;  %v4865_v22 = vpop.permute.xlu0 %4864 }
 0x4a5   :  { %v4897_v24 = vadd.f32 %v5487_v45, %v4888_v48  ;;  %v4887_v25 = vmul.f32 %v5486_v31, %v4880_v40  ;;  %v4872_v30 = vmul.f32 %v5485_v44, %v4865_v22 }
 0x4a7   :  { %4903 = vst.msk [vmem:[%s8934_s9] sm:$0xff] %vm4902_vm4, %v4897_v24  ;;  %v4889_v61 = vadd.f32 %v4887_v25, %v4872_v30 }
 0x4a9   :  { %v4898_v13 = vadd.f32 %v5487_v45, %v4889_v61 }
 0x4ab   :  { %4904 = vst.msk [vmem:[%s8934_s9 + $0x8] sm:$0xff] %vm4902_vm4, %v4898_v13 }

</bundles_post_ra>
